<compile_context>
chip_gen: v6e
topology: v6e:2x2x1
jax: 0.10.0
libtpu: 0.0.40
codegen_flags: <defaults>
</compile_context>

<pallas_src>
import math
import numpy as np
import jax
import jax.numpy as jnp
from jax import lax
from jax.experimental import pallas as pl
from jax.experimental.pallas import tpu as pltpu  # noqa: F401 (TPU backend)

# ----- hyper-parameters (small, consistent with the tutorial module) --------
d_model = 32
d_ff = 64
d_k = d_v = 8
n_heads = 4
n_layers = 2
src_vocab_size = 16
tgt_vocab_size = 16
batch_size = 2
src_len = 5          # fixed by the hardcoded encoder positions [[1,2,3,4,0]]
tgt_len = 5          # fixed by the hardcoded decoder positions [[5,1,2,3,4]]
LN_EPS = 1e-5
HDK = n_heads * d_k                  # 32
LANE = 128                           # padded feature width (one lane tile)
NROW = batch_size * src_len          # 10 rows (= batch * tgt_len as well)
NQ = n_heads * NROW                  # 40 stacked (head, batch, pos) rows
NEG = -1000000000.0
MXU_DTYPE = jnp.bfloat16             # bf16 MXU operands, f32 accumulation
VPAD = 8                             # sublane stride for packed vectors

ENC_POS_IDX = jnp.array([[1, 2, 3, 4, 0]], dtype=jnp.int32)
DEC_POS_IDX = jnp.array([[5, 1, 2, 3, 4]], dtype=jnp.int32)


# ------------------------- packed-operand registries ------------------------

def _weight_shapes():
    s = {}
    for l in range(n_layers):
        p = f"enc{l}_"
        s[p + "wq"] = (d_model, HDK)
        s[p + "wk"] = (d_model, HDK)
        s[p + "wv"] = (d_model, n_heads * d_v)
        s[p + "wo"] = (n_heads * d_v, d_model)
        s[p + "w1"] = (d_model, d_ff)
        s[p + "w2"] = (d_ff, d_model)
    for l in range(n_layers):
        p = f"dec{l}_"
        s[p + "wq1"] = (d_model, HDK)
        s[p + "wk1"] = (d_model, HDK)
        s[p + "wv1"] = (d_model, n_heads * d_v)
        s[p + "wo1"] = (n_heads * d_v, d_model)
        s[p + "wq2"] = (d_model, HDK)
        s[p + "wk2"] = (d_model, HDK)
        s[p + "wv2"] = (d_model, n_heads * d_v)
        s[p + "wo2"] = (n_heads * d_v, d_model)
        s[p + "fw1"] = (d_model, d_ff)
        s[p + "fw2"] = (d_ff, d_model)
    s["proj"] = (d_model, tgt_vocab_size)
    return s


def _vector_specs():
    s = {}
    for l in range(n_layers):
        p = f"enc{l}_"
        for n in ("bq", "bk", "bv"):
            s[p + n] = (HDK, "bias")
        s[p + "bo"] = (d_model, "bias")
        s[p + "ln1g"] = (d_model, "gamma")
        s[p + "ln1b"] = (d_model, "beta")
        s[p + "b1"] = (d_ff, "bias")
        s[p + "b2"] = (d_model, "bias")
        s[p + "ln2g"] = (d_model, "gamma")
        s[p + "ln2b"] = (d_model, "beta")
    for l in range(n_layers):
        p = f"dec{l}_"
        for n in ("bq1", "bk1", "bv1"):
            s[p + n] = (HDK, "bias")
        s[p + "bo1"] = (d_model, "bias")
        s[p + "ln1g"] = (d_model, "gamma")
        s[p + "ln1b"] = (d_model, "beta")
        for n in ("bq2", "bk2", "bv2"):
            s[p + n] = (HDK, "bias")
        s[p + "bo2"] = (d_model, "bias")
        s[p + "ln2g"] = (d_model, "gamma")
        s[p + "ln2b"] = (d_model, "beta")
        s[p + "fb1"] = (d_ff, "bias")
        s[p + "fb2"] = (d_model, "bias")
        s[p + "ln3g"] = (d_model, "gamma")
        s[p + "ln3b"] = (d_model, "beta")
    return s


W_SHAPES = _weight_shapes()
W_ORDER = list(W_SHAPES.keys())
W_IDX = {n: i for i, n in enumerate(W_ORDER)}

V_SPECS = _vector_specs()
V_ORDER = list(V_SPECS.keys())
V_IDX = {n: i for i, n in enumerate(V_ORDER)}


# ============================ fused Pallas kernel ===========================

def transformer_kernel(encx_ref, decx_ref, bias_ref, w_ref, v_ref,
                       logits_ref, maps_ref):
    """Whole Transformer forward in one gridless, all-VMEM invocation.

    encx/decx : [B*seq, 128] f32 residual slabs (true features in lanes 0..31)
    bias_ref  : [3*NQ, NROW] f32 additive attention bias (-1e9 on masked /
                cross-batch entries) for enc-self / dec-self / dec-enc
    w_ref     : [33*128, 128] bf16 packed, zero-padded weight matrices
    v_ref     : [52*8, 128]   f32 packed biases + LayerNorm gamma/beta rows
    logits_ref: [B*tgt, 128]  f32 lane-dense logits (true vocab in lanes 0..15)
    maps_ref  : [3*n_layers, NQ, NROW] f32 attention maps, rows (head,b,i),
                cols (b',k); the wrapper extracts the b'==b diagonal.
    """
    f32 = jnp.float32
    inv_sqrt_dk = 1.0 / math.sqrt(d_k)

    # ---- structural constants: iota + compares only, hoisted above loops ----
    r40 = lax.broadcasted_iota(jnp.int32, (NQ, LANE), 0)
    c128 = lax.broadcasted_iota(jnp.int32, (NQ, LANE), 1)
    qsel = jnp.zeros((NQ, LANE), f32)          # head block-diagonal selector
    for h in range(n_heads):
        row_ok = jnp.logical_and(r40 >= h * NROW, r40 < (h + 1) * NROW)
        col_ok = jnp.logical_and(c128 >= h * d_k, c128 < (h + 1) * d_k)
        qsel = qsel + jnp.logical_and(row_ok, col_ok).astype(f32)

    rr = lax.broadcasted_iota(jnp.int32, (NQ, NROW), 0)
    rc = lax.broadcasted_iota(jnp.int32, (NQ, NROW), 1)
    rep = jnp.zeros((NQ, NROW), f32)           # replicate rows per head
    for h in range(n_heads):
        row_ok = jnp.logical_and(rr >= h * NROW, rr < (h + 1) * NROW)
        rep = rep + jnp.logical_and(row_ok, rc == (rr - h * NROW)).astype(f32)
    rep = rep.astype(MXU_DTYPE)

    pr = lax.broadcasted_iota(jnp.int32, (NROW, NQ), 0)
    pc = lax.broadcasted_iota(jnp.int32, (NROW, NQ), 1)
    fold = jnp.zeros((NROW, NQ), f32)          # fold per-head blocks back
    for h in range(n_heads):
        col_ok = jnp.logical_and(pc >= h * NROW, pc < (h + 1) * NROW)
        fold = fold + jnp.logical_and(col_ok, (pc - h * NROW) == pr).astype(f32)
    fold = fold.astype(MXU_DTYPE)

    feat_mask = (lax.broadcasted_iota(jnp.int32, (1, LANE), 1)
                 < d_model).astype(f32)

    # ------------------------------- helpers ---------------------------------
    def W(name):                                   # [128,128] bf16, zero-padded
        i = W_IDX[name] * LANE
        return w_ref[i:i + LANE, :]

    def V(name):                                   # [1,128] f32, zero-padded
        i = V_IDX[name] * VPAD
        return v_ref[i:i + 1, :]

    def mm(a, b):                                  # bf16 MXU, f32 accumulation
        return jnp.dot(a.astype(MXU_DTYPE), b.astype(MXU_DTYPE),
                       preferred_element_type=f32)

    def mm_nt(a, b):                               # contract last axes (no .T)
        return lax.dot_general(a.astype(MXU_DTYPE), b.astype(MXU_DTYPE),
                               (((1,), (1,)), ((), ())),
                               preferred_element_type=f32)

    def layernorm(x, g, be):
        # x has exact zeros in pad lanes; reduce over 128 lanes, divide by 32.
        mu = jnp.sum(x, axis=-1, keepdims=True) * (1.0 / d_model)
        diff = (x - mu) * feat_mask
        var = jnp.sum(diff * diff, axis=-1, keepdims=True) * (1.0 / d_model)
        return diff * lax.rsqrt(var + LN_EPS) * g + be

    def mha(x_q, x_kv, bias, names, slot):
        wq, bq, wk, bk, wv, bv, wo, bo, g, be = names
        q = mm(x_q, W(wq)) + V(bq)                 # [NROW, 128]
        k = mm(x_kv, W(wk)) + V(bk)
        v = mm(x_kv, W(wv)) + V(bv)
        # block-diagonal Q over heads -> ONE score matmul for all (b, h)
        q_bd = mm(rep, q) * qsel                   # [NQ, 128]
        s = mm_nt(q_bd, k) * inv_sqrt_dk + bias    # [NQ, NROW]
        m = jnp.max(s, axis=-1, keepdims=True)
        e = jnp.exp(s - m)
        attn = e * pl.reciprocal(jnp.sum(e, axis=-1, keepdims=True),
                                 approx=True)
        maps_ref[slot] = attn                      # one store per block
        # attn @ V then fold per-head blocks into head-major context rows
        ctx = mm(fold, mm(attn, v) * qsel)         # [NROW, 128]
        out = mm(ctx, W(wo)) + V(bo)
        return layernorm(out + x_q, V(g), V(be))

    def ffn(x, names):
        w1, b1, w2, b2, g, be = names
        h = jnp.maximum(mm(x, W(w1)) + V(b1), 0.0)
        return layernorm(mm(h, W(w2)) + V(b2) + x, V(g), V(be))

    bias_enc = bias_ref[0:NQ, :]
    bias_dec_self = bias_ref[NQ:2 * NQ, :]
    bias_dec_enc = bias_ref[2 * NQ:3 * NQ, :]

    # -------------------------------- encoder --------------------------------
    enc_h = encx_ref[...]
    for l in range(n_layers):
        p = f"enc{l}_"
        enc_h = mha(enc_h, enc_h, bias_enc,
                    (p + "wq", p + "bq", p + "wk", p + "bk", p + "wv", p + "bv",
                     p + "wo", p + "bo", p + "ln1g", p + "ln1b"),
                    slot=l)
        enc_h = ffn(enc_h, (p + "w1", p + "b1", p + "w2", p + "b2",
                            p + "ln2g", p + "ln2b"))

    # -------------------------------- decoder --------------------------------
    dec_h = decx_ref[...]
    for l in range(n_layers):
        p = f"dec{l}_"
        dec_h = mha(dec_h, dec_h, bias_dec_self,
                    (p + "wq1", p + "bq1", p + "wk1", p + "bk1",
                     p + "wv1", p + "bv1", p + "wo1", p + "bo1",
                     p + "ln1g", p + "ln1b"),
                    slot=n_layers + l)
        dec_h = mha(dec_h, enc_h, bias_dec_enc,
                    (p + "wq2", p + "bq2", p + "wk2", p + "bk2",
                     p + "wv2", p + "bv2", p + "wo2", p + "bo2",
                     p + "ln2g", p + "ln2b"),
                    slot=2 * n_layers + l)
        dec_h = ffn(dec_h, (p + "fw1", p + "fb1", p + "fw2", p + "fb2",
                            p + "ln3g", p + "ln3b"))

    # --------------------------- final projection ----------------------------
    logits_ref[...] = mm(dec_h, W("proj"))         # lane-dense [NROW, 128]


# ============================ plain-JAX glue ================================

def get_sinusoid_encoding_table(n_position, dm):
    def cal_angle(position, hid_idx):
        return position / np.power(10000, 2 * (hid_idx // 2) / dm)
    table = np.array([[cal_angle(pos, j) for j in range(dm)]
                      for pos in range(n_position)])
    table[:, 0::2] = np.sin(table[:, 0::2])
    table[:, 1::2] = np.cos(table[:, 1::2])
    return jnp.asarray(table, dtype=jnp.float32)


def get_attn_pad_mask(seq_q, seq_k):
    B, len_q = seq_q.shape
    len_k = seq_k.shape[1]
    pad = (seq_k == 0).astype(jnp.float32)[:, None, :]
    return jnp.broadcast_to(pad, (B, len_q, len_k))


def get_attn_subsequent_mask(seq):
    B, L = seq.shape
    sub = jnp.triu(jnp.ones((L, L), jnp.float32), k=1)
    return jnp.broadcast_to(sub[None], (B, L, L))


def _embed_and_masks(params, enc_inputs, dec_inputs):
    enc_x = (jnp.take(params["src_emb"], enc_inputs, axis=0)
             + jnp.take(params["pos_src"], ENC_POS_IDX, axis=0))
    dec_x = (jnp.take(params["tgt_emb"], dec_inputs, axis=0)
             + jnp.take(params["pos_tgt"], DEC_POS_IDX, axis=0))
    enc_m = get_attn_pad_mask(enc_inputs, enc_inputs)
    dec_sm = ((get_attn_pad_mask(dec_inputs, dec_inputs)
               + get_attn_subsequent_mask(dec_inputs)) > 0).astype(jnp.float32)
    dec_em = get_attn_pad_mask(dec_inputs, enc_inputs)
    return enc_x, dec_x, enc_m, dec_sm, dec_em


def _pack_operands(params):
    wt = []
    for name in W_ORDER:
        w = params["w"][name]
        pad = jnp.zeros((LANE, LANE), jnp.float32)
        wt.append(pad.at[:w.shape[0], :w.shape[1]].set(w))
    wblob = jnp.concatenate(wt, axis=0).astype(MXU_DTYPE)   # pre-cast bf16

    vt = []
    for name in V_ORDER:
        v = params["v"][name]
        row = jnp.zeros((VPAD, LANE), jnp.float32)
        vt.append(row.at[0, :v.shape[0]].set(v))
    vblob = jnp.concatenate(vt, axis=0)                     # f32
    return wblob, vblob


def _make_bias(mask, len_q, len_k):
    """Additive attention bias [H*B*len_q, B*len_k]; -1e9 on masked or
    cross-batch entries, 0 elsewhere."""
    base = jnp.where(mask > 0, NEG, 0.0)                    # [B,Lq,Lk]
    eye = jnp.eye(batch_size, dtype=jnp.float32)
    b4 = jnp.where(eye[:, None, :, None] > 0,
                   base[:, :, None, :], NEG)                # [B,Lq,B,Lk]
    b5 = jnp.broadcast_to(b4[None],
                          (n_heads, batch_size, len_q, batch_size, len_k))
    return b5.reshape(n_heads * batch_size * len_q, batch_size * len_k)


def transformer_forward(params, enc_inputs, dec_inputs):
    B = enc_inputs.shape[0]
    enc_x, dec_x, enc_m, dec_sm, dec_em = _embed_and_masks(
        params, enc_inputs, dec_inputs)

    def pad_rows(x, L):
        flat = x.reshape(B * L, d_model).astype(jnp.float32)
        return jnp.zeros((B * L, LANE), jnp.float32).at[:, :d_model].set(flat)

    enc_xp = pad_rows(enc_x, src_len)
    dec_xp = pad_rows(dec_x, tgt_len)

    bias_blob = jnp.concatenate([
        _make_bias(enc_m, src_len, src_len),
        _make_bias(dec_sm, tgt_len, tgt_len),
        _make_bias(dec_em, tgt_len, src_len)], axis=0)      # [3*NQ, NROW]

    wblob, vblob = _pack_operands(params)

    out_shape = (
        jax.ShapeDtypeStruct((NROW, LANE), jnp.float32),             # logits
        jax.ShapeDtypeStruct((3 * n_layers, NQ, NROW), jnp.float32),  # attn maps
    )
    # Single gridless pallas_call: 5 input DMAs, everything resident in VMEM.
    logits_pad, maps = pl.pallas_call(
        transformer_kernel, out_shape=out_shape)(
        enc_xp, dec_xp, bias_blob, wblob, vblob)

    logits = logits_pad[:, :tgt_vocab_size]

    def unfold(m, lq, lk):
        m = m.reshape(n_layers, n_heads, batch_size, lq, batch_size, lk)
        m = jnp.diagonal(m, axis1=2, axis2=4)      # (L, H, lq, lk, B)
        return jnp.moveaxis(m, -1, 1)              # (L, B, H, lq, lk)

    enc_attns = unfold(maps[0:n_layers], src_len, src_len)
    dec_self_attns = unfold(maps[n_layers:2 * n_layers], tgt_len, tgt_len)
    dec_enc_attns = unfold(maps[2 * n_layers:3 * n_layers], tgt_len, src_len)
    return logits, enc_attns, dec_self_attns, dec_enc_attns


# ---------------------- pure-JAX f32 reference ------------------------------

def transformer_reference(params, enc_inputs, dec_inputs):
    B = enc_inputs.shape[0]
    enc_x, dec_x, enc_m, dec_sm, dec_em = _embed_and_masks(
        params, enc_inputs, dec_inputs)
    wd, vd = params["w"], params["v"]

    def ln(x, g, b):
        mu = x.mean(-1, keepdims=True)
        var = ((x - mu) ** 2).mean(-1, keepdims=True)
        return (x - mu) / jnp.sqrt(var + LN_EPS) * g + b

    def mha(x_q, x_kv, mask, wq, bq, wk, bk, wv, bv, wo, bo, g, b):
        Lq, Lk = x_q.shape[1], x_kv.shape[1]
        q = (x_q @ wq + bq).reshape(B, Lq, n_heads, d_k).transpose(0, 2, 1, 3)
        k = (x_kv @ wk + bk).reshape(B, Lk, n_heads, d_k).transpose(0, 2, 1, 3)
        v = (x_kv @ wv + bv).reshape(B, Lk, n_heads, d_v).transpose(0, 2, 1, 3)
        sc = jnp.einsum("bhqd,bhkd->bhqk", q, k) / np.sqrt(d_k)
        sc = jnp.where(mask[:, None] > 0, NEG, sc)
        attn = jax.nn.softmax(sc, axis=-1)
        ctx = jnp.einsum("bhqk,bhkd->bhqd", attn, v)
        ctx = ctx.transpose(0, 2, 1, 3).reshape(B, Lq, n_heads * d_v)
        return ln(ctx @ wo + bo + x_q, g, b), attn

    def ffn(x, w1, b1, w2, b2, g, b):
        h = jax.nn.relu(x @ w1 + b1)
        return ln(h @ w2 + b2 + x, g, b)

    enc_h, enc_attns = enc_x, []
    for l in range(n_layers):
        p = f"enc{l}_"
        enc_h, a = mha(enc_h, enc_h, enc_m,
                       wd[p + "wq"], vd[p + "bq"], wd[p + "wk"], vd[p + "bk"],
                       wd[p + "wv"], vd[p + "bv"], wd[p + "wo"], vd[p + "bo"],
                       vd[p + "ln1g"], vd[p + "ln1b"])
        enc_attns.append(a)
        enc_h = ffn(enc_h, wd[p + "w1"], vd[p + "b1"], wd[p + "w2"],
                    vd[p + "b2"], vd[p + "ln2g"], vd[p + "ln2b"])

    dec_h, dsa, dea = dec_x, [], []
    for l in range(n_layers):
        p = f"dec{l}_"
        dec_h, a = mha(dec_h, dec_h, dec_sm,
                       wd[p + "wq1"], vd[p + "bq1"], wd[p + "wk1"], vd[p + "bk1"],
                       wd[p + "wv1"], vd[p + "bv1"], wd[p + "wo1"], vd[p + "bo1"],
                       vd[p + "ln1g"], vd[p + "ln1b"])
        dsa.append(a)
        dec_h, a = mha(dec_h, enc_h, dec_em,
                       wd[p + "wq2"], vd[p + "bq2"], wd[p + "wk2"], vd[p + "bk2"],
                       wd[p + "wv2"], vd[p + "bv2"], wd[p + "wo2"], vd[p + "bo2"],
                       vd[p + "ln2g"], vd[p + "ln2b"])
        dea.append(a)
        dec_h = ffn(dec_h, wd[p + "fw1"], vd[p + "fb1"], wd[p + "fw2"],
                    vd[p + "fb2"], vd[p + "ln3g"], vd[p + "ln3b"])

    logits = (dec_h @ params["w"]["proj"]).reshape(-1, tgt_vocab_size)
    return logits, jnp.stack(enc_attns), jnp.stack(dsa), jnp.stack(dea)


# ------------------------------ parameters ----------------------------------

def init_params(key):
    n_keys = len(W_ORDER) + len(V_ORDER) + 2
    keys = iter(jax.random.split(key, n_keys))

    w = {name: 0.1 * jax.random.normal(next(keys), W_SHAPES[name], jnp.float32)
         for name in W_ORDER}
    v = {}
    for name in V_ORDER:
        size, kind = V_SPECS[name]
        if kind == "gamma":
            v[name] = jnp.ones((size,), jnp.float32)
        elif kind == "beta":
            v[name] = jnp.zeros((size,), jnp.float32)
        else:
            v[name] = 0.1 * jax.random.normal(next(keys), (size,), jnp.float32)
    return dict(
        w=w, v=v,
        src_emb=jax.random.normal(next(keys), (src_vocab_size, d_model),
                                  jnp.float32),
        tgt_emb=jax.random.normal(next(keys), (tgt_vocab_size, d_model),
                                  jnp.float32),
        pos_src=get_sinusoid_encoding_table(src_len + 1, d_model),
        pos_tgt=get_sinusoid_encoding_table(tgt_len + 1, d_model),
    )


# ================================ main ======================================

if __name__ == "__main__":
    params = init_params(jax.random.PRNGKey(0))

    # deterministic token ids (0 == PAD) at the shapes the module implies
    enc_inputs = jnp.array([[1, 5, 3, 9, 0],
                            [4, 2, 7, 0, 0]], dtype=jnp.int32)
    dec_inputs = jnp.array([[6, 1, 4, 8, 3],
                            [2, 9, 5, 0, 0]], dtype=jnp.int32)

    fwd = jax.jit(transformer_forward)
    logits, enc_attns, dec_self_attns, dec_enc_attns = fwd(
        params, enc_inputs, dec_inputs)
    jax.block_until_ready((logits, enc_attns, dec_self_attns, dec_enc_attns))

    assert logits.shape == (batch_size * tgt_len, tgt_vocab_size)
    assert enc_attns.shape == (n_layers, batch_size, n_heads, src_len, src_len)
    assert dec_self_attns.shape == (n_layers, batch_size, n_heads, tgt_len, tgt_len)
    assert dec_enc_attns.shape == (n_layers, batch_size, n_heads, tgt_len, src_len)

    # validate against a pure-JAX f32 reference (kernel uses bf16 MXU operands
    # and an EUP approximate reciprocal in the softmax -> loose tolerance)
    ref = jax.jit(transformer_reference)(params, enc_inputs, dec_inputs)
    for got, want in zip((logits, enc_attns, dec_self_attns, dec_enc_attns), ref):
        np.testing.assert_allclose(np.asarray(got), np.asarray(want),
                                   atol=5e-2, rtol=5e-2)

    print("KERNEL_OK")
</pallas_src>

<mosaic_0001>
module attributes {stable_mosaic.version = 11 : i64} {
  func.func @transformer_kernel(%arg0: memref<10x128xf32, #tpu.memory_space<vmem>>, %arg1: memref<10x128xf32, #tpu.memory_space<vmem>>, %arg2: memref<120x10xf32, #tpu.memory_space<vmem>>, %arg3: memref<4224x128xbf16, #tpu.memory_space<vmem>>, %arg4: memref<416x128xf32, #tpu.memory_space<vmem>>, %arg5: memref<10x128xf32, #tpu.memory_space<vmem>>, %arg6: memref<6x40x10xf32, #tpu.memory_space<vmem>>) attributes {dimension_semantics = [], scalar_prefetch = 0 : i64, scratch_operands = 0 : i64, tpu.core_type = #tpu.core_type<tc>} {
    %0 = tpu.iota {dimensions = array<i32: 0>} : vector<40x128xi32>
    %1 = tpu.iota {dimensions = array<i32: 1>} : vector<40x128xi32>
    %cst = arith.constant 0.000000e+00 : f32
    %2 = vector.broadcast %cst : f32 to vector<40x128xf32>
    %c0_i32 = arith.constant 0 : i32
    %3 = vector.broadcast %c0_i32 : i32 to vector<40x128xi32>
    %4 = arith.cmpi sge, %0, %3 : vector<40x128xi32>
    %c10_i32 = arith.constant 10 : i32
    %5 = vector.broadcast %c10_i32 : i32 to vector<40x128xi32>
    %6 = arith.cmpi slt, %0, %5 : vector<40x128xi32>
    %7 = arith.andi %4, %6 : vector<40x128xi1>
    %c0_i32_0 = arith.constant 0 : i32
    %8 = vector.broadcast %c0_i32_0 : i32 to vector<40x128xi32>
    %9 = arith.cmpi sge, %1, %8 : vector<40x128xi32>
    %c8_i32 = arith.constant 8 : i32
    %10 = vector.broadcast %c8_i32 : i32 to vector<40x128xi32>
    %11 = arith.cmpi slt, %1, %10 : vector<40x128xi32>
    %12 = arith.andi %9, %11 : vector<40x128xi1>
    %13 = arith.andi %7, %12 : vector<40x128xi1>
    %14 = arith.extui %13 : vector<40x128xi1> to vector<40x128xi32>
    %15 = arith.sitofp %14 : vector<40x128xi32> to vector<40x128xf32>
    %16 = arith.addf %2, %15 : vector<40x128xf32>
    %c10_i32_1 = arith.constant 10 : i32
    %17 = vector.broadcast %c10_i32_1 : i32 to vector<40x128xi32>
    %18 = arith.cmpi sge, %0, %17 : vector<40x128xi32>
    %c20_i32 = arith.constant 20 : i32
    %19 = vector.broadcast %c20_i32 : i32 to vector<40x128xi32>
    %20 = arith.cmpi slt, %0, %19 : vector<40x128xi32>
    %21 = arith.andi %18, %20 : vector<40x128xi1>
    %c8_i32_2 = arith.constant 8 : i32
    %22 = vector.broadcast %c8_i32_2 : i32 to vector<40x128xi32>
    %23 = arith.cmpi sge, %1, %22 : vector<40x128xi32>
    %c16_i32 = arith.constant 16 : i32
    %24 = vector.broadcast %c16_i32 : i32 to vector<40x128xi32>
    %25 = arith.cmpi slt, %1, %24 : vector<40x128xi32>
    %26 = arith.andi %23, %25 : vector<40x128xi1>
    %27 = arith.andi %21, %26 : vector<40x128xi1>
    %28 = arith.extui %27 : vector<40x128xi1> to vector<40x128xi32>
    %29 = arith.sitofp %28 : vector<40x128xi32> to vector<40x128xf32>
    %30 = arith.addf %16, %29 : vector<40x128xf32>
    %c20_i32_3 = arith.constant 20 : i32
    %31 = vector.broadcast %c20_i32_3 : i32 to vector<40x128xi32>
    %32 = arith.cmpi sge, %0, %31 : vector<40x128xi32>
    %c30_i32 = arith.constant 30 : i32
    %33 = vector.broadcast %c30_i32 : i32 to vector<40x128xi32>
    %34 = arith.cmpi slt, %0, %33 : vector<40x128xi32>
    %35 = arith.andi %32, %34 : vector<40x128xi1>
    %c16_i32_4 = arith.constant 16 : i32
    %36 = vector.broadcast %c16_i32_4 : i32 to vector<40x128xi32>
    %37 = arith.cmpi sge, %1, %36 : vector<40x128xi32>
    %c24_i32 = arith.constant 24 : i32
    %38 = vector.broadcast %c24_i32 : i32 to vector<40x128xi32>
    %39 = arith.cmpi slt, %1, %38 : vector<40x128xi32>
    %40 = arith.andi %37, %39 : vector<40x128xi1>
    %41 = arith.andi %35, %40 : vector<40x128xi1>
    %42 = arith.extui %41 : vector<40x128xi1> to vector<40x128xi32>
    %43 = arith.sitofp %42 : vector<40x128xi32> to vector<40x128xf32>
    %44 = arith.addf %30, %43 : vector<40x128xf32>
    %c30_i32_5 = arith.constant 30 : i32
    %45 = vector.broadcast %c30_i32_5 : i32 to vector<40x128xi32>
    %46 = arith.cmpi sge, %0, %45 : vector<40x128xi32>
    %c40_i32 = arith.constant 40 : i32
    %47 = vector.broadcast %c40_i32 : i32 to vector<40x128xi32>
    %48 = arith.cmpi slt, %0, %47 : vector<40x128xi32>
    %49 = arith.andi %46, %48 : vector<40x128xi1>
    %c24_i32_6 = arith.constant 24 : i32
    %50 = vector.broadcast %c24_i32_6 : i32 to vector<40x128xi32>
    %51 = arith.cmpi sge, %1, %50 : vector<40x128xi32>
    %c32_i32 = arith.constant 32 : i32
    %52 = vector.broadcast %c32_i32 : i32 to vector<40x128xi32>
    %53 = arith.cmpi slt, %1, %52 : vector<40x128xi32>
    %54 = arith.andi %51, %53 : vector<40x128xi1>
    %55 = arith.andi %49, %54 : vector<40x128xi1>
    %56 = arith.extui %55 : vector<40x128xi1> to vector<40x128xi32>
    %57 = arith.sitofp %56 : vector<40x128xi32> to vector<40x128xf32>
    %58 = arith.addf %44, %57 : vector<40x128xf32>
    %59 = tpu.iota {dimensions = array<i32: 0>} : vector<40x10xi32>
    %60 = tpu.iota {dimensions = array<i32: 1>} : vector<40x10xi32>
    %cst_7 = arith.constant 0.000000e+00 : f32
    %61 = vector.broadcast %cst_7 : f32 to vector<40x10xf32>
    %c0_i32_8 = arith.constant 0 : i32
    %62 = vector.broadcast %c0_i32_8 : i32 to vector<40x10xi32>
    %63 = arith.cmpi sge, %59, %62 : vector<40x10xi32>
    %c10_i32_9 = arith.constant 10 : i32
    %64 = vector.broadcast %c10_i32_9 : i32 to vector<40x10xi32>
    %65 = arith.cmpi slt, %59, %64 : vector<40x10xi32>
    %66 = arith.andi %63, %65 : vector<40x10xi1>
    %c0_i32_10 = arith.constant 0 : i32
    %67 = vector.broadcast %c0_i32_10 : i32 to vector<40x10xi32>
    %68 = arith.subi %59, %67 : vector<40x10xi32>
    %69 = arith.cmpi eq, %60, %68 : vector<40x10xi32>
    %70 = arith.andi %66, %69 : vector<40x10xi1>
    %71 = arith.extui %70 : vector<40x10xi1> to vector<40x10xi32>
    %72 = arith.sitofp %71 : vector<40x10xi32> to vector<40x10xf32>
    %73 = arith.addf %61, %72 : vector<40x10xf32>
    %c10_i32_11 = arith.constant 10 : i32
    %74 = vector.broadcast %c10_i32_11 : i32 to vector<40x10xi32>
    %75 = arith.cmpi sge, %59, %74 : vector<40x10xi32>
    %c20_i32_12 = arith.constant 20 : i32
    %76 = vector.broadcast %c20_i32_12 : i32 to vector<40x10xi32>
    %77 = arith.cmpi slt, %59, %76 : vector<40x10xi32>
    %78 = arith.andi %75, %77 : vector<40x10xi1>
    %c10_i32_13 = arith.constant 10 : i32
    %79 = vector.broadcast %c10_i32_13 : i32 to vector<40x10xi32>
    %80 = arith.subi %59, %79 : vector<40x10xi32>
    %81 = arith.cmpi eq, %60, %80 : vector<40x10xi32>
    %82 = arith.andi %78, %81 : vector<40x10xi1>
    %83 = arith.extui %82 : vector<40x10xi1> to vector<40x10xi32>
    %84 = arith.sitofp %83 : vector<40x10xi32> to vector<40x10xf32>
    %85 = arith.addf %73, %84 : vector<40x10xf32>
    %c20_i32_14 = arith.constant 20 : i32
    %86 = vector.broadcast %c20_i32_14 : i32 to vector<40x10xi32>
    %87 = arith.cmpi sge, %59, %86 : vector<40x10xi32>
    %c30_i32_15 = arith.constant 30 : i32
    %88 = vector.broadcast %c30_i32_15 : i32 to vector<40x10xi32>
    %89 = arith.cmpi slt, %59, %88 : vector<40x10xi32>
    %90 = arith.andi %87, %89 : vector<40x10xi1>
    %c20_i32_16 = arith.constant 20 : i32
    %91 = vector.broadcast %c20_i32_16 : i32 to vector<40x10xi32>
    %92 = arith.subi %59, %91 : vector<40x10xi32>
    %93 = arith.cmpi eq, %60, %92 : vector<40x10xi32>
    %94 = arith.andi %90, %93 : vector<40x10xi1>
    %95 = arith.extui %94 : vector<40x10xi1> to vector<40x10xi32>
    %96 = arith.sitofp %95 : vector<40x10xi32> to vector<40x10xf32>
    %97 = arith.addf %85, %96 : vector<40x10xf32>
    %c30_i32_17 = arith.constant 30 : i32
    %98 = vector.broadcast %c30_i32_17 : i32 to vector<40x10xi32>
    %99 = arith.cmpi sge, %59, %98 : vector<40x10xi32>
    %c40_i32_18 = arith.constant 40 : i32
    %100 = vector.broadcast %c40_i32_18 : i32 to vector<40x10xi32>
    %101 = arith.cmpi slt, %59, %100 : vector<40x10xi32>
    %102 = arith.andi %99, %101 : vector<40x10xi1>
    %c30_i32_19 = arith.constant 30 : i32
    %103 = vector.broadcast %c30_i32_19 : i32 to vector<40x10xi32>
    %104 = arith.subi %59, %103 : vector<40x10xi32>
    %105 = arith.cmpi eq, %60, %104 : vector<40x10xi32>
    %106 = arith.andi %102, %105 : vector<40x10xi1>
    %107 = arith.extui %106 : vector<40x10xi1> to vector<40x10xi32>
    %108 = arith.sitofp %107 : vector<40x10xi32> to vector<40x10xf32>
    %109 = arith.addf %97, %108 : vector<40x10xf32>
    %110 = arith.truncf %109 : vector<40x10xf32> to vector<40x10xbf16>
    %111 = tpu.iota {dimensions = array<i32: 0>} : vector<10x40xi32>
    %112 = tpu.iota {dimensions = array<i32: 1>} : vector<10x40xi32>
    %cst_20 = arith.constant 0.000000e+00 : f32
    %113 = vector.broadcast %cst_20 : f32 to vector<10x40xf32>
    %c0_i32_21 = arith.constant 0 : i32
    %114 = vector.broadcast %c0_i32_21 : i32 to vector<10x40xi32>
    %115 = arith.cmpi sge, %112, %114 : vector<10x40xi32>
    %c10_i32_22 = arith.constant 10 : i32
    %116 = vector.broadcast %c10_i32_22 : i32 to vector<10x40xi32>
    %117 = arith.cmpi slt, %112, %116 : vector<10x40xi32>
    %118 = arith.andi %115, %117 : vector<10x40xi1>
    %c0_i32_23 = arith.constant 0 : i32
    %119 = vector.broadcast %c0_i32_23 : i32 to vector<10x40xi32>
    %120 = arith.subi %112, %119 : vector<10x40xi32>
    %121 = arith.cmpi eq, %120, %111 : vector<10x40xi32>
    %122 = arith.andi %118, %121 : vector<10x40xi1>
    %123 = arith.extui %122 : vector<10x40xi1> to vector<10x40xi32>
    %124 = arith.sitofp %123 : vector<10x40xi32> to vector<10x40xf32>
    %125 = arith.addf %113, %124 : vector<10x40xf32>
    %c10_i32_24 = arith.constant 10 : i32
    %126 = vector.broadcast %c10_i32_24 : i32 to vector<10x40xi32>
    %127 = arith.cmpi sge, %112, %126 : vector<10x40xi32>
    %c20_i32_25 = arith.constant 20 : i32
    %128 = vector.broadcast %c20_i32_25 : i32 to vector<10x40xi32>
    %129 = arith.cmpi slt, %112, %128 : vector<10x40xi32>
    %130 = arith.andi %127, %129 : vector<10x40xi1>
    %c10_i32_26 = arith.constant 10 : i32
    %131 = vector.broadcast %c10_i32_26 : i32 to vector<10x40xi32>
    %132 = arith.subi %112, %131 : vector<10x40xi32>
    %133 = arith.cmpi eq, %132, %111 : vector<10x40xi32>
    %134 = arith.andi %130, %133 : vector<10x40xi1>
    %135 = arith.extui %134 : vector<10x40xi1> to vector<10x40xi32>
    %136 = arith.sitofp %135 : vector<10x40xi32> to vector<10x40xf32>
    %137 = arith.addf %125, %136 : vector<10x40xf32>
    %c20_i32_27 = arith.constant 20 : i32
    %138 = vector.broadcast %c20_i32_27 : i32 to vector<10x40xi32>
    %139 = arith.cmpi sge, %112, %138 : vector<10x40xi32>
    %c30_i32_28 = arith.constant 30 : i32
    %140 = vector.broadcast %c30_i32_28 : i32 to vector<10x40xi32>
    %141 = arith.cmpi slt, %112, %140 : vector<10x40xi32>
    %142 = arith.andi %139, %141 : vector<10x40xi1>
    %c20_i32_29 = arith.constant 20 : i32
    %143 = vector.broadcast %c20_i32_29 : i32 to vector<10x40xi32>
    %144 = arith.subi %112, %143 : vector<10x40xi32>
    %145 = arith.cmpi eq, %144, %111 : vector<10x40xi32>
    %146 = arith.andi %142, %145 : vector<10x40xi1>
    %147 = arith.extui %146 : vector<10x40xi1> to vector<10x40xi32>
    %148 = arith.sitofp %147 : vector<10x40xi32> to vector<10x40xf32>
    %149 = arith.addf %137, %148 : vector<10x40xf32>
    %c30_i32_30 = arith.constant 30 : i32
    %150 = vector.broadcast %c30_i32_30 : i32 to vector<10x40xi32>
    %151 = arith.cmpi sge, %112, %150 : vector<10x40xi32>
    %c40_i32_31 = arith.constant 40 : i32
    %152 = vector.broadcast %c40_i32_31 : i32 to vector<10x40xi32>
    %153 = arith.cmpi slt, %112, %152 : vector<10x40xi32>
    %154 = arith.andi %151, %153 : vector<10x40xi1>
    %c30_i32_32 = arith.constant 30 : i32
    %155 = vector.broadcast %c30_i32_32 : i32 to vector<10x40xi32>
    %156 = arith.subi %112, %155 : vector<10x40xi32>
    %157 = arith.cmpi eq, %156, %111 : vector<10x40xi32>
    %158 = arith.andi %154, %157 : vector<10x40xi1>
    %159 = arith.extui %158 : vector<10x40xi1> to vector<10x40xi32>
    %160 = arith.sitofp %159 : vector<10x40xi32> to vector<10x40xf32>
    %161 = arith.addf %149, %160 : vector<10x40xf32>
    %162 = arith.truncf %161 : vector<10x40xf32> to vector<10x40xbf16>
    %163 = tpu.iota {dimensions = array<i32: 1>} : vector<1x128xi32>
    %c32_i32_33 = arith.constant 32 : i32
    %164 = vector.broadcast %c32_i32_33 : i32 to vector<1x128xi32>
    %165 = arith.cmpi slt, %163, %164 : vector<1x128xi32>
    %166 = arith.extui %165 : vector<1x128xi1> to vector<1x128xi32>
    %167 = arith.sitofp %166 : vector<1x128xi32> to vector<1x128xf32>
    %c0 = arith.constant 0 : index
    %c0_34 = arith.constant 0 : index
    %168 = vector.load %arg2[%c0, %c0_34] : memref<120x10xf32, #tpu.memory_space<vmem>>, vector<40x10xf32>
    %169 = vector.shape_cast %168 : vector<40x10xf32> to vector<40x10xf32>
    %c40 = arith.constant 40 : index
    %c0_35 = arith.constant 0 : index
    %170 = vector.load %arg2[%c40, %c0_35] : memref<120x10xf32, #tpu.memory_space<vmem>>, vector<40x10xf32>
    %171 = vector.shape_cast %170 : vector<40x10xf32> to vector<40x10xf32>
    %c80 = arith.constant 80 : index
    %c0_36 = arith.constant 0 : index
    %172 = vector.load %arg2[%c80, %c0_36] : memref<120x10xf32, #tpu.memory_space<vmem>>, vector<40x10xf32>
    %173 = vector.shape_cast %172 : vector<40x10xf32> to vector<40x10xf32>
    %c0_37 = arith.constant 0 : index
    %c0_38 = arith.constant 0 : index
    %174 = vector.load %arg0[%c0_37, %c0_38] : memref<10x128xf32, #tpu.memory_space<vmem>>, vector<10x128xf32>
    %c0_39 = arith.constant 0 : index
    %c0_40 = arith.constant 0 : index
    %175 = vector.load %arg3[%c0_39, %c0_40] : memref<4224x128xbf16, #tpu.memory_space<vmem>>, vector<128x128xbf16>
    %176 = arith.truncf %174 : vector<10x128xf32> to vector<10x128xbf16>
    %cst_41 = arith.constant dense<0.000000e+00> : vector<10x128xf32>
    %177 = tpu.matmul %176, %175, %cst_41 {dimension_numbers = #tpu.dot_dimension_numbers<[1], [0], [0], [1], [0, 0, 1, 1], [], []>} : vector<10x128xbf16>, vector<128x128xbf16>, vector<10x128xf32> -> vector<10x128xf32>
    %c0_42 = arith.constant 0 : index
    %c0_43 = arith.constant 0 : index
    %178 = vector.load %arg4[%c0_42, %c0_43] : memref<416x128xf32, #tpu.memory_space<vmem>>, vector<1x128xf32>
    %179 = vector.broadcast %178 : vector<1x128xf32> to vector<10x128xf32>
    %180 = arith.addf %177, %179 : vector<10x128xf32>
    %c128 = arith.constant 128 : index
    %c0_44 = arith.constant 0 : index
    %181 = vector.load %arg3[%c128, %c0_44] : memref<4224x128xbf16, #tpu.memory_space<vmem>>, vector<128x128xbf16>
    %182 = arith.truncf %174 : vector<10x128xf32> to vector<10x128xbf16>
    %cst_45 = arith.constant dense<0.000000e+00> : vector<10x128xf32>
    %183 = tpu.matmul %182, %181, %cst_45 {dimension_numbers = #tpu.dot_dimension_numbers<[1], [0], [0], [1], [0, 0, 1, 1], [], []>} : vector<10x128xbf16>, vector<128x128xbf16>, vector<10x128xf32> -> vector<10x128xf32>
    %c8 = arith.constant 8 : index
    %c0_46 = arith.constant 0 : index
    %184 = vector.load %arg4[%c8, %c0_46] : memref<416x128xf32, #tpu.memory_space<vmem>>, vector<1x128xf32>
    %185 = vector.broadcast %184 : vector<1x128xf32> to vector<10x128xf32>
    %186 = arith.addf %183, %185 : vector<10x128xf32>
    %c256 = arith.constant 256 : index
    %c0_47 = arith.constant 0 : index
    %187 = vector.load %arg3[%c256, %c0_47] : memref<4224x128xbf16, #tpu.memory_space<vmem>>, vector<128x128xbf16>
    %188 = arith.truncf %174 : vector<10x128xf32> to vector<10x128xbf16>
    %cst_48 = arith.constant dense<0.000000e+00> : vector<10x128xf32>
    %189 = tpu.matmul %188, %187, %cst_48 {dimension_numbers = #tpu.dot_dimension_numbers<[1], [0], [0], [1], [0, 0, 1, 1], [], []>} : vector<10x128xbf16>, vector<128x128xbf16>, vector<10x128xf32> -> vector<10x128xf32>
    %c16 = arith.constant 16 : index
    %c0_49 = arith.constant 0 : index
    %190 = vector.load %arg4[%c16, %c0_49] : memref<416x128xf32, #tpu.memory_space<vmem>>, vector<1x128xf32>
    %191 = vector.broadcast %190 : vector<1x128xf32> to vector<10x128xf32>
    %192 = arith.addf %189, %191 : vector<10x128xf32>
    %193 = arith.truncf %180 : vector<10x128xf32> to vector<10x128xbf16>
    %cst_50 = arith.constant dense<0.000000e+00> : vector<40x128xf32>
    %194 = tpu.matmul %110, %193, %cst_50 {dimension_numbers = #tpu.dot_dimension_numbers<[1], [0], [0], [1], [0, 0, 1, 1], [], []>} : vector<40x10xbf16>, vector<10x128xbf16>, vector<40x128xf32> -> vector<40x128xf32>
    %195 = arith.mulf %194, %58 : vector<40x128xf32>
    %196 = arith.truncf %195 : vector<40x128xf32> to vector<40x128xbf16>
    %197 = arith.truncf %186 : vector<10x128xf32> to vector<10x128xbf16>
    %cst_51 = arith.constant dense<0.000000e+00> : vector<40x10xf32>
    %198 = tpu.matmul %196, %197, %cst_51 {dimension_numbers = #tpu.dot_dimension_numbers<[1], [1], [0], [0], [0, 0, 1, 0], [], []>} : vector<40x128xbf16>, vector<10x128xbf16>, vector<40x10xf32> -> vector<40x10xf32>
    %cst_52 = arith.constant 0.353553385 : f32
    %199 = vector.broadcast %cst_52 : f32 to vector<40x10xf32>
    %200 = arith.mulf %198, %199 : vector<40x10xf32>
    %201 = arith.addf %200, %169 : vector<40x10xf32>
    %cst_53 = arith.constant dense<0xFF800000> : vector<40xf32>
    %202 = vector.multi_reduction <maximumf>, %201, %cst_53 [1] : vector<40x10xf32> to vector<40xf32>
    %203 = vector.shape_cast %202 : vector<40xf32> to vector<40x1xf32>
    %204 = vector.broadcast %203 : vector<40x1xf32> to vector<40x10xf32>
    %205 = arith.subf %201, %204 : vector<40x10xf32>
    %206 = math.exp %205 : vector<40x10xf32>
    %cst_54 = arith.constant dense<0.000000e+00> : vector<40xf32>
    %207 = vector.multi_reduction <add>, %206, %cst_54 [1] : vector<40x10xf32> to vector<40xf32>
    %208 = vector.shape_cast %207 : vector<40xf32> to vector<40x1xf32>
    %209 = tpu.reciprocal %208 {approx = true} : vector<40x1xf32> -> vector<40x1xf32>
    %210 = vector.broadcast %209 : vector<40x1xf32> to vector<40x10xf32>
    %211 = arith.mulf %206, %210 : vector<40x10xf32>
    %c0_55 = arith.constant 0 : index
    %c0_56 = arith.constant 0 : index
    %c0_57 = arith.constant 0 : index
    %212 = vector.load %arg6[%c0_55, %c0_56, %c0_57] : memref<6x40x10xf32, #tpu.memory_space<vmem>>, vector<1x40x10xf32>
    %213 = vector.shape_cast %212 : vector<1x40x10xf32> to vector<40x10xf32>
    %214 = vector.shape_cast %211 : vector<40x10xf32> to vector<1x40x10xf32>
    tpu.vector_store %arg6[%c0_55, %c0_56, %c0_57], %214 {strides = array<i32>} : memref<6x40x10xf32, #tpu.memory_space<vmem>>, vector<1x40x10xf32>,
    %215 = arith.truncf %211 : vector<40x10xf32> to vector<40x10xbf16>
    %216 = arith.truncf %192 : vector<10x128xf32> to vector<10x128xbf16>
    %cst_58 = arith.constant dense<0.000000e+00> : vector<40x128xf32>
    %217 = tpu.matmul %215, %216, %cst_58 {dimension_numbers = #tpu.dot_dimension_numbers<[1], [0], [0], [1], [0, 0, 1, 1], [], []>} : vector<40x10xbf16>, vector<10x128xbf16>, vector<40x128xf32> -> vector<40x128xf32>
    %218 = arith.mulf %217, %58 : vector<40x128xf32>
    %219 = arith.truncf %218 : vector<40x128xf32> to vector<40x128xbf16>
    %cst_59 = arith.constant dense<0.000000e+00> : vector<10x128xf32>
    %220 = tpu.matmul %162, %219, %cst_59 {dimension_numbers = #tpu.dot_dimension_numbers<[1], [0], [0], [1], [0, 0, 1, 1], [], []>} : vector<10x40xbf16>, vector<40x128xbf16>, vector<10x128xf32> -> vector<10x128xf32>
    %c384 = arith.constant 384 : index
    %c0_60 = arith.constant 0 : index
    %221 = vector.load %arg3[%c384, %c0_60] : memref<4224x128xbf16, #tpu.memory_space<vmem>>, vector<128x128xbf16>
    %222 = arith.truncf %220 : vector<10x128xf32> to vector<10x128xbf16>
    %cst_61 = arith.constant dense<0.000000e+00> : vector<10x128xf32>
    %223 = tpu.matmul %222, %221, %cst_61 {dimension_numbers = #tpu.dot_dimension_numbers<[1], [0], [0], [1], [0, 0, 1, 1], [], []>} : vector<10x128xbf16>, vector<128x128xbf16>, vector<10x128xf32> -> vector<10x128xf32>
    %c24 = arith.constant 24 : index
    %c0_62 = arith.constant 0 : index
    %224 = vector.load %arg4[%c24, %c0_62] : memref<416x128xf32, #tpu.memory_space<vmem>>, vector<1x128xf32>
    %225 = vector.broadcast %224 : vector<1x128xf32> to vector<10x128xf32>
    %226 = arith.addf %223, %225 : vector<10x128xf32>
    %227 = arith.addf %226, %174 : vector<10x128xf32>
    %c32 = arith.constant 32 : index
    %c0_63 = arith.constant 0 : index
    %228 = vector.load %arg4[%c32, %c0_63] : memref<416x128xf32, #tpu.memory_space<vmem>>, vector<1x128xf32>
    %c40_64 = arith.constant 40 : index
    %c0_65 = arith.constant 0 : index
    %229 = vector.load %arg4[%c40_64, %c0_65] : memref<416x128xf32, #tpu.memory_space<vmem>>, vector<1x128xf32>
    %cst_66 = arith.constant dense<0.000000e+00> : vector<10xf32>
    %230 = vector.multi_reduction <add>, %227, %cst_66 [1] : vector<10x128xf32> to vector<10xf32>
    %231 = vector.shape_cast %230 : vector<10xf32> to vector<10x1xf32>
    %cst_67 = arith.constant 3.125000e-02 : f32
    %232 = vector.broadcast %cst_67 : f32 to vector<10x1xf32>
    %233 = arith.mulf %231, %232 : vector<10x1xf32>
    %234 = vector.broadcast %233 : vector<10x1xf32> to vector<10x128xf32>
    %235 = arith.subf %227, %234 : vector<10x128xf32>
    %236 = vector.broadcast %167 : vector<1x128xf32> to vector<10x128xf32>
    %237 = arith.mulf %235, %236 : vector<10x128xf32>
    %238 = arith.mulf %237, %237 : vector<10x128xf32>
    %cst_68 = arith.constant dense<0.000000e+00> : vector<10xf32>
    %239 = vector.multi_reduction <add>, %238, %cst_68 [1] : vector<10x128xf32> to vector<10xf32>
    %240 = vector.shape_cast %239 : vector<10xf32> to vector<10x1xf32>
    %cst_69 = arith.constant 3.125000e-02 : f32
    %241 = vector.broadcast %cst_69 : f32 to vector<10x1xf32>
    %242 = arith.mulf %240, %241 : vector<10x1xf32>
    %cst_70 = arith.constant 9.99999974E-6 : f32
    %243 = vector.broadcast %cst_70 : f32 to vector<10x1xf32>
    %244 = arith.addf %242, %243 : vector<10x1xf32>
    %245 = math.rsqrt %244 : vector<10x1xf32>
    %246 = vector.broadcast %245 : vector<10x1xf32> to vector<10x128xf32>
    %247 = arith.mulf %237, %246 : vector<10x128xf32>
    %248 = vector.broadcast %228 : vector<1x128xf32> to vector<10x128xf32>
    %249 = arith.mulf %247, %248 : vector<10x128xf32>
    %250 = vector.broadcast %229 : vector<1x128xf32> to vector<10x128xf32>
    %251 = arith.addf %249, %250 : vector<10x128xf32>
    %c512 = arith.constant 512 : index
    %c0_71 = arith.constant 0 : index
    %252 = vector.load %arg3[%c512, %c0_71] : memref<4224x128xbf16, #tpu.memory_space<vmem>>, vector<128x128xbf16>
    %253 = arith.truncf %251 : vector<10x128xf32> to vector<10x128xbf16>
    %cst_72 = arith.constant dense<0.000000e+00> : vector<10x128xf32>
    %254 = tpu.matmul %253, %252, %cst_72 {dimension_numbers = #tpu.dot_dimension_numbers<[1], [0], [0], [1], [0, 0, 1, 1], [], []>} : vector<10x128xbf16>, vector<128x128xbf16>, vector<10x128xf32> -> vector<10x128xf32>
    %c48 = arith.constant 48 : index
    %c0_73 = arith.constant 0 : index
    %255 = vector.load %arg4[%c48, %c0_73] : memref<416x128xf32, #tpu.memory_space<vmem>>, vector<1x128xf32>
    %256 = vector.broadcast %255 : vector<1x128xf32> to vector<10x128xf32>
    %257 = arith.addf %254, %256 : vector<10x128xf32>
    %cst_74 = arith.constant 0.000000e+00 : f32
    %258 = vector.broadcast %cst_74 : f32 to vector<10x128xf32>
    %259 = arith.maximumf %257, %258 : vector<10x128xf32>
    %c640 = arith.constant 640 : index
    %c0_75 = arith.constant 0 : index
    %260 = vector.load %arg3[%c640, %c0_75] : memref<4224x128xbf16, #tpu.memory_space<vmem>>, vector<128x128xbf16>
    %261 = arith.truncf %259 : vector<10x128xf32> to vector<10x128xbf16>
    %cst_76 = arith.constant dense<0.000000e+00> : vector<10x128xf32>
    %262 = tpu.matmul %261, %260, %cst_76 {dimension_numbers = #tpu.dot_dimension_numbers<[1], [0], [0], [1], [0, 0, 1, 1], [], []>} : vector<10x128xbf16>, vector<128x128xbf16>, vector<10x128xf32> -> vector<10x128xf32>
    %c56 = arith.constant 56 : index
    %c0_77 = arith.constant 0 : index
    %263 = vector.load %arg4[%c56, %c0_77] : memref<416x128xf32, #tpu.memory_space<vmem>>, vector<1x128xf32>
    %264 = vector.broadcast %263 : vector<1x128xf32> to vector<10x128xf32>
    %265 = arith.addf %262, %264 : vector<10x128xf32>
    %266 = arith.addf %265, %251 : vector<10x128xf32>
    %c64 = arith.constant 64 : index
    %c0_78 = arith.constant 0 : index
    %267 = vector.load %arg4[%c64, %c0_78] : memref<416x128xf32, #tpu.memory_space<vmem>>, vector<1x128xf32>
    %c72 = arith.constant 72 : index
    %c0_79 = arith.constant 0 : index
    %268 = vector.load %arg4[%c72, %c0_79] : memref<416x128xf32, #tpu.memory_space<vmem>>, vector<1x128xf32>
    %cst_80 = arith.constant dense<0.000000e+00> : vector<10xf32>
    %269 = vector.multi_reduction <add>, %266, %cst_80 [1] : vector<10x128xf32> to vector<10xf32>
    %270 = vector.shape_cast %269 : vector<10xf32> to vector<10x1xf32>
    %cst_81 = arith.constant 3.125000e-02 : f32
    %271 = vector.broadcast %cst_81 : f32 to vector<10x1xf32>
    %272 = arith.mulf %270, %271 : vector<10x1xf32>
    %273 = vector.broadcast %272 : vector<10x1xf32> to vector<10x128xf32>
    %274 = arith.subf %266, %273 : vector<10x128xf32>
    %275 = vector.broadcast %167 : vector<1x128xf32> to vector<10x128xf32>
    %276 = arith.mulf %274, %275 : vector<10x128xf32>
    %277 = arith.mulf %276, %276 : vector<10x128xf32>
    %cst_82 = arith.constant dense<0.000000e+00> : vector<10xf32>
    %278 = vector.multi_reduction <add>, %277, %cst_82 [1] : vector<10x128xf32> to vector<10xf32>
    %279 = vector.shape_cast %278 : vector<10xf32> to vector<10x1xf32>
    %cst_83 = arith.constant 3.125000e-02 : f32
    %280 = vector.broadcast %cst_83 : f32 to vector<10x1xf32>
    %281 = arith.mulf %279, %280 : vector<10x1xf32>
    %cst_84 = arith.constant 9.99999974E-6 : f32
    %282 = vector.broadcast %cst_84 : f32 to vector<10x1xf32>
    %283 = arith.addf %281, %282 : vector<10x1xf32>
    %284 = math.rsqrt %283 : vector<10x1xf32>
    %285 = vector.broadcast %284 : vector<10x1xf32> to vector<10x128xf32>
    %286 = arith.mulf %276, %285 : vector<10x128xf32>
    %287 = vector.broadcast %267 : vector<1x128xf32> to vector<10x128xf32>
    %288 = arith.mulf %286, %287 : vector<10x128xf32>
    %289 = vector.broadcast %268 : vector<1x128xf32> to vector<10x128xf32>
    %290 = arith.addf %288, %289 : vector<10x128xf32>
    %c768 = arith.constant 768 : index
    %c0_85 = arith.constant 0 : index
    %291 = vector.load %arg3[%c768, %c0_85] : memref<4224x128xbf16, #tpu.memory_space<vmem>>, vector<128x128xbf16>
    %292 = arith.truncf %290 : vector<10x128xf32> to vector<10x128xbf16>
    %cst_86 = arith.constant dense<0.000000e+00> : vector<10x128xf32>
    %293 = tpu.matmul %292, %291, %cst_86 {dimension_numbers = #tpu.dot_dimension_numbers<[1], [0], [0], [1], [0, 0, 1, 1], [], []>} : vector<10x128xbf16>, vector<128x128xbf16>, vector<10x128xf32> -> vector<10x128xf32>
    %c80_87 = arith.constant 80 : index
    %c0_88 = arith.constant 0 : index
    %294 = vector.load %arg4[%c80_87, %c0_88] : memref<416x128xf32, #tpu.memory_space<vmem>>, vector<1x128xf32>
    %295 = vector.broadcast %294 : vector<1x128xf32> to vector<10x128xf32>
    %296 = arith.addf %293, %295 : vector<10x128xf32>
    %c896 = arith.constant 896 : index
    %c0_89 = arith.constant 0 : index
    %297 = vector.load %arg3[%c896, %c0_89] : memref<4224x128xbf16, #tpu.memory_space<vmem>>, vector<128x128xbf16>
    %298 = arith.truncf %290 : vector<10x128xf32> to vector<10x128xbf16>
    %cst_90 = arith.constant dense<0.000000e+00> : vector<10x128xf32>
    %299 = tpu.matmul %298, %297, %cst_90 {dimension_numbers = #tpu.dot_dimension_numbers<[1], [0], [0], [1], [0, 0, 1, 1], [], []>} : vector<10x128xbf16>, vector<128x128xbf16>, vector<10x128xf32> -> vector<10x128xf32>
    %c88 = arith.constant 88 : index
    %c0_91 = arith.constant 0 : index
    %300 = vector.load %arg4[%c88, %c0_91] : memref<416x128xf32, #tpu.memory_space<vmem>>, vector<1x128xf32>
    %301 = vector.broadcast %300 : vector<1x128xf32> to vector<10x128xf32>
    %302 = arith.addf %299, %301 : vector<10x128xf32>
    %c1024 = arith.constant 1024 : index
    %c0_92 = arith.constant 0 : index
    %303 = vector.load %arg3[%c1024, %c0_92] : memref<4224x128xbf16, #tpu.memory_space<vmem>>, vector<128x128xbf16>
    %304 = arith.truncf %290 : vector<10x128xf32> to vector<10x128xbf16>
    %cst_93 = arith.constant dense<0.000000e+00> : vector<10x128xf32>
    %305 = tpu.matmul %304, %303, %cst_93 {dimension_numbers = #tpu.dot_dimension_numbers<[1], [0], [0], [1], [0, 0, 1, 1], [], []>} : vector<10x128xbf16>, vector<128x128xbf16>, vector<10x128xf32> -> vector<10x128xf32>
    %c96 = arith.constant 96 : index
    %c0_94 = arith.constant 0 : index
    %306 = vector.load %arg4[%c96, %c0_94] : memref<416x128xf32, #tpu.memory_space<vmem>>, vector<1x128xf32>
    %307 = vector.broadcast %306 : vector<1x128xf32> to vector<10x128xf32>
    %308 = arith.addf %305, %307 : vector<10x128xf32>
    %309 = arith.truncf %296 : vector<10x128xf32> to vector<10x128xbf16>
    %cst_95 = arith.constant dense<0.000000e+00> : vector<40x128xf32>
    %310 = tpu.matmul %110, %309, %cst_95 {dimension_numbers = #tpu.dot_dimension_numbers<[1], [0], [0], [1], [0, 0, 1, 1], [], []>} : vector<40x10xbf16>, vector<10x128xbf16>, vector<40x128xf32> -> vector<40x128xf32>
    %311 = arith.mulf %310, %58 : vector<40x128xf32>
    %312 = arith.truncf %311 : vector<40x128xf32> to vector<40x128xbf16>
    %313 = arith.truncf %302 : vector<10x128xf32> to vector<10x128xbf16>
    %cst_96 = arith.constant dense<0.000000e+00> : vector<40x10xf32>
    %314 = tpu.matmul %312, %313, %cst_96 {dimension_numbers = #tpu.dot_dimension_numbers<[1], [1], [0], [0], [0, 0, 1, 0], [], []>} : vector<40x128xbf16>, vector<10x128xbf16>, vector<40x10xf32> -> vector<40x10xf32>
    %cst_97 = arith.constant 0.353553385 : f32
    %315 = vector.broadcast %cst_97 : f32 to vector<40x10xf32>
    %316 = arith.mulf %314, %315 : vector<40x10xf32>
    %317 = arith.addf %316, %169 : vector<40x10xf32>
    %cst_98 = arith.constant dense<0xFF800000> : vector<40xf32>
    %318 = vector.multi_reduction <maximumf>, %317, %cst_98 [1] : vector<40x10xf32> to vector<40xf32>
    %319 = vector.shape_cast %318 : vector<40xf32> to vector<40x1xf32>
    %320 = vector.broadcast %319 : vector<40x1xf32> to vector<40x10xf32>
    %321 = arith.subf %317, %320 : vector<40x10xf32>
    %322 = math.exp %321 : vector<40x10xf32>
    %cst_99 = arith.constant dense<0.000000e+00> : vector<40xf32>
    %323 = vector.multi_reduction <add>, %322, %cst_99 [1] : vector<40x10xf32> to vector<40xf32>
    %324 = vector.shape_cast %323 : vector<40xf32> to vector<40x1xf32>
    %325 = tpu.reciprocal %324 {approx = true} : vector<40x1xf32> -> vector<40x1xf32>
    %326 = vector.broadcast %325 : vector<40x1xf32> to vector<40x10xf32>
    %327 = arith.mulf %322, %326 : vector<40x10xf32>
    %c1 = arith.constant 1 : index
    %c0_100 = arith.constant 0 : index
    %c0_101 = arith.constant 0 : index
    %328 = vector.load %arg6[%c1, %c0_100, %c0_101] : memref<6x40x10xf32, #tpu.memory_space<vmem>>, vector<1x40x10xf32>
    %329 = vector.shape_cast %328 : vector<1x40x10xf32> to vector<40x10xf32>
    %330 = vector.shape_cast %327 : vector<40x10xf32> to vector<1x40x10xf32>
    tpu.vector_store %arg6[%c1, %c0_100, %c0_101], %330 {strides = array<i32>} : memref<6x40x10xf32, #tpu.memory_space<vmem>>, vector<1x40x10xf32>,
    %331 = arith.truncf %327 : vector<40x10xf32> to vector<40x10xbf16>
    %332 = arith.truncf %308 : vector<10x128xf32> to vector<10x128xbf16>
    %cst_102 = arith.constant dense<0.000000e+00> : vector<40x128xf32>
    %333 = tpu.matmul %331, %332, %cst_102 {dimension_numbers = #tpu.dot_dimension_numbers<[1], [0], [0], [1], [0, 0, 1, 1], [], []>} : vector<40x10xbf16>, vector<10x128xbf16>, vector<40x128xf32> -> vector<40x128xf32>
    %334 = arith.mulf %333, %58 : vector<40x128xf32>
    %335 = arith.truncf %334 : vector<40x128xf32> to vector<40x128xbf16>
    %cst_103 = arith.constant dense<0.000000e+00> : vector<10x128xf32>
    %336 = tpu.matmul %162, %335, %cst_103 {dimension_numbers = #tpu.dot_dimension_numbers<[1], [0], [0], [1], [0, 0, 1, 1], [], []>} : vector<10x40xbf16>, vector<40x128xbf16>, vector<10x128xf32> -> vector<10x128xf32>
    %c1152 = arith.constant 1152 : index
    %c0_104 = arith.constant 0 : index
    %337 = vector.load %arg3[%c1152, %c0_104] : memref<4224x128xbf16, #tpu.memory_space<vmem>>, vector<128x128xbf16>
    %338 = arith.truncf %336 : vector<10x128xf32> to vector<10x128xbf16>
    %cst_105 = arith.constant dense<0.000000e+00> : vector<10x128xf32>
    %339 = tpu.matmul %338, %337, %cst_105 {dimension_numbers = #tpu.dot_dimension_numbers<[1], [0], [0], [1], [0, 0, 1, 1], [], []>} : vector<10x128xbf16>, vector<128x128xbf16>, vector<10x128xf32> -> vector<10x128xf32>
    %c104 = arith.constant 104 : index
    %c0_106 = arith.constant 0 : index
    %340 = vector.load %arg4[%c104, %c0_106] : memref<416x128xf32, #tpu.memory_space<vmem>>, vector<1x128xf32>
    %341 = vector.broadcast %340 : vector<1x128xf32> to vector<10x128xf32>
    %342 = arith.addf %339, %341 : vector<10x128xf32>
    %343 = arith.addf %342, %290 : vector<10x128xf32>
    %c112 = arith.constant 112 : index
    %c0_107 = arith.constant 0 : index
    %344 = vector.load %arg4[%c112, %c0_107] : memref<416x128xf32, #tpu.memory_space<vmem>>, vector<1x128xf32>
    %c120 = arith.constant 120 : index
    %c0_108 = arith.constant 0 : index
    %345 = vector.load %arg4[%c120, %c0_108] : memref<416x128xf32, #tpu.memory_space<vmem>>, vector<1x128xf32>
    %cst_109 = arith.constant dense<0.000000e+00> : vector<10xf32>
    %346 = vector.multi_reduction <add>, %343, %cst_109 [1] : vector<10x128xf32> to vector<10xf32>
    %347 = vector.shape_cast %346 : vector<10xf32> to vector<10x1xf32>
    %cst_110 = arith.constant 3.125000e-02 : f32
    %348 = vector.broadcast %cst_110 : f32 to vector<10x1xf32>
    %349 = arith.mulf %347, %348 : vector<10x1xf32>
    %350 = vector.broadcast %349 : vector<10x1xf32> to vector<10x128xf32>
    %351 = arith.subf %343, %350 : vector<10x128xf32>
    %352 = vector.broadcast %167 : vector<1x128xf32> to vector<10x128xf32>
    %353 = arith.mulf %351, %352 : vector<10x128xf32>
    %354 = arith.mulf %353, %353 : vector<10x128xf32>
    %cst_111 = arith.constant dense<0.000000e+00> : vector<10xf32>
    %355 = vector.multi_reduction <add>, %354, %cst_111 [1] : vector<10x128xf32> to vector<10xf32>
    %356 = vector.shape_cast %355 : vector<10xf32> to vector<10x1xf32>
    %cst_112 = arith.constant 3.125000e-02 : f32
    %357 = vector.broadcast %cst_112 : f32 to vector<10x1xf32>
    %358 = arith.mulf %356, %357 : vector<10x1xf32>
    %cst_113 = arith.constant 9.99999974E-6 : f32
    %359 = vector.broadcast %cst_113 : f32 to vector<10x1xf32>
    %360 = arith.addf %358, %359 : vector<10x1xf32>
    %361 = math.rsqrt %360 : vector<10x1xf32>
    %362 = vector.broadcast %361 : vector<10x1xf32> to vector<10x128xf32>
    %363 = arith.mulf %353, %362 : vector<10x128xf32>
    %364 = vector.broadcast %344 : vector<1x128xf32> to vector<10x128xf32>
    %365 = arith.mulf %363, %364 : vector<10x128xf32>
    %366 = vector.broadcast %345 : vector<1x128xf32> to vector<10x128xf32>
    %367 = arith.addf %365, %366 : vector<10x128xf32>
    %c1280 = arith.constant 1280 : index
    %c0_114 = arith.constant 0 : index
    %368 = vector.load %arg3[%c1280, %c0_114] : memref<4224x128xbf16, #tpu.memory_space<vmem>>, vector<128x128xbf16>
    %369 = arith.truncf %367 : vector<10x128xf32> to vector<10x128xbf16>
    %cst_115 = arith.constant dense<0.000000e+00> : vector<10x128xf32>
    %370 = tpu.matmul %369, %368, %cst_115 {dimension_numbers = #tpu.dot_dimension_numbers<[1], [0], [0], [1], [0, 0, 1, 1], [], []>} : vector<10x128xbf16>, vector<128x128xbf16>, vector<10x128xf32> -> vector<10x128xf32>
    %c128_116 = arith.constant 128 : index
    %c0_117 = arith.constant 0 : index
    %371 = vector.load %arg4[%c128_116, %c0_117] : memref<416x128xf32, #tpu.memory_space<vmem>>, vector<1x128xf32>
    %372 = vector.broadcast %371 : vector<1x128xf32> to vector<10x128xf32>
    %373 = arith.addf %370, %372 : vector<10x128xf32>
    %cst_118 = arith.constant 0.000000e+00 : f32
    %374 = vector.broadcast %cst_118 : f32 to vector<10x128xf32>
    %375 = arith.maximumf %373, %374 : vector<10x128xf32>
    %c1408 = arith.constant 1408 : index
    %c0_119 = arith.constant 0 : index
    %376 = vector.load %arg3[%c1408, %c0_119] : memref<4224x128xbf16, #tpu.memory_space<vmem>>, vector<128x128xbf16>
    %377 = arith.truncf %375 : vector<10x128xf32> to vector<10x128xbf16>
    %cst_120 = arith.constant dense<0.000000e+00> : vector<10x128xf32>
    %378 = tpu.matmul %377, %376, %cst_120 {dimension_numbers = #tpu.dot_dimension_numbers<[1], [0], [0], [1], [0, 0, 1, 1], [], []>} : vector<10x128xbf16>, vector<128x128xbf16>, vector<10x128xf32> -> vector<10x128xf32>
    %c136 = arith.constant 136 : index
    %c0_121 = arith.constant 0 : index
    %379 = vector.load %arg4[%c136, %c0_121] : memref<416x128xf32, #tpu.memory_space<vmem>>, vector<1x128xf32>
    %380 = vector.broadcast %379 : vector<1x128xf32> to vector<10x128xf32>
    %381 = arith.addf %378, %380 : vector<10x128xf32>
    %382 = arith.addf %381, %367 : vector<10x128xf32>
    %c144 = arith.constant 144 : index
    %c0_122 = arith.constant 0 : index
    %383 = vector.load %arg4[%c144, %c0_122] : memref<416x128xf32, #tpu.memory_space<vmem>>, vector<1x128xf32>
    %c152 = arith.constant 152 : index
    %c0_123 = arith.constant 0 : index
    %384 = vector.load %arg4[%c152, %c0_123] : memref<416x128xf32, #tpu.memory_space<vmem>>, vector<1x128xf32>
    %cst_124 = arith.constant dense<0.000000e+00> : vector<10xf32>
    %385 = vector.multi_reduction <add>, %382, %cst_124 [1] : vector<10x128xf32> to vector<10xf32>
    %386 = vector.shape_cast %385 : vector<10xf32> to vector<10x1xf32>
    %cst_125 = arith.constant 3.125000e-02 : f32
    %387 = vector.broadcast %cst_125 : f32 to vector<10x1xf32>
    %388 = arith.mulf %386, %387 : vector<10x1xf32>
    %389 = vector.broadcast %388 : vector<10x1xf32> to vector<10x128xf32>
    %390 = arith.subf %382, %389 : vector<10x128xf32>
    %391 = vector.broadcast %167 : vector<1x128xf32> to vector<10x128xf32>
    %392 = arith.mulf %390, %391 : vector<10x128xf32>
    %393 = arith.mulf %392, %392 : vector<10x128xf32>
    %cst_126 = arith.constant dense<0.000000e+00> : vector<10xf32>
    %394 = vector.multi_reduction <add>, %393, %cst_126 [1] : vector<10x128xf32> to vector<10xf32>
    %395 = vector.shape_cast %394 : vector<10xf32> to vector<10x1xf32>
    %cst_127 = arith.constant 3.125000e-02 : f32
    %396 = vector.broadcast %cst_127 : f32 to vector<10x1xf32>
    %397 = arith.mulf %395, %396 : vector<10x1xf32>
    %cst_128 = arith.constant 9.99999974E-6 : f32
    %398 = vector.broadcast %cst_128 : f32 to vector<10x1xf32>
    %399 = arith.addf %397, %398 : vector<10x1xf32>
    %400 = math.rsqrt %399 : vector<10x1xf32>
    %401 = vector.broadcast %400 : vector<10x1xf32> to vector<10x128xf32>
    %402 = arith.mulf %392, %401 : vector<10x128xf32>
    %403 = vector.broadcast %383 : vector<1x128xf32> to vector<10x128xf32>
    %404 = arith.mulf %402, %403 : vector<10x128xf32>
    %405 = vector.broadcast %384 : vector<1x128xf32> to vector<10x128xf32>
    %406 = arith.addf %404, %405 : vector<10x128xf32>
    %c0_129 = arith.constant 0 : index
    %c0_130 = arith.constant 0 : index
    %407 = vector.load %arg1[%c0_129, %c0_130] : memref<10x128xf32, #tpu.memory_space<vmem>>, vector<10x128xf32>
    %c1536 = arith.constant 1536 : index
    %c0_131 = arith.constant 0 : index
    %408 = vector.load %arg3[%c1536, %c0_131] : memref<4224x128xbf16, #tpu.memory_space<vmem>>, vector<128x128xbf16>
    %409 = arith.truncf %407 : vector<10x128xf32> to vector<10x128xbf16>
    %cst_132 = arith.constant dense<0.000000e+00> : vector<10x128xf32>
    %410 = tpu.matmul %409, %408, %cst_132 {dimension_numbers = #tpu.dot_dimension_numbers<[1], [0], [0], [1], [0, 0, 1, 1], [], []>} : vector<10x128xbf16>, vector<128x128xbf16>, vector<10x128xf32> -> vector<10x128xf32>
    %c160 = arith.constant 160 : index
    %c0_133 = arith.constant 0 : index
    %411 = vector.load %arg4[%c160, %c0_133] : memref<416x128xf32, #tpu.memory_space<vmem>>, vector<1x128xf32>
    %412 = vector.broadcast %411 : vector<1x128xf32> to vector<10x128xf32>
    %413 = arith.addf %410, %412 : vector<10x128xf32>
    %c1664 = arith.constant 1664 : index
    %c0_134 = arith.constant 0 : index
    %414 = vector.load %arg3[%c1664, %c0_134] : memref<4224x128xbf16, #tpu.memory_space<vmem>>, vector<128x128xbf16>
    %415 = arith.truncf %407 : vector<10x128xf32> to vector<10x128xbf16>
    %cst_135 = arith.constant dense<0.000000e+00> : vector<10x128xf32>
    %416 = tpu.matmul %415, %414, %cst_135 {dimension_numbers = #tpu.dot_dimension_numbers<[1], [0], [0], [1], [0, 0, 1, 1], [], []>} : vector<10x128xbf16>, vector<128x128xbf16>, vector<10x128xf32> -> vector<10x128xf32>
    %c168 = arith.constant 168 : index
    %c0_136 = arith.constant 0 : index
    %417 = vector.load %arg4[%c168, %c0_136] : memref<416x128xf32, #tpu.memory_space<vmem>>, vector<1x128xf32>
    %418 = vector.broadcast %417 : vector<1x128xf32> to vector<10x128xf32>
    %419 = arith.addf %416, %418 : vector<10x128xf32>
    %c1792 = arith.constant 1792 : index
    %c0_137 = arith.constant 0 : index
    %420 = vector.load %arg3[%c1792, %c0_137] : memref<4224x128xbf16, #tpu.memory_space<vmem>>, vector<128x128xbf16>
    %421 = arith.truncf %407 : vector<10x128xf32> to vector<10x128xbf16>
    %cst_138 = arith.constant dense<0.000000e+00> : vector<10x128xf32>
    %422 = tpu.matmul %421, %420, %cst_138 {dimension_numbers = #tpu.dot_dimension_numbers<[1], [0], [0], [1], [0, 0, 1, 1], [], []>} : vector<10x128xbf16>, vector<128x128xbf16>, vector<10x128xf32> -> vector<10x128xf32>
    %c176 = arith.constant 176 : index
    %c0_139 = arith.constant 0 : index
    %423 = vector.load %arg4[%c176, %c0_139] : memref<416x128xf32, #tpu.memory_space<vmem>>, vector<1x128xf32>
    %424 = vector.broadcast %423 : vector<1x128xf32> to vector<10x128xf32>
    %425 = arith.addf %422, %424 : vector<10x128xf32>
    %426 = arith.truncf %413 : vector<10x128xf32> to vector<10x128xbf16>
    %cst_140 = arith.constant dense<0.000000e+00> : vector<40x128xf32>
    %427 = tpu.matmul %110, %426, %cst_140 {dimension_numbers = #tpu.dot_dimension_numbers<[1], [0], [0], [1], [0, 0, 1, 1], [], []>} : vector<40x10xbf16>, vector<10x128xbf16>, vector<40x128xf32> -> vector<40x128xf32>
    %428 = arith.mulf %427, %58 : vector<40x128xf32>
    %429 = arith.truncf %428 : vector<40x128xf32> to vector<40x128xbf16>
    %430 = arith.truncf %419 : vector<10x128xf32> to vector<10x128xbf16>
    %cst_141 = arith.constant dense<0.000000e+00> : vector<40x10xf32>
    %431 = tpu.matmul %429, %430, %cst_141 {dimension_numbers = #tpu.dot_dimension_numbers<[1], [1], [0], [0], [0, 0, 1, 0], [], []>} : vector<40x128xbf16>, vector<10x128xbf16>, vector<40x10xf32> -> vector<40x10xf32>
    %cst_142 = arith.constant 0.353553385 : f32
    %432 = vector.broadcast %cst_142 : f32 to vector<40x10xf32>
    %433 = arith.mulf %431, %432 : vector<40x10xf32>
    %434 = arith.addf %433, %171 : vector<40x10xf32>
    %cst_143 = arith.constant dense<0xFF800000> : vector<40xf32>
    %435 = vector.multi_reduction <maximumf>, %434, %cst_143 [1] : vector<40x10xf32> to vector<40xf32>
    %436 = vector.shape_cast %435 : vector<40xf32> to vector<40x1xf32>
    %437 = vector.broadcast %436 : vector<40x1xf32> to vector<40x10xf32>
    %438 = arith.subf %434, %437 : vector<40x10xf32>
    %439 = math.exp %438 : vector<40x10xf32>
    %cst_144 = arith.constant dense<0.000000e+00> : vector<40xf32>
    %440 = vector.multi_reduction <add>, %439, %cst_144 [1] : vector<40x10xf32> to vector<40xf32>
    %441 = vector.shape_cast %440 : vector<40xf32> to vector<40x1xf32>
    %442 = tpu.reciprocal %441 {approx = true} : vector<40x1xf32> -> vector<40x1xf32>
    %443 = vector.broadcast %442 : vector<40x1xf32> to vector<40x10xf32>
    %444 = arith.mulf %439, %443 : vector<40x10xf32>
    %c2 = arith.constant 2 : index
    %c0_145 = arith.constant 0 : index
    %c0_146 = arith.constant 0 : index
    %445 = vector.load %arg6[%c2, %c0_145, %c0_146] : memref<6x40x10xf32, #tpu.memory_space<vmem>>, vector<1x40x10xf32>
    %446 = vector.shape_cast %445 : vector<1x40x10xf32> to vector<40x10xf32>
    %447 = vector.shape_cast %444 : vector<40x10xf32> to vector<1x40x10xf32>
    tpu.vector_store %arg6[%c2, %c0_145, %c0_146], %447 {strides = array<i32>} : memref<6x40x10xf32, #tpu.memory_space<vmem>>, vector<1x40x10xf32>,
    %448 = arith.truncf %444 : vector<40x10xf32> to vector<40x10xbf16>
    %449 = arith.truncf %425 : vector<10x128xf32> to vector<10x128xbf16>
    %cst_147 = arith.constant dense<0.000000e+00> : vector<40x128xf32>
    %450 = tpu.matmul %448, %449, %cst_147 {dimension_numbers = #tpu.dot_dimension_numbers<[1], [0], [0], [1], [0, 0, 1, 1], [], []>} : vector<40x10xbf16>, vector<10x128xbf16>, vector<40x128xf32> -> vector<40x128xf32>
    %451 = arith.mulf %450, %58 : vector<40x128xf32>
    %452 = arith.truncf %451 : vector<40x128xf32> to vector<40x128xbf16>
    %cst_148 = arith.constant dense<0.000000e+00> : vector<10x128xf32>
    %453 = tpu.matmul %162, %452, %cst_148 {dimension_numbers = #tpu.dot_dimension_numbers<[1], [0], [0], [1], [0, 0, 1, 1], [], []>} : vector<10x40xbf16>, vector<40x128xbf16>, vector<10x128xf32> -> vector<10x128xf32>
    %c1920 = arith.constant 1920 : index
    %c0_149 = arith.constant 0 : index
    %454 = vector.load %arg3[%c1920, %c0_149] : memref<4224x128xbf16, #tpu.memory_space<vmem>>, vector<128x128xbf16>
    %455 = arith.truncf %453 : vector<10x128xf32> to vector<10x128xbf16>
    %cst_150 = arith.constant dense<0.000000e+00> : vector<10x128xf32>
    %456 = tpu.matmul %455, %454, %cst_150 {dimension_numbers = #tpu.dot_dimension_numbers<[1], [0], [0], [1], [0, 0, 1, 1], [], []>} : vector<10x128xbf16>, vector<128x128xbf16>, vector<10x128xf32> -> vector<10x128xf32>
    %c184 = arith.constant 184 : index
    %c0_151 = arith.constant 0 : index
    %457 = vector.load %arg4[%c184, %c0_151] : memref<416x128xf32, #tpu.memory_space<vmem>>, vector<1x128xf32>
    %458 = vector.broadcast %457 : vector<1x128xf32> to vector<10x128xf32>
    %459 = arith.addf %456, %458 : vector<10x128xf32>
    %460 = arith.addf %459, %407 : vector<10x128xf32>
    %c192 = arith.constant 192 : index
    %c0_152 = arith.constant 0 : index
    %461 = vector.load %arg4[%c192, %c0_152] : memref<416x128xf32, #tpu.memory_space<vmem>>, vector<1x128xf32>
    %c200 = arith.constant 200 : index
    %c0_153 = arith.constant 0 : index
    %462 = vector.load %arg4[%c200, %c0_153] : memref<416x128xf32, #tpu.memory_space<vmem>>, vector<1x128xf32>
    %cst_154 = arith.constant dense<0.000000e+00> : vector<10xf32>
    %463 = vector.multi_reduction <add>, %460, %cst_154 [1] : vector<10x128xf32> to vector<10xf32>
    %464 = vector.shape_cast %463 : vector<10xf32> to vector<10x1xf32>
    %cst_155 = arith.constant 3.125000e-02 : f32
    %465 = vector.broadcast %cst_155 : f32 to vector<10x1xf32>
    %466 = arith.mulf %464, %465 : vector<10x1xf32>
    %467 = vector.broadcast %466 : vector<10x1xf32> to vector<10x128xf32>
    %468 = arith.subf %460, %467 : vector<10x128xf32>
    %469 = vector.broadcast %167 : vector<1x128xf32> to vector<10x128xf32>
    %470 = arith.mulf %468, %469 : vector<10x128xf32>
    %471 = arith.mulf %470, %470 : vector<10x128xf32>
    %cst_156 = arith.constant dense<0.000000e+00> : vector<10xf32>
    %472 = vector.multi_reduction <add>, %471, %cst_156 [1] : vector<10x128xf32> to vector<10xf32>
    %473 = vector.shape_cast %472 : vector<10xf32> to vector<10x1xf32>
    %cst_157 = arith.constant 3.125000e-02 : f32
    %474 = vector.broadcast %cst_157 : f32 to vector<10x1xf32>
    %475 = arith.mulf %473, %474 : vector<10x1xf32>
    %cst_158 = arith.constant 9.99999974E-6 : f32
    %476 = vector.broadcast %cst_158 : f32 to vector<10x1xf32>
    %477 = arith.addf %475, %476 : vector<10x1xf32>
    %478 = math.rsqrt %477 : vector<10x1xf32>
    %479 = vector.broadcast %478 : vector<10x1xf32> to vector<10x128xf32>
    %480 = arith.mulf %470, %479 : vector<10x128xf32>
    %481 = vector.broadcast %461 : vector<1x128xf32> to vector<10x128xf32>
    %482 = arith.mulf %480, %481 : vector<10x128xf32>
    %483 = vector.broadcast %462 : vector<1x128xf32> to vector<10x128xf32>
    %484 = arith.addf %482, %483 : vector<10x128xf32>
    %c2048 = arith.constant 2048 : index
    %c0_159 = arith.constant 0 : index
    %485 = vector.load %arg3[%c2048, %c0_159] : memref<4224x128xbf16, #tpu.memory_space<vmem>>, vector<128x128xbf16>
    %486 = arith.truncf %484 : vector<10x128xf32> to vector<10x128xbf16>
    %cst_160 = arith.constant dense<0.000000e+00> : vector<10x128xf32>
    %487 = tpu.matmul %486, %485, %cst_160 {dimension_numbers = #tpu.dot_dimension_numbers<[1], [0], [0], [1], [0, 0, 1, 1], [], []>} : vector<10x128xbf16>, vector<128x128xbf16>, vector<10x128xf32> -> vector<10x128xf32>
    %c208 = arith.constant 208 : index
    %c0_161 = arith.constant 0 : index
    %488 = vector.load %arg4[%c208, %c0_161] : memref<416x128xf32, #tpu.memory_space<vmem>>, vector<1x128xf32>
    %489 = vector.broadcast %488 : vector<1x128xf32> to vector<10x128xf32>
    %490 = arith.addf %487, %489 : vector<10x128xf32>
    %c2176 = arith.constant 2176 : index
    %c0_162 = arith.constant 0 : index
    %491 = vector.load %arg3[%c2176, %c0_162] : memref<4224x128xbf16, #tpu.memory_space<vmem>>, vector<128x128xbf16>
    %492 = arith.truncf %406 : vector<10x128xf32> to vector<10x128xbf16>
    %cst_163 = arith.constant dense<0.000000e+00> : vector<10x128xf32>
    %493 = tpu.matmul %492, %491, %cst_163 {dimension_numbers = #tpu.dot_dimension_numbers<[1], [0], [0], [1], [0, 0, 1, 1], [], []>} : vector<10x128xbf16>, vector<128x128xbf16>, vector<10x128xf32> -> vector<10x128xf32>
    %c216 = arith.constant 216 : index
    %c0_164 = arith.constant 0 : index
    %494 = vector.load %arg4[%c216, %c0_164] : memref<416x128xf32, #tpu.memory_space<vmem>>, vector<1x128xf32>
    %495 = vector.broadcast %494 : vector<1x128xf32> to vector<10x128xf32>
    %496 = arith.addf %493, %495 : vector<10x128xf32>
    %c2304 = arith.constant 2304 : index
    %c0_165 = arith.constant 0 : index
    %497 = vector.load %arg3[%c2304, %c0_165] : memref<4224x128xbf16, #tpu.memory_space<vmem>>, vector<128x128xbf16>
    %498 = arith.truncf %406 : vector<10x128xf32> to vector<10x128xbf16>
    %cst_166 = arith.constant dense<0.000000e+00> : vector<10x128xf32>
    %499 = tpu.matmul %498, %497, %cst_166 {dimension_numbers = #tpu.dot_dimension_numbers<[1], [0], [0], [1], [0, 0, 1, 1], [], []>} : vector<10x128xbf16>, vector<128x128xbf16>, vector<10x128xf32> -> vector<10x128xf32>
    %c224 = arith.constant 224 : index
    %c0_167 = arith.constant 0 : index
    %500 = vector.load %arg4[%c224, %c0_167] : memref<416x128xf32, #tpu.memory_space<vmem>>, vector<1x128xf32>
    %501 = vector.broadcast %500 : vector<1x128xf32> to vector<10x128xf32>
    %502 = arith.addf %499, %501 : vector<10x128xf32>
    %503 = arith.truncf %490 : vector<10x128xf32> to vector<10x128xbf16>
    %cst_168 = arith.constant dense<0.000000e+00> : vector<40x128xf32>
    %504 = tpu.matmul %110, %503, %cst_168 {dimension_numbers = #tpu.dot_dimension_numbers<[1], [0], [0], [1], [0, 0, 1, 1], [], []>} : vector<40x10xbf16>, vector<10x128xbf16>, vector<40x128xf32> -> vector<40x128xf32>
    %505 = arith.mulf %504, %58 : vector<40x128xf32>
    %506 = arith.truncf %505 : vector<40x128xf32> to vector<40x128xbf16>
    %507 = arith.truncf %496 : vector<10x128xf32> to vector<10x128xbf16>
    %cst_169 = arith.constant dense<0.000000e+00> : vector<40x10xf32>
    %508 = tpu.matmul %506, %507, %cst_169 {dimension_numbers = #tpu.dot_dimension_numbers<[1], [1], [0], [0], [0, 0, 1, 0], [], []>} : vector<40x128xbf16>, vector<10x128xbf16>, vector<40x10xf32> -> vector<40x10xf32>
    %cst_170 = arith.constant 0.353553385 : f32
    %509 = vector.broadcast %cst_170 : f32 to vector<40x10xf32>
    %510 = arith.mulf %508, %509 : vector<40x10xf32>
    %511 = arith.addf %510, %173 : vector<40x10xf32>
    %cst_171 = arith.constant dense<0xFF800000> : vector<40xf32>
    %512 = vector.multi_reduction <maximumf>, %511, %cst_171 [1] : vector<40x10xf32> to vector<40xf32>
    %513 = vector.shape_cast %512 : vector<40xf32> to vector<40x1xf32>
    %514 = vector.broadcast %513 : vector<40x1xf32> to vector<40x10xf32>
    %515 = arith.subf %511, %514 : vector<40x10xf32>
    %516 = math.exp %515 : vector<40x10xf32>
    %cst_172 = arith.constant dense<0.000000e+00> : vector<40xf32>
    %517 = vector.multi_reduction <add>, %516, %cst_172 [1] : vector<40x10xf32> to vector<40xf32>
    %518 = vector.shape_cast %517 : vector<40xf32> to vector<40x1xf32>
    %519 = tpu.reciprocal %518 {approx = true} : vector<40x1xf32> -> vector<40x1xf32>
    %520 = vector.broadcast %519 : vector<40x1xf32> to vector<40x10xf32>
    %521 = arith.mulf %516, %520 : vector<40x10xf32>
    %c4 = arith.constant 4 : index
    %c0_173 = arith.constant 0 : index
    %c0_174 = arith.constant 0 : index
    %522 = vector.load %arg6[%c4, %c0_173, %c0_174] : memref<6x40x10xf32, #tpu.memory_space<vmem>>, vector<1x40x10xf32>
    %523 = vector.shape_cast %522 : vector<1x40x10xf32> to vector<40x10xf32>
    %524 = vector.shape_cast %521 : vector<40x10xf32> to vector<1x40x10xf32>
    tpu.vector_store %arg6[%c4, %c0_173, %c0_174], %524 {strides = array<i32>} : memref<6x40x10xf32, #tpu.memory_space<vmem>>, vector<1x40x10xf32>,
    %525 = arith.truncf %521 : vector<40x10xf32> to vector<40x10xbf16>
    %526 = arith.truncf %502 : vector<10x128xf32> to vector<10x128xbf16>
    %cst_175 = arith.constant dense<0.000000e+00> : vector<40x128xf32>
    %527 = tpu.matmul %525, %526, %cst_175 {dimension_numbers = #tpu.dot_dimension_numbers<[1], [0], [0], [1], [0, 0, 1, 1], [], []>} : vector<40x10xbf16>, vector<10x128xbf16>, vector<40x128xf32> -> vector<40x128xf32>
    %528 = arith.mulf %527, %58 : vector<40x128xf32>
    %529 = arith.truncf %528 : vector<40x128xf32> to vector<40x128xbf16>
    %cst_176 = arith.constant dense<0.000000e+00> : vector<10x128xf32>
    %530 = tpu.matmul %162, %529, %cst_176 {dimension_numbers = #tpu.dot_dimension_numbers<[1], [0], [0], [1], [0, 0, 1, 1], [], []>} : vector<10x40xbf16>, vector<40x128xbf16>, vector<10x128xf32> -> vector<10x128xf32>
    %c2432 = arith.constant 2432 : index
    %c0_177 = arith.constant 0 : index
    %531 = vector.load %arg3[%c2432, %c0_177] : memref<4224x128xbf16, #tpu.memory_space<vmem>>, vector<128x128xbf16>
    %532 = arith.truncf %530 : vector<10x128xf32> to vector<10x128xbf16>
    %cst_178 = arith.constant dense<0.000000e+00> : vector<10x128xf32>
    %533 = tpu.matmul %532, %531, %cst_178 {dimension_numbers = #tpu.dot_dimension_numbers<[1], [0], [0], [1], [0, 0, 1, 1], [], []>} : vector<10x128xbf16>, vector<128x128xbf16>, vector<10x128xf32> -> vector<10x128xf32>
    %c232 = arith.constant 232 : index
    %c0_179 = arith.constant 0 : index
    %534 = vector.load %arg4[%c232, %c0_179] : memref<416x128xf32, #tpu.memory_space<vmem>>, vector<1x128xf32>
    %535 = vector.broadcast %534 : vector<1x128xf32> to vector<10x128xf32>
    %536 = arith.addf %533, %535 : vector<10x128xf32>
    %537 = arith.addf %536, %484 : vector<10x128xf32>
    %c240 = arith.constant 240 : index
    %c0_180 = arith.constant 0 : index
    %538 = vector.load %arg4[%c240, %c0_180] : memref<416x128xf32, #tpu.memory_space<vmem>>, vector<1x128xf32>
    %c248 = arith.constant 248 : index
    %c0_181 = arith.constant 0 : index
    %539 = vector.load %arg4[%c248, %c0_181] : memref<416x128xf32, #tpu.memory_space<vmem>>, vector<1x128xf32>
    %cst_182 = arith.constant dense<0.000000e+00> : vector<10xf32>
    %540 = vector.multi_reduction <add>, %537, %cst_182 [1] : vector<10x128xf32> to vector<10xf32>
    %541 = vector.shape_cast %540 : vector<10xf32> to vector<10x1xf32>
    %cst_183 = arith.constant 3.125000e-02 : f32
    %542 = vector.broadcast %cst_183 : f32 to vector<10x1xf32>
    %543 = arith.mulf %541, %542 : vector<10x1xf32>
    %544 = vector.broadcast %543 : vector<10x1xf32> to vector<10x128xf32>
    %545 = arith.subf %537, %544 : vector<10x128xf32>
    %546 = vector.broadcast %167 : vector<1x128xf32> to vector<10x128xf32>
    %547 = arith.mulf %545, %546 : vector<10x128xf32>
    %548 = arith.mulf %547, %547 : vector<10x128xf32>
    %cst_184 = arith.constant dense<0.000000e+00> : vector<10xf32>
    %549 = vector.multi_reduction <add>, %548, %cst_184 [1] : vector<10x128xf32> to vector<10xf32>
    %550 = vector.shape_cast %549 : vector<10xf32> to vector<10x1xf32>
    %cst_185 = arith.constant 3.125000e-02 : f32
    %551 = vector.broadcast %cst_185 : f32 to vector<10x1xf32>
    %552 = arith.mulf %550, %551 : vector<10x1xf32>
    %cst_186 = arith.constant 9.99999974E-6 : f32
    %553 = vector.broadcast %cst_186 : f32 to vector<10x1xf32>
    %554 = arith.addf %552, %553 : vector<10x1xf32>
    %555 = math.rsqrt %554 : vector<10x1xf32>
    %556 = vector.broadcast %555 : vector<10x1xf32> to vector<10x128xf32>
    %557 = arith.mulf %547, %556 : vector<10x128xf32>
    %558 = vector.broadcast %538 : vector<1x128xf32> to vector<10x128xf32>
    %559 = arith.mulf %557, %558 : vector<10x128xf32>
    %560 = vector.broadcast %539 : vector<1x128xf32> to vector<10x128xf32>
    %561 = arith.addf %559, %560 : vector<10x128xf32>
    %c2560 = arith.constant 2560 : index
    %c0_187 = arith.constant 0 : index
    %562 = vector.load %arg3[%c2560, %c0_187] : memref<4224x128xbf16, #tpu.memory_space<vmem>>, vector<128x128xbf16>
    %563 = arith.truncf %561 : vector<10x128xf32> to vector<10x128xbf16>
    %cst_188 = arith.constant dense<0.000000e+00> : vector<10x128xf32>
    %564 = tpu.matmul %563, %562, %cst_188 {dimension_numbers = #tpu.dot_dimension_numbers<[1], [0], [0], [1], [0, 0, 1, 1], [], []>} : vector<10x128xbf16>, vector<128x128xbf16>, vector<10x128xf32> -> vector<10x128xf32>
    %c256_189 = arith.constant 256 : index
    %c0_190 = arith.constant 0 : index
    %565 = vector.load %arg4[%c256_189, %c0_190] : memref<416x128xf32, #tpu.memory_space<vmem>>, vector<1x128xf32>
    %566 = vector.broadcast %565 : vector<1x128xf32> to vector<10x128xf32>
    %567 = arith.addf %564, %566 : vector<10x128xf32>
    %cst_191 = arith.constant 0.000000e+00 : f32
    %568 = vector.broadcast %cst_191 : f32 to vector<10x128xf32>
    %569 = arith.maximumf %567, %568 : vector<10x128xf32>
    %c2688 = arith.constant 2688 : index
    %c0_192 = arith.constant 0 : index
    %570 = vector.load %arg3[%c2688, %c0_192] : memref<4224x128xbf16, #tpu.memory_space<vmem>>, vector<128x128xbf16>
    %571 = arith.truncf %569 : vector<10x128xf32> to vector<10x128xbf16>
    %cst_193 = arith.constant dense<0.000000e+00> : vector<10x128xf32>
    %572 = tpu.matmul %571, %570, %cst_193 {dimension_numbers = #tpu.dot_dimension_numbers<[1], [0], [0], [1], [0, 0, 1, 1], [], []>} : vector<10x128xbf16>, vector<128x128xbf16>, vector<10x128xf32> -> vector<10x128xf32>
    %c264 = arith.constant 264 : index
    %c0_194 = arith.constant 0 : index
    %573 = vector.load %arg4[%c264, %c0_194] : memref<416x128xf32, #tpu.memory_space<vmem>>, vector<1x128xf32>
    %574 = vector.broadcast %573 : vector<1x128xf32> to vector<10x128xf32>
    %575 = arith.addf %572, %574 : vector<10x128xf32>
    %576 = arith.addf %575, %561 : vector<10x128xf32>
    %c272 = arith.constant 272 : index
    %c0_195 = arith.constant 0 : index
    %577 = vector.load %arg4[%c272, %c0_195] : memref<416x128xf32, #tpu.memory_space<vmem>>, vector<1x128xf32>
    %c280 = arith.constant 280 : index
    %c0_196 = arith.constant 0 : index
    %578 = vector.load %arg4[%c280, %c0_196] : memref<416x128xf32, #tpu.memory_space<vmem>>, vector<1x128xf32>
    %cst_197 = arith.constant dense<0.000000e+00> : vector<10xf32>
    %579 = vector.multi_reduction <add>, %576, %cst_197 [1] : vector<10x128xf32> to vector<10xf32>
    %580 = vector.shape_cast %579 : vector<10xf32> to vector<10x1xf32>
    %cst_198 = arith.constant 3.125000e-02 : f32
    %581 = vector.broadcast %cst_198 : f32 to vector<10x1xf32>
    %582 = arith.mulf %580, %581 : vector<10x1xf32>
    %583 = vector.broadcast %582 : vector<10x1xf32> to vector<10x128xf32>
    %584 = arith.subf %576, %583 : vector<10x128xf32>
    %585 = vector.broadcast %167 : vector<1x128xf32> to vector<10x128xf32>
    %586 = arith.mulf %584, %585 : vector<10x128xf32>
    %587 = arith.mulf %586, %586 : vector<10x128xf32>
    %cst_199 = arith.constant dense<0.000000e+00> : vector<10xf32>
    %588 = vector.multi_reduction <add>, %587, %cst_199 [1] : vector<10x128xf32> to vector<10xf32>
    %589 = vector.shape_cast %588 : vector<10xf32> to vector<10x1xf32>
    %cst_200 = arith.constant 3.125000e-02 : f32
    %590 = vector.broadcast %cst_200 : f32 to vector<10x1xf32>
    %591 = arith.mulf %589, %590 : vector<10x1xf32>
    %cst_201 = arith.constant 9.99999974E-6 : f32
    %592 = vector.broadcast %cst_201 : f32 to vector<10x1xf32>
    %593 = arith.addf %591, %592 : vector<10x1xf32>
    %594 = math.rsqrt %593 : vector<10x1xf32>
    %595 = vector.broadcast %594 : vector<10x1xf32> to vector<10x128xf32>
    %596 = arith.mulf %586, %595 : vector<10x128xf32>
    %597 = vector.broadcast %577 : vector<1x128xf32> to vector<10x128xf32>
    %598 = arith.mulf %596, %597 : vector<10x128xf32>
    %599 = vector.broadcast %578 : vector<1x128xf32> to vector<10x128xf32>
    %600 = arith.addf %598, %599 : vector<10x128xf32>
    %c2816 = arith.constant 2816 : index
    %c0_202 = arith.constant 0 : index
    %601 = vector.load %arg3[%c2816, %c0_202] : memref<4224x128xbf16, #tpu.memory_space<vmem>>, vector<128x128xbf16>
    %602 = arith.truncf %600 : vector<10x128xf32> to vector<10x128xbf16>
    %cst_203 = arith.constant dense<0.000000e+00> : vector<10x128xf32>
    %603 = tpu.matmul %602, %601, %cst_203 {dimension_numbers = #tpu.dot_dimension_numbers<[1], [0], [0], [1], [0, 0, 1, 1], [], []>} : vector<10x128xbf16>, vector<128x128xbf16>, vector<10x128xf32> -> vector<10x128xf32>
    %c288 = arith.constant 288 : index
    %c0_204 = arith.constant 0 : index
    %604 = vector.load %arg4[%c288, %c0_204] : memref<416x128xf32, #tpu.memory_space<vmem>>, vector<1x128xf32>
    %605 = vector.broadcast %604 : vector<1x128xf32> to vector<10x128xf32>
    %606 = arith.addf %603, %605 : vector<10x128xf32>
    %c2944 = arith.constant 2944 : index
    %c0_205 = arith.constant 0 : index
    %607 = vector.load %arg3[%c2944, %c0_205] : memref<4224x128xbf16, #tpu.memory_space<vmem>>, vector<128x128xbf16>
    %608 = arith.truncf %600 : vector<10x128xf32> to vector<10x128xbf16>
    %cst_206 = arith.constant dense<0.000000e+00> : vector<10x128xf32>
    %609 = tpu.matmul %608, %607, %cst_206 {dimension_numbers = #tpu.dot_dimension_numbers<[1], [0], [0], [1], [0, 0, 1, 1], [], []>} : vector<10x128xbf16>, vector<128x128xbf16>, vector<10x128xf32> -> vector<10x128xf32>
    %c296 = arith.constant 296 : index
    %c0_207 = arith.constant 0 : index
    %610 = vector.load %arg4[%c296, %c0_207] : memref<416x128xf32, #tpu.memory_space<vmem>>, vector<1x128xf32>
    %611 = vector.broadcast %610 : vector<1x128xf32> to vector<10x128xf32>
    %612 = arith.addf %609, %611 : vector<10x128xf32>
    %c3072 = arith.constant 3072 : index
    %c0_208 = arith.constant 0 : index
    %613 = vector.load %arg3[%c3072, %c0_208] : memref<4224x128xbf16, #tpu.memory_space<vmem>>, vector<128x128xbf16>
    %614 = arith.truncf %600 : vector<10x128xf32> to vector<10x128xbf16>
    %cst_209 = arith.constant dense<0.000000e+00> : vector<10x128xf32>
    %615 = tpu.matmul %614, %613, %cst_209 {dimension_numbers = #tpu.dot_dimension_numbers<[1], [0], [0], [1], [0, 0, 1, 1], [], []>} : vector<10x128xbf16>, vector<128x128xbf16>, vector<10x128xf32> -> vector<10x128xf32>
    %c304 = arith.constant 304 : index
    %c0_210 = arith.constant 0 : index
    %616 = vector.load %arg4[%c304, %c0_210] : memref<416x128xf32, #tpu.memory_space<vmem>>, vector<1x128xf32>
    %617 = vector.broadcast %616 : vector<1x128xf32> to vector<10x128xf32>
    %618 = arith.addf %615, %617 : vector<10x128xf32>
    %619 = arith.truncf %606 : vector<10x128xf32> to vector<10x128xbf16>
    %cst_211 = arith.constant dense<0.000000e+00> : vector<40x128xf32>
    %620 = tpu.matmul %110, %619, %cst_211 {dimension_numbers = #tpu.dot_dimension_numbers<[1], [0], [0], [1], [0, 0, 1, 1], [], []>} : vector<40x10xbf16>, vector<10x128xbf16>, vector<40x128xf32> -> vector<40x128xf32>
    %621 = arith.mulf %620, %58 : vector<40x128xf32>
    %622 = arith.truncf %621 : vector<40x128xf32> to vector<40x128xbf16>
    %623 = arith.truncf %612 : vector<10x128xf32> to vector<10x128xbf16>
    %cst_212 = arith.constant dense<0.000000e+00> : vector<40x10xf32>
    %624 = tpu.matmul %622, %623, %cst_212 {dimension_numbers = #tpu.dot_dimension_numbers<[1], [1], [0], [0], [0, 0, 1, 0], [], []>} : vector<40x128xbf16>, vector<10x128xbf16>, vector<40x10xf32> -> vector<40x10xf32>
    %cst_213 = arith.constant 0.353553385 : f32
    %625 = vector.broadcast %cst_213 : f32 to vector<40x10xf32>
    %626 = arith.mulf %624, %625 : vector<40x10xf32>
    %627 = arith.addf %626, %171 : vector<40x10xf32>
    %cst_214 = arith.constant dense<0xFF800000> : vector<40xf32>
    %628 = vector.multi_reduction <maximumf>, %627, %cst_214 [1] : vector<40x10xf32> to vector<40xf32>
    %629 = vector.shape_cast %628 : vector<40xf32> to vector<40x1xf32>
    %630 = vector.broadcast %629 : vector<40x1xf32> to vector<40x10xf32>
    %631 = arith.subf %627, %630 : vector<40x10xf32>
    %632 = math.exp %631 : vector<40x10xf32>
    %cst_215 = arith.constant dense<0.000000e+00> : vector<40xf32>
    %633 = vector.multi_reduction <add>, %632, %cst_215 [1] : vector<40x10xf32> to vector<40xf32>
    %634 = vector.shape_cast %633 : vector<40xf32> to vector<40x1xf32>
    %635 = tpu.reciprocal %634 {approx = true} : vector<40x1xf32> -> vector<40x1xf32>
    %636 = vector.broadcast %635 : vector<40x1xf32> to vector<40x10xf32>
    %637 = arith.mulf %632, %636 : vector<40x10xf32>
    %c3 = arith.constant 3 : index
    %c0_216 = arith.constant 0 : index
    %c0_217 = arith.constant 0 : index
    %638 = vector.load %arg6[%c3, %c0_216, %c0_217] : memref<6x40x10xf32, #tpu.memory_space<vmem>>, vector<1x40x10xf32>
    %639 = vector.shape_cast %638 : vector<1x40x10xf32> to vector<40x10xf32>
    %640 = vector.shape_cast %637 : vector<40x10xf32> to vector<1x40x10xf32>
    tpu.vector_store %arg6[%c3, %c0_216, %c0_217], %640 {strides = array<i32>} : memref<6x40x10xf32, #tpu.memory_space<vmem>>, vector<1x40x10xf32>,
    %641 = arith.truncf %637 : vector<40x10xf32> to vector<40x10xbf16>
    %642 = arith.truncf %618 : vector<10x128xf32> to vector<10x128xbf16>
    %cst_218 = arith.constant dense<0.000000e+00> : vector<40x128xf32>
    %643 = tpu.matmul %641, %642, %cst_218 {dimension_numbers = #tpu.dot_dimension_numbers<[1], [0], [0], [1], [0, 0, 1, 1], [], []>} : vector<40x10xbf16>, vector<10x128xbf16>, vector<40x128xf32> -> vector<40x128xf32>
    %644 = arith.mulf %643, %58 : vector<40x128xf32>
    %645 = arith.truncf %644 : vector<40x128xf32> to vector<40x128xbf16>
    %cst_219 = arith.constant dense<0.000000e+00> : vector<10x128xf32>
    %646 = tpu.matmul %162, %645, %cst_219 {dimension_numbers = #tpu.dot_dimension_numbers<[1], [0], [0], [1], [0, 0, 1, 1], [], []>} : vector<10x40xbf16>, vector<40x128xbf16>, vector<10x128xf32> -> vector<10x128xf32>
    %c3200 = arith.constant 3200 : index
    %c0_220 = arith.constant 0 : index
    %647 = vector.load %arg3[%c3200, %c0_220] : memref<4224x128xbf16, #tpu.memory_space<vmem>>, vector<128x128xbf16>
    %648 = arith.truncf %646 : vector<10x128xf32> to vector<10x128xbf16>
    %cst_221 = arith.constant dense<0.000000e+00> : vector<10x128xf32>
    %649 = tpu.matmul %648, %647, %cst_221 {dimension_numbers = #tpu.dot_dimension_numbers<[1], [0], [0], [1], [0, 0, 1, 1], [], []>} : vector<10x128xbf16>, vector<128x128xbf16>, vector<10x128xf32> -> vector<10x128xf32>
    %c312 = arith.constant 312 : index
    %c0_222 = arith.constant 0 : index
    %650 = vector.load %arg4[%c312, %c0_222] : memref<416x128xf32, #tpu.memory_space<vmem>>, vector<1x128xf32>
    %651 = vector.broadcast %650 : vector<1x128xf32> to vector<10x128xf32>
    %652 = arith.addf %649, %651 : vector<10x128xf32>
    %653 = arith.addf %652, %600 : vector<10x128xf32>
    %c320 = arith.constant 320 : index
    %c0_223 = arith.constant 0 : index
    %654 = vector.load %arg4[%c320, %c0_223] : memref<416x128xf32, #tpu.memory_space<vmem>>, vector<1x128xf32>
    %c328 = arith.constant 328 : index
    %c0_224 = arith.constant 0 : index
    %655 = vector.load %arg4[%c328, %c0_224] : memref<416x128xf32, #tpu.memory_space<vmem>>, vector<1x128xf32>
    %cst_225 = arith.constant dense<0.000000e+00> : vector<10xf32>
    %656 = vector.multi_reduction <add>, %653, %cst_225 [1] : vector<10x128xf32> to vector<10xf32>
    %657 = vector.shape_cast %656 : vector<10xf32> to vector<10x1xf32>
    %cst_226 = arith.constant 3.125000e-02 : f32
    %658 = vector.broadcast %cst_226 : f32 to vector<10x1xf32>
    %659 = arith.mulf %657, %658 : vector<10x1xf32>
    %660 = vector.broadcast %659 : vector<10x1xf32> to vector<10x128xf32>
    %661 = arith.subf %653, %660 : vector<10x128xf32>
    %662 = vector.broadcast %167 : vector<1x128xf32> to vector<10x128xf32>
    %663 = arith.mulf %661, %662 : vector<10x128xf32>
    %664 = arith.mulf %663, %663 : vector<10x128xf32>
    %cst_227 = arith.constant dense<0.000000e+00> : vector<10xf32>
    %665 = vector.multi_reduction <add>, %664, %cst_227 [1] : vector<10x128xf32> to vector<10xf32>
    %666 = vector.shape_cast %665 : vector<10xf32> to vector<10x1xf32>
    %cst_228 = arith.constant 3.125000e-02 : f32
    %667 = vector.broadcast %cst_228 : f32 to vector<10x1xf32>
    %668 = arith.mulf %666, %667 : vector<10x1xf32>
    %cst_229 = arith.constant 9.99999974E-6 : f32
    %669 = vector.broadcast %cst_229 : f32 to vector<10x1xf32>
    %670 = arith.addf %668, %669 : vector<10x1xf32>
    %671 = math.rsqrt %670 : vector<10x1xf32>
    %672 = vector.broadcast %671 : vector<10x1xf32> to vector<10x128xf32>
    %673 = arith.mulf %663, %672 : vector<10x128xf32>
    %674 = vector.broadcast %654 : vector<1x128xf32> to vector<10x128xf32>
    %675 = arith.mulf %673, %674 : vector<10x128xf32>
    %676 = vector.broadcast %655 : vector<1x128xf32> to vector<10x128xf32>
    %677 = arith.addf %675, %676 : vector<10x128xf32>
    %c3328 = arith.constant 3328 : index
    %c0_230 = arith.constant 0 : index
    %678 = vector.load %arg3[%c3328, %c0_230] : memref<4224x128xbf16, #tpu.memory_space<vmem>>, vector<128x128xbf16>
    %679 = arith.truncf %677 : vector<10x128xf32> to vector<10x128xbf16>
    %cst_231 = arith.constant dense<0.000000e+00> : vector<10x128xf32>
    %680 = tpu.matmul %679, %678, %cst_231 {dimension_numbers = #tpu.dot_dimension_numbers<[1], [0], [0], [1], [0, 0, 1, 1], [], []>} : vector<10x128xbf16>, vector<128x128xbf16>, vector<10x128xf32> -> vector<10x128xf32>
    %c336 = arith.constant 336 : index
    %c0_232 = arith.constant 0 : index
    %681 = vector.load %arg4[%c336, %c0_232] : memref<416x128xf32, #tpu.memory_space<vmem>>, vector<1x128xf32>
    %682 = vector.broadcast %681 : vector<1x128xf32> to vector<10x128xf32>
    %683 = arith.addf %680, %682 : vector<10x128xf32>
    %c3456 = arith.constant 3456 : index
    %c0_233 = arith.constant 0 : index
    %684 = vector.load %arg3[%c3456, %c0_233] : memref<4224x128xbf16, #tpu.memory_space<vmem>>, vector<128x128xbf16>
    %685 = arith.truncf %406 : vector<10x128xf32> to vector<10x128xbf16>
    %cst_234 = arith.constant dense<0.000000e+00> : vector<10x128xf32>
    %686 = tpu.matmul %685, %684, %cst_234 {dimension_numbers = #tpu.dot_dimension_numbers<[1], [0], [0], [1], [0, 0, 1, 1], [], []>} : vector<10x128xbf16>, vector<128x128xbf16>, vector<10x128xf32> -> vector<10x128xf32>
    %c344 = arith.constant 344 : index
    %c0_235 = arith.constant 0 : index
    %687 = vector.load %arg4[%c344, %c0_235] : memref<416x128xf32, #tpu.memory_space<vmem>>, vector<1x128xf32>
    %688 = vector.broadcast %687 : vector<1x128xf32> to vector<10x128xf32>
    %689 = arith.addf %686, %688 : vector<10x128xf32>
    %c3584 = arith.constant 3584 : index
    %c0_236 = arith.constant 0 : index
    %690 = vector.load %arg3[%c3584, %c0_236] : memref<4224x128xbf16, #tpu.memory_space<vmem>>, vector<128x128xbf16>
    %691 = arith.truncf %406 : vector<10x128xf32> to vector<10x128xbf16>
    %cst_237 = arith.constant dense<0.000000e+00> : vector<10x128xf32>
    %692 = tpu.matmul %691, %690, %cst_237 {dimension_numbers = #tpu.dot_dimension_numbers<[1], [0], [0], [1], [0, 0, 1, 1], [], []>} : vector<10x128xbf16>, vector<128x128xbf16>, vector<10x128xf32> -> vector<10x128xf32>
    %c352 = arith.constant 352 : index
    %c0_238 = arith.constant 0 : index
    %693 = vector.load %arg4[%c352, %c0_238] : memref<416x128xf32, #tpu.memory_space<vmem>>, vector<1x128xf32>
    %694 = vector.broadcast %693 : vector<1x128xf32> to vector<10x128xf32>
    %695 = arith.addf %692, %694 : vector<10x128xf32>
    %696 = arith.truncf %683 : vector<10x128xf32> to vector<10x128xbf16>
    %cst_239 = arith.constant dense<0.000000e+00> : vector<40x128xf32>
    %697 = tpu.matmul %110, %696, %cst_239 {dimension_numbers = #tpu.dot_dimension_numbers<[1], [0], [0], [1], [0, 0, 1, 1], [], []>} : vector<40x10xbf16>, vector<10x128xbf16>, vector<40x128xf32> -> vector<40x128xf32>
    %698 = arith.mulf %697, %58 : vector<40x128xf32>
    %699 = arith.truncf %698 : vector<40x128xf32> to vector<40x128xbf16>
    %700 = arith.truncf %689 : vector<10x128xf32> to vector<10x128xbf16>
    %cst_240 = arith.constant dense<0.000000e+00> : vector<40x10xf32>
    %701 = tpu.matmul %699, %700, %cst_240 {dimension_numbers = #tpu.dot_dimension_numbers<[1], [1], [0], [0], [0, 0, 1, 0], [], []>} : vector<40x128xbf16>, vector<10x128xbf16>, vector<40x10xf32> -> vector<40x10xf32>
    %cst_241 = arith.constant 0.353553385 : f32
    %702 = vector.broadcast %cst_241 : f32 to vector<40x10xf32>
    %703 = arith.mulf %701, %702 : vector<40x10xf32>
    %704 = arith.addf %703, %173 : vector<40x10xf32>
    %cst_242 = arith.constant dense<0xFF800000> : vector<40xf32>
    %705 = vector.multi_reduction <maximumf>, %704, %cst_242 [1] : vector<40x10xf32> to vector<40xf32>
    %706 = vector.shape_cast %705 : vector<40xf32> to vector<40x1xf32>
    %707 = vector.broadcast %706 : vector<40x1xf32> to vector<40x10xf32>
    %708 = arith.subf %704, %707 : vector<40x10xf32>
    %709 = math.exp %708 : vector<40x10xf32>
    %cst_243 = arith.constant dense<0.000000e+00> : vector<40xf32>
    %710 = vector.multi_reduction <add>, %709, %cst_243 [1] : vector<40x10xf32> to vector<40xf32>
    %711 = vector.shape_cast %710 : vector<40xf32> to vector<40x1xf32>
    %712 = tpu.reciprocal %711 {approx = true} : vector<40x1xf32> -> vector<40x1xf32>
    %713 = vector.broadcast %712 : vector<40x1xf32> to vector<40x10xf32>
    %714 = arith.mulf %709, %713 : vector<40x10xf32>
    %c5 = arith.constant 5 : index
    %c0_244 = arith.constant 0 : index
    %c0_245 = arith.constant 0 : index
    %715 = vector.load %arg6[%c5, %c0_244, %c0_245] : memref<6x40x10xf32, #tpu.memory_space<vmem>>, vector<1x40x10xf32>
    %716 = vector.shape_cast %715 : vector<1x40x10xf32> to vector<40x10xf32>
    %717 = vector.shape_cast %714 : vector<40x10xf32> to vector<1x40x10xf32>
    tpu.vector_store %arg6[%c5, %c0_244, %c0_245], %717 {strides = array<i32>} : memref<6x40x10xf32, #tpu.memory_space<vmem>>, vector<1x40x10xf32>,
    %718 = arith.truncf %714 : vector<40x10xf32> to vector<40x10xbf16>
    %719 = arith.truncf %695 : vector<10x128xf32> to vector<10x128xbf16>
    %cst_246 = arith.constant dense<0.000000e+00> : vector<40x128xf32>
    %720 = tpu.matmul %718, %719, %cst_246 {dimension_numbers = #tpu.dot_dimension_numbers<[1], [0], [0], [1], [0, 0, 1, 1], [], []>} : vector<40x10xbf16>, vector<10x128xbf16>, vector<40x128xf32> -> vector<40x128xf32>
    %721 = arith.mulf %720, %58 : vector<40x128xf32>
    %722 = arith.truncf %721 : vector<40x128xf32> to vector<40x128xbf16>
    %cst_247 = arith.constant dense<0.000000e+00> : vector<10x128xf32>
    %723 = tpu.matmul %162, %722, %cst_247 {dimension_numbers = #tpu.dot_dimension_numbers<[1], [0], [0], [1], [0, 0, 1, 1], [], []>} : vector<10x40xbf16>, vector<40x128xbf16>, vector<10x128xf32> -> vector<10x128xf32>
    %c3712 = arith.constant 3712 : index
    %c0_248 = arith.constant 0 : index
    %724 = vector.load %arg3[%c3712, %c0_248] : memref<4224x128xbf16, #tpu.memory_space<vmem>>, vector<128x128xbf16>
    %725 = arith.truncf %723 : vector<10x128xf32> to vector<10x128xbf16>
    %cst_249 = arith.constant dense<0.000000e+00> : vector<10x128xf32>
    %726 = tpu.matmul %725, %724, %cst_249 {dimension_numbers = #tpu.dot_dimension_numbers<[1], [0], [0], [1], [0, 0, 1, 1], [], []>} : vector<10x128xbf16>, vector<128x128xbf16>, vector<10x128xf32> -> vector<10x128xf32>
    %c360 = arith.constant 360 : index
    %c0_250 = arith.constant 0 : index
    %727 = vector.load %arg4[%c360, %c0_250] : memref<416x128xf32, #tpu.memory_space<vmem>>, vector<1x128xf32>
    %728 = vector.broadcast %727 : vector<1x128xf32> to vector<10x128xf32>
    %729 = arith.addf %726, %728 : vector<10x128xf32>
    %730 = arith.addf %729, %677 : vector<10x128xf32>
    %c368 = arith.constant 368 : index
    %c0_251 = arith.constant 0 : index
    %731 = vector.load %arg4[%c368, %c0_251] : memref<416x128xf32, #tpu.memory_space<vmem>>, vector<1x128xf32>
    %c376 = arith.constant 376 : index
    %c0_252 = arith.constant 0 : index
    %732 = vector.load %arg4[%c376, %c0_252] : memref<416x128xf32, #tpu.memory_space<vmem>>, vector<1x128xf32>
    %cst_253 = arith.constant dense<0.000000e+00> : vector<10xf32>
    %733 = vector.multi_reduction <add>, %730, %cst_253 [1] : vector<10x128xf32> to vector<10xf32>
    %734 = vector.shape_cast %733 : vector<10xf32> to vector<10x1xf32>
    %cst_254 = arith.constant 3.125000e-02 : f32
    %735 = vector.broadcast %cst_254 : f32 to vector<10x1xf32>
    %736 = arith.mulf %734, %735 : vector<10x1xf32>
    %737 = vector.broadcast %736 : vector<10x1xf32> to vector<10x128xf32>
    %738 = arith.subf %730, %737 : vector<10x128xf32>
    %739 = vector.broadcast %167 : vector<1x128xf32> to vector<10x128xf32>
    %740 = arith.mulf %738, %739 : vector<10x128xf32>
    %741 = arith.mulf %740, %740 : vector<10x128xf32>
    %cst_255 = arith.constant dense<0.000000e+00> : vector<10xf32>
    %742 = vector.multi_reduction <add>, %741, %cst_255 [1] : vector<10x128xf32> to vector<10xf32>
    %743 = vector.shape_cast %742 : vector<10xf32> to vector<10x1xf32>
    %cst_256 = arith.constant 3.125000e-02 : f32
    %744 = vector.broadcast %cst_256 : f32 to vector<10x1xf32>
    %745 = arith.mulf %743, %744 : vector<10x1xf32>
    %cst_257 = arith.constant 9.99999974E-6 : f32
    %746 = vector.broadcast %cst_257 : f32 to vector<10x1xf32>
    %747 = arith.addf %745, %746 : vector<10x1xf32>
    %748 = math.rsqrt %747 : vector<10x1xf32>
    %749 = vector.broadcast %748 : vector<10x1xf32> to vector<10x128xf32>
    %750 = arith.mulf %740, %749 : vector<10x128xf32>
    %751 = vector.broadcast %731 : vector<1x128xf32> to vector<10x128xf32>
    %752 = arith.mulf %750, %751 : vector<10x128xf32>
    %753 = vector.broadcast %732 : vector<1x128xf32> to vector<10x128xf32>
    %754 = arith.addf %752, %753 : vector<10x128xf32>
    %c3840 = arith.constant 3840 : index
    %c0_258 = arith.constant 0 : index
    %755 = vector.load %arg3[%c3840, %c0_258] : memref<4224x128xbf16, #tpu.memory_space<vmem>>, vector<128x128xbf16>
    %756 = arith.truncf %754 : vector<10x128xf32> to vector<10x128xbf16>
    %cst_259 = arith.constant dense<0.000000e+00> : vector<10x128xf32>
    %757 = tpu.matmul %756, %755, %cst_259 {dimension_numbers = #tpu.dot_dimension_numbers<[1], [0], [0], [1], [0, 0, 1, 1], [], []>} : vector<10x128xbf16>, vector<128x128xbf16>, vector<10x128xf32> -> vector<10x128xf32>
    %c384_260 = arith.constant 384 : index
    %c0_261 = arith.constant 0 : index
    %758 = vector.load %arg4[%c384_260, %c0_261] : memref<416x128xf32, #tpu.memory_space<vmem>>, vector<1x128xf32>
    %759 = vector.broadcast %758 : vector<1x128xf32> to vector<10x128xf32>
    %760 = arith.addf %757, %759 : vector<10x128xf32>
    %cst_262 = arith.constant 0.000000e+00 : f32
    %761 = vector.broadcast %cst_262 : f32 to vector<10x128xf32>
    %762 = arith.maximumf %760, %761 : vector<10x128xf32>
    %c3968 = arith.constant 3968 : index
    %c0_263 = arith.constant 0 : index
    %763 = vector.load %arg3[%c3968, %c0_263] : memref<4224x128xbf16, #tpu.memory_space<vmem>>, vector<128x128xbf16>
    %764 = arith.truncf %762 : vector<10x128xf32> to vector<10x128xbf16>
    %cst_264 = arith.constant dense<0.000000e+00> : vector<10x128xf32>
    %765 = tpu.matmul %764, %763, %cst_264 {dimension_numbers = #tpu.dot_dimension_numbers<[1], [0], [0], [1], [0, 0, 1, 1], [], []>} : vector<10x128xbf16>, vector<128x128xbf16>, vector<10x128xf32> -> vector<10x128xf32>
    %c392 = arith.constant 392 : index
    %c0_265 = arith.constant 0 : index
    %766 = vector.load %arg4[%c392, %c0_265] : memref<416x128xf32, #tpu.memory_space<vmem>>, vector<1x128xf32>
    %767 = vector.broadcast %766 : vector<1x128xf32> to vector<10x128xf32>
    %768 = arith.addf %765, %767 : vector<10x128xf32>
    %769 = arith.addf %768, %754 : vector<10x128xf32>
    %c400 = arith.constant 400 : index
    %c0_266 = arith.constant 0 : index
    %770 = vector.load %arg4[%c400, %c0_266] : memref<416x128xf32, #tpu.memory_space<vmem>>, vector<1x128xf32>
    %c408 = arith.constant 408 : index
    %c0_267 = arith.constant 0 : index
    %771 = vector.load %arg4[%c408, %c0_267] : memref<416x128xf32, #tpu.memory_space<vmem>>, vector<1x128xf32>
    %cst_268 = arith.constant dense<0.000000e+00> : vector<10xf32>
    %772 = vector.multi_reduction <add>, %769, %cst_268 [1] : vector<10x128xf32> to vector<10xf32>
    %773 = vector.shape_cast %772 : vector<10xf32> to vector<10x1xf32>
    %cst_269 = arith.constant 3.125000e-02 : f32
    %774 = vector.broadcast %cst_269 : f32 to vector<10x1xf32>
    %775 = arith.mulf %773, %774 : vector<10x1xf32>
    %776 = vector.broadcast %775 : vector<10x1xf32> to vector<10x128xf32>
    %777 = arith.subf %769, %776 : vector<10x128xf32>
    %778 = vector.broadcast %167 : vector<1x128xf32> to vector<10x128xf32>
    %779 = arith.mulf %777, %778 : vector<10x128xf32>
    %780 = arith.mulf %779, %779 : vector<10x128xf32>
    %cst_270 = arith.constant dense<0.000000e+00> : vector<10xf32>
    %781 = vector.multi_reduction <add>, %780, %cst_270 [1] : vector<10x128xf32> to vector<10xf32>
    %782 = vector.shape_cast %781 : vector<10xf32> to vector<10x1xf32>
    %cst_271 = arith.constant 3.125000e-02 : f32
    %783 = vector.broadcast %cst_271 : f32 to vector<10x1xf32>
    %784 = arith.mulf %782, %783 : vector<10x1xf32>
    %cst_272 = arith.constant 9.99999974E-6 : f32
    %785 = vector.broadcast %cst_272 : f32 to vector<10x1xf32>
    %786 = arith.addf %784, %785 : vector<10x1xf32>
    %787 = math.rsqrt %786 : vector<10x1xf32>
    %788 = vector.broadcast %787 : vector<10x1xf32> to vector<10x128xf32>
    %789 = arith.mulf %779, %788 : vector<10x128xf32>
    %790 = vector.broadcast %770 : vector<1x128xf32> to vector<10x128xf32>
    %791 = arith.mulf %789, %790 : vector<10x128xf32>
    %792 = vector.broadcast %771 : vector<1x128xf32> to vector<10x128xf32>
    %793 = arith.addf %791, %792 : vector<10x128xf32>
    %c4096 = arith.constant 4096 : index
    %c0_273 = arith.constant 0 : index
    %794 = vector.load %arg3[%c4096, %c0_273] : memref<4224x128xbf16, #tpu.memory_space<vmem>>, vector<128x128xbf16>
    %795 = arith.truncf %793 : vector<10x128xf32> to vector<10x128xbf16>
    %cst_274 = arith.constant dense<0.000000e+00> : vector<10x128xf32>
    %796 = tpu.matmul %795, %794, %cst_274 {dimension_numbers = #tpu.dot_dimension_numbers<[1], [0], [0], [1], [0, 0, 1, 1], [], []>} : vector<10x128xbf16>, vector<128x128xbf16>, vector<10x128xf32> -> vector<10x128xf32>
    %c0_275 = arith.constant 0 : index
    %c0_276 = arith.constant 0 : index
    %797 = vector.load %arg5[%c0_275, %c0_276] : memref<10x128xf32, #tpu.memory_space<vmem>>, vector<10x128xf32>
    tpu.vector_store %arg5[%c0_275, %c0_276], %796 {strides = array<i32>} : memref<10x128xf32, #tpu.memory_space<vmem>>, vector<10x128xf32>,
    return
  }
}

</mosaic_0001>

<bundles_post_ra>
// kernel: transformer_forward.1
= control target key start
LH: loop header
LB: loop body
LE: loop exit
PB: predicated region body
PF: predicated region fallthrough
CT: control target
= control target key end

     0   :  { %v8665_v1 = vmov 0.0   ;;  %vm10868_vm0 = vmmov 0   ;;  %v24_v28 = vlaneseq  ;;  %v10873_v41 = vmov 0  ;;  %s10859_s0 = inlined_call_operand.vmem [shape: f32[10,128], index: 0, kind: input, shape index: {}]   ;;  %s10860_s1 = inlined_call_operand.vmem [shape: f32[10,128], index: 1, kind: input, shape index: {}]   ;;  %s10861_s2 = inlined_call_operand.vmem [shape: f32[120,10], index: 2, kind: input, shape index: {}]   ;;  %s10862_s3 = inlined_call_operand.vmem [shape: bf16[4224,128], index: 3, kind: input, shape index: {}]   ;;  %s10863_s4 = inlined_call_operand.vmem [shape: f32[416,128], index: 4, kind: input, shape index: {}]   ;;  %s10864_s5 = inlined_call_operand.hbm [shape: f32[10,128], index: 5, kind: output, shape index: {0}]   ;;  %s10865_s6 = inlined_call_operand.vmem [shape: f32[6,40,10], index: 6, kind: output, shape index: {1}]  }
   0x1   :  { %v8207_v0 = vld [vmem:[%s10862_s3 + $0x38] sm:$0xff]   ;;  %7228 = vmatprep.subr.bf16.mxu0 %v8665_v1  ;;  %7248 = vmatprep.subr.bf16.mxu1 %v8665_v1  ;;  %v8208_v2 = vld [vmem:[%s10862_s3 + $0x30] sm:$0xff]   ;;  %v8209_v3 = vld [vmem:[%s10862_s3 + $0x28] sm:$0xff]  }
   0x2   :  { %7229 = vmatpush3.bf16.msra.mxu0 %v8207_v0  ;;  %7244 = vmatprep.mubr.msk.bf16.mxu0 %vm10868_vm0, %v8665_v1  ;;  %v8210_v4 = vld [vmem:[%s10862_s3 + $0x20] sm:$0xff]   ;;  %v8216_v5 = vld [vmem:[%s10862_s3 + $0x78] sm:$0xff]   ;;  %v8218_v6 = vld [vmem:[%s10862_s3 + $0x70] sm:$0xff]   ;;  %v8819_v29 = vshrl.u32 %v24_v28, 7  ;;  %v8824_v31 = vand.u32 127, %v24_v28 }
   0x3   :  { %7230 = vmatprep.subr.bf16.mxu0 %v8665_v1  ;;  %7264 = vmatprep.mubr.msk.bf16.mxu1 %vm10868_vm0, %v8665_v1  ;;  %v8211_v7 = vld [vmem:[%s10862_s3 + $0x18] sm:$0xff]   ;;  %v8220_v8 = vld [vmem:[%s10862_s3 + $0x68] sm:$0xff]   ;;  %v8212_v9 = vld [vmem:[%s10862_s3 + $0x10] sm:$0xff]  }
   0x4   :  { %7249 = vmatpush3.bf16.msra.mxu1 %v8216_v5  ;;  %v8222_v10 = vld [vmem:[%s10862_s3 + $0x60] sm:$0xff]   ;;  %v8213_v11 = vld [vmem:[%s10862_s3 + $0x8] sm:$0xff]   ;;  %v8224_v15 = vld [vmem:[%s10862_s3 + $0x58] sm:$0xff]   ;;  %v8822_v30 = vadd.s32 8, %v8819_v29  ;;  %vm10866_vm2 = vcmp.lt.s32.totalorder %v8824_v31, 8  ;;  %vm85_vm3 = vcmp.ge.s32.totalorder %v8824_v31, 8 }
   0x5   :  { %7250 = vmatprep.subr.bf16.mxu1 %v8665_v1  ;;  %v8214_v12 = vld [vmem:[%s10862_s3] sm:$0xff]   ;;  %v373_v14 = vld [vmem:[%s10859_s0 + $0x8] sm:$0x3]  ;;  %v8226_v16 = vld [vmem:[%s10862_s3 + $0x50] sm:$0xff]   ;;  %vm86_vm4 = vcmp.lt.s32.totalorder %v8824_v31, 16  ;;  %v27_v35 = vadd.s32 16, %v8819_v29 }
   0x6   :  { %7231 = vmatpush3.bf16.msra.mxu0 %v8208_v2  ;;  %v372_v13 = vld [vmem:[%s10859_s0] sm:$0xff]  ;;  %v8215_v17 = vld [vmem:[%s10862_s3 + $0xb8] sm:$0xff]   ;;  %v8228_v19 = vld [vmem:[%s10862_s3 + $0x48] sm:$0xff]   ;;  %vm38_vm1 = vcmp.lt.s32.totalorder %v8822_v30, 10  ;;  %vm71_vm6 = vcmp.ge.s32.totalorder %v8822_v30, 10  ;;  %vm123_vm9 = vcmp.ge.s32.totalorder %v8824_v31, 16 }
   0x7   :  { %7232 = vmatprep.subr.bf16.mxu0 %v8665_v1  ;;  %v390_v18 = vpack.c.bf16 %v373_v14, %v372_v13  ;;  %v8217_v20 = vld [vmem:[%s10862_s3 + $0xb0] sm:$0xff]   ;;  %v8230_v21 = vld [vmem:[%s10862_s3 + $0x40] sm:$0xff]   ;;  %v8219_v22 = vld [vmem:[%s10862_s3 + $0xa8] sm:$0xff]   ;;  %vm124_vm10 = vcmp.lt.s32.totalorder %v8824_v31, 24  ;;  %v28_v36 = vadd.s32 24, %v8819_v29  ;;  %vm77_vm11 = vcmp.lt.s32.totalorder %v27_v35, 20 }
   0x8   :  { %7251 = vmatpush3.bf16.msra.mxu1 %v8218_v6  ;;  %v8221_v23 = vld [vmem:[%s10862_s3 + $0xa0] sm:$0xff]   ;;  %v8223_v24 = vld [vmem:[%s10862_s3 + $0x98] sm:$0xff]   ;;  %v8225_v25 = vld [vmem:[%s10862_s3 + $0x90] sm:$0xff]   ;;  %vm110_vm13 = vcmp.ge.s32.totalorder %v27_v35, 20  ;;  %vm161_vm14 = vcmp.ge.s32.totalorder %v8824_v31, 24 }
   0x9   :  { %7252 = vmatprep.subr.bf16.mxu1 %v8665_v1  ;;  %v8227_v26 = vld [vmem:[%s10862_s3 + $0x88] sm:$0xff]   ;;  %v8229_v27 = vld [vmem:[%s10862_s3 + $0x80] sm:$0xff]   ;;  %vm51_vm5 = vmand %vm38_vm1, %vm10866_vm2 }
   0xa   :  { %7233 = vmatpush3.bf16.msra.mxu0 %v8209_v3  ;;  %v6410_v32 = vsel %vm51_vm5, 1.0, %v8665_v1  ;;  %vm87_vm7 = vmand %vm85_vm3, %vm86_vm4  ;;  %vm10867_vm3 = vcmp.lt.s32.totalorder %v8824_v31, 32  ;;  %vm116_vm4 = vcmp.lt.s32.totalorder %v28_v36, 30 }
   0xb   :  { %7234 = vmatprep.subr.bf16.mxu0 %v8665_v1  ;;  %vm89_vm8 = vmand %vm71_vm6, %vm87_vm7 }
   0xc   :  { %7253 = vmatpush3.bf16.msra.mxu1 %v8220_v8  ;;  %v6411_v33 = vsel %vm89_vm8, 1.0, %v8665_v1  ;;  %vm90_vm12 = vmand %vm77_vm11, %vm87_vm7  ;;  %vm10870_vm7 = vcmp.ge.s32.totalorder %v28_v36, 30 }
   0xd   :  { %7254 = vmatprep.subr.bf16.mxu1 %v8665_v1  ;;  %v8839_v34 = vadd.f32 %v6411_v33, %v6410_v32  ;;  %v6412_v37 = vsel %vm90_vm12, 1.0, %v8665_v1  ;;  %vm125_vm15 = vmand %vm123_vm9, %vm124_vm10 }
   0xe   :  { %7235 = vmatpush3.bf16.msra.mxu0 %v8210_v4  ;;  %vm128_vm5 = vmand %vm110_vm13, %vm125_vm15 }
   0xf   :  { %7236 = vmatprep.subr.bf16.mxu0 %v8665_v1  ;;  %vm129_vm8 = vmand %vm116_vm4, %vm125_vm15  ;;  %v6413_v38 = vsel %vm128_vm5, 1.0, %v8665_v1 }
  0x10   :  { %7255 = vmatpush3.bf16.msra.mxu1 %v8222_v10  ;;  %v6414_v39 = vsel %vm129_vm8, 1.0, %v8665_v1  ;;  %v8853_v40 = vadd.f32 %v6413_v38, %v6412_v37  ;;  %vm8857_vm2 = vmand %vm161_vm14, %vm10867_vm3 }
  0x11   :  { %7256 = vmatprep.subr.bf16.mxu1 %v8665_v1  ;;  %v10874_v41 = vsel %vm8857_vm2, 4294967295, %v10873_v41  ;;  %vm167_vm9 = vmand %vm10870_vm7, %vm8857_vm2 }
  0x12   :  { %7237 = vmatpush3.bf16.msra.mxu0 %v8211_v7  ;;  %v6415_v42 = vsel %vm167_vm9, 1.0, %v8665_v1 }
  0x13   :  { %7238 = vmatprep.subr.bf16.mxu0 %v8665_v1  ;;  %v8865_v43 = vadd.f32 %v6415_v42, %v6414_v39 }
  0x14   :  { %7257 = vmatpush3.bf16.msra.mxu1 %v8224_v15 }
  0x15   :  { %7258 = vmatprep.subr.bf16.mxu1 %v8665_v1 }
  0x16   :  { %7239 = vmatpush3.bf16.msra.mxu0 %v8212_v9 }
  0x17   :  { %7240 = vmatprep.subr.bf16.mxu0 %v8665_v1 }
  0x18   :  { %7259 = vmatpush3.bf16.msra.mxu1 %v8226_v16 }
  0x19   :  { %7260 = vmatprep.subr.bf16.mxu1 %v8665_v1 }
  0x1a   :  { %7241 = vmatpush3.bf16.msra.mxu0 %v8213_v11 }
  0x1b   :  { %7242 = vmatprep.subr.bf16.mxu0 %v8665_v1 }
  0x1c   :  { %7261 = vmatpush3.bf16.msra.mxu1 %v8228_v19 }
  0x1d   :  { %7262 = vmatprep.subr.bf16.mxu1 %v8665_v1 }
  0x1e   :  { %7243 = vmatpush3.bf16.msra.mxu0 %v8214_v12 }
  0x1f   :  { %7268 = vmatprep.subr.bf16.mxu0 %v8665_v1 }
  0x20   :  { %7263 = vmatpush3.bf16.msra.mxu1 %v8230_v21 }
  0x21   :  { %7245 = vmatmul.mubr.bf16.vlgmr.msra.gmra.mxu0 %v390_v18  ;;  %8200 = vmatprep.subr.bf16.mxu1 %v8665_v1 }
  0x22   :  { %7269 = vmatpush3.bf16.msra.mxu0 %v8215_v17  ;;  %7284 = vmatprep.mubr.msk.bf16.mxu0 %vm10868_vm0, %v8665_v1 }
  0x23   :  { %7270 = vmatprep.subr.bf16.mxu0 %v8665_v1  ;;  %7265 = vmatmul.mubr.bf16.vlgmr.msra.gmra.mxu1 %v390_v18 }
  0x24   :  { %7294 = vmatprep.mubr.msk.bf16.mxu1 %vm10868_vm0, %v8665_v1 }
  0x26   :  { %7271 = vmatpush3.bf16.msra.mxu0 %v8217_v20 }
  0x27   :  { %7272 = vmatprep.subr.bf16.mxu0 %v8665_v1 }
  0x2a   :  { %7273 = vmatpush3.bf16.msra.mxu0 %v8219_v22 }
  0x2b   :  { %7274 = vmatprep.subr.bf16.mxu0 %v8665_v1 }
  0x2e   :  { %7275 = vmatpush3.bf16.msra.mxu0 %v8221_v23 }
  0x2f   :  { %7276 = vmatprep.subr.bf16.mxu0 %v8665_v1 }
  0x32   :  { %7277 = vmatpush3.bf16.msra.mxu0 %v8223_v24 }
  0x33   :  { %7278 = vmatprep.subr.bf16.mxu0 %v8665_v1 }
  0x36   :  { %7279 = vmatpush3.bf16.msra.mxu0 %v8225_v25 }
  0x37   :  { %7280 = vmatprep.subr.bf16.mxu0 %v8665_v1 }
  0x3a   :  { %7281 = vmatpush3.bf16.msra.mxu0 %v8227_v26 }
  0x3b   :  { %7282 = vmatprep.subr.bf16.mxu0 %v8665_v1 }
  0x3e   :  { %7283 = vmatpush3.bf16.msra.mxu0 %v8229_v27 }
  0x3f   :  { %7288 = vmatprep.subr.bf16.mxu0 %v8665_v1 }
  0x41   :  { %7285 = vmatmul.mubr.bf16.vlgmr.msra.gmra.mxu0 %v390_v18 }
  0x42   :  { %7290 = vmatprep.mubr.msk.bf16.mxu0 %vm10868_vm0, %v8665_v1 }
  0x43   :  { %12 = vsyncpa [#allocation3], 0  ;;  %v6420_v44 = vadd.s32 4294967286, %v8822_v30  ;;  %v6421_v45 = vadd.s32 4294967286, %v27_v35  ;;  %v6428_v46 = vadd.s32 4294967276, %v27_v35  ;;  %vm10872_vm10 = vcmp.eq.s32.totalorder %v8824_v31, %v8822_v30  ;;  %s8667_s27 = smov [#allocation2]  }
  0x44   :  { %v6429_v47 = vadd.s32 4294967276, %v28_v36  ;;  %v6436_v48 = vadd.s32 4294967266, %v28_v36  ;;  %vm190_vm15 = vmand %vm38_vm1, %vm10872_vm10  ;;  %vm10875_vm1 = vcmp.ge.s32.totalorder %v28_v36, 30  ;;  %v6452_v52 = vld [vmem:[%s10863_s4] ss:$0 sm:$0xff]  ;;  %v29_v58 = vadd.s32 32, %v8819_v29 }
  0x45   :  { %vm215_vm12 = vcmp.eq.s32.totalorder %v8824_v31, %v6420_v44  ;;  %vm216_vm14 = vcmp.eq.s32.totalorder %v8824_v31, %v6421_v45  ;;  %vm246_vm5 = vcmp.eq.s32.totalorder %v8824_v31, %v6428_v46  ;;  %v6418_v50 = vsel %vm190_vm15, 1.0, %v8665_v1  ;;  %v6461_v9 = vld [vmem:[%s10863_s4 + $0x8] ss:$0 sm:$0xff]  ;;  %v6470_v19 = vld [vmem:[%s10863_s4 + $0x10] ss:$0 sm:$0xff]  ;;  %s6394_s28 = sshll.u32 %s8667_s27, 4  ;;  %s6395_s28 = int_to_ptr.vmem [resolvable:$true] %s6394_s28 }
  0x46   :  { %vm220_vm8 = vmand %vm71_vm6, %vm215_vm12  ;;  %vm247_vm9 = vcmp.eq.s32.totalorder %v8824_v31, %v6429_v47  ;;  %vm277_vm0 = vcmp.eq.s32.totalorder %v8824_v31, %v6436_v48  ;;  %vm716_vm6 = vcmask 1044480   ;;  %v6437_v5 = vadd.s32 4294967266, %v29_v58  ;;  %p8648_p1 = scmp.lt.s32.totalorder %s6395_s28, %s6395_s28 }
  0x47   :  { %vm221_vm3 = vmand %vm77_vm11, %vm216_vm14  ;;  %v6424_v51 = vsel %vm220_vm8, 1.0, %v8665_v1  ;;  %vm302_vm12 = vcmp.lt.s32.totalorder %v8824_v31, 10 }
  0x48   :  { %vm251_vm7 = vmand %vm110_vm13, %vm246_vm5  ;;  %v6425_v54 = vsel %vm221_vm3, 1.0, %v8665_v1  ;;  %v235_v60 = vadd.f32 %v6424_v51, %v6418_v50  ;;  %vm278_vm11 = vcmp.eq.s32.totalorder %v8824_v31, %v6437_v5  ;;  %vm10876_vm13 = vmmov 0   ;;  %v8971_v5 = vld [vmem:[%s10861_s2 + $0x10] sm:$0xff] }
  0x49   :  { %vm252_vm2 = vmand %vm116_vm4, %vm247_vm9  ;;  %v6431_v55 = vsel %vm251_vm7, 1.0, %v8665_v1  ;;  %v6439_v13 = vsel %vm278_vm11, 1.0, %v8665_v1  ;;  %vm10877_vm3 = vcmp.lt.s32.totalorder %v8824_v31, 8  ;;  %vm10878_vm4 = vnez %v10874_v41  ;;  %v8958_v41 = vld [vmem:[%s10861_s2] sm:$0xff] }
  0x4a   :  { %vm282_vm10 = vmand %vm10875_vm1, %vm277_vm0  ;;  %v6432_v56 = vsel %vm252_vm2, 1.0, %v8665_v1  ;;  %vm184_vm0 = vcmp.eq.s32.totalorder %v8824_v31, %v8819_v29  ;;  %v266_v63 = vadd.f32 %v6431_v55, %v6425_v54  ;;  %vm706_vm2 = vcmask 80896  }
  0x4b   :  { %v6438_v57 = vsel %vm282_vm10, 1.0, %v8665_v1  ;;  %v6417_v3 = vsel %vm184_vm0, 1.0, %v8665_v1  ;;  %v8922_v17 = vpack.c.bf16 %v6439_v13, %v6439_v13  ;;  %v8937_v33 = vsel %vm10877_vm3, 1.0, %v8665_v1  ;;  %v8978_v13 = vld [vmem:[%s10861_s2 + $0x18] sm:$0xff]  ;;  %vm304_vm5 = vmand %vm302_vm12, %vm184_vm0 }
  0x4c   :  { %v297_v0 = vadd.f32 %v6438_v57, %v6432_v56  ;;  %v8903_v7 = vpack.c.bf16 %v235_v60, %v6417_v3  ;;  %vm312_vm7 = vcmp.ge.s32.totalorder %v8824_v31, 10  ;;  %vm313_vm10 = vcmp.lt.s32.totalorder %v8824_v31, 20 }
  0x4d   :  { %vm314_vm14 = vmand %vm312_vm7, %vm313_vm10  ;;  %vm10879_vm9 = vcmp.eq.s32.totalorder %v8824_v31, %v8822_v30  ;;  %vm327_vm0 = vcmp.lt.s32.totalorder %v8824_v31, 30 }
  0x4e   :  { %v8905_v8 = vpack.c.bf16 %v297_v0, %v266_v63  ;;  %vm305_vm1 = vmand %vm302_vm12, %vm10879_vm9 }
  0xe1   :  { %v478_v49 = vpop.f32.mrf.mxu0 }
  0xe2   :  { %v479_v61 = vadd.f32 %v6452_v52, %v478_v49 }
  0xe3   :  { %v7246_v53 = vpop.f32.mrf.mxu0  ;;  %v588_v10 = vpop.f32.mrf.mxu1 }
  0xe4   :  { %v589_v12 = vadd.f32 %v6461_v9, %v588_v10 }
  0xe5   :  { %v481_v59 = vpop.f32.mrf.mxu0  ;;  %v7266_v11 = vpop.f32.mrf.mxu1 }
  0xe6   :  { %v482_v62 = vadd.f32 %v6452_v52, %v481_v59  ;;  %v8948_v52 = vsel %vm10878_vm4, 1.0, %v8665_v1  ;;  %vm326_vm4 = vcmp.ge.s32.totalorder %v8824_v31, 20 }
  0xe7   :  { %v7247_v2 = vpop.f32.mrf.mxu0  ;;  %v591_v14 = vpop.f32.mrf.mxu1  ;;  %vm328_vm7 = vmand %vm326_vm4, %vm327_vm0  ;;  %vm995_vm0 = vcmask 1043456  }
  0xe8   :  { %v705_v4 = vpack.c.bf16 %v482_v62, %v479_v61  ;;  %v592_v15 = vadd.f32 %v6461_v9, %v591_v14  ;;  %v8964_v62 = vld [vmem:[%s10861_s2 + $0x8] sm:$0xff] }
  0xe9   :  { %v7267_v16 = vpop.f32.mrf.mxu1 }
  0xea   :  { %v718_v6 = vsel %vm716_vm6, %v705_v4, 0  ;;  %v784_v18 = vpack.c.bf16 %v592_v15, %v589_v12 }
  0xeb   :  { %7289 = vmatpush3.bf16.msra.mxu0 %v718_v6  ;;  %8201 = vmatpush3.bf16.msra.mxu1 %v718_v6 }
  0xec   :  { %7302 = vmatprep.subr.bf16.mxu1 %v8665_v1  ;;  %7316 = vmatprep.subr.bf16.mxu0 %v8665_v1 }
  0xee   :  { %7291 = vmatmul.mubr.msk.bf16.vlgmr.msra.gmra.mxu0 %vm706_vm2, %v8903_v7  ;;  %7295 = vmatmul.mubr.msk.bf16.vlgmr.msra.gmra.mxu1 %vm706_vm2, %v8905_v8 }
  0xef   :  { %7298 = vmatprep.mubr.msk.bf16.mxu1 %vm10876_vm13, %v8665_v1  ;;  %7318 = vmatprep.mubr.msk.bf16.mxu0 %vm10876_vm13, %v8665_v1 }
  0xf0   :  { %7303 = vmatpush3.bf16.xpose.msra.mxu1 %v784_v18 }
  0xf1   :  { %7330 = vmatprep.subr.bf16.mxu1 %v8665_v1 }
  0xf6   :  { %7299 = vmatmul.mubr.msk.bf16.gmra.mxu1 %vm706_vm2, %v8922_v17 }
  0xf7   :  { %7304 = vmatprep.mubr.msk.bf16.mxu1 %vm10876_vm13, %v8665_v1 }
 0x101   :  { %v698_v20 = vpop.f32.mrf.mxu0 }
 0x102   :  { %v699_v22 = vadd.f32 %v6470_v19, %v698_v20  ;;  %v8985_v20 = vld [vmem:[%s10861_s2 + $0x20] sm:$0xff] }
 0x103   :  { %v7286_v21 = vpop.f32.mrf.mxu0 }
 0x105   :  { %v701_v23 = vpop.f32.mrf.mxu0 }
 0x106   :  { %v702_v24 = vadd.f32 %v6470_v19, %v701_v23 }
 0x107   :  { %v7287_v25 = vpop.f32.mrf.mxu0 }
 0x108   :  { %v914_v26 = vpack.c.bf16 %v702_v24, %v699_v22 }
 0x10a   :  { %v925_v27 = vsel %vm716_vm6, %v914_v26, 0 }
 0x10b   :  { %7317 = vmatpush3.bf16.msra.mxu0 %v925_v27 }
 0x10c   :  { %7340 = vmatprep.subr.bf16.mxu0 %v8665_v1 }
 0x1ae   :  { %v754_v28 = vpop.f32.mrf.mxu0  ;;  %v762_v32 = vpop.f32.mrf.mxu1 }
 0x1af   :  { %v776_v39 = vmul.f32 %v8937_v33, %v754_v28  ;;  %v778_v49 = vmul.f32 %v762_v32, %v8853_v40 }
 0x1b0   :  { %v7292_v35 = vpop.f32.mrf.mxu0  ;;  %v7296_v36 = vpop.f32.mrf.mxu1 }
 0x1b2   :  { %v757_v37 = vpop.f32.mrf.mxu0  ;;  %v765_v38 = vpop.f32.mrf.mxu1 }
 0x1b3   :  { %v777_v42 = vmul.f32 %v757_v37, %v8839_v34  ;;  %v779_v50 = vmul.f32 %v765_v38, %v8865_v43 }
 0x1b4   :  { %v7293_v44 = vpop.f32.mrf.mxu0  ;;  %v7297_v45 = vpop.f32.mrf.mxu1 }
 0x1b5   :  { %v781_v46 = vpack.c.bf16 %v777_v42, %v776_v39  ;;  %v782_v54 = vpack.c.bf16 %v779_v50, %v778_v49 }
 0x1b6   :  { %v770_v47 = vpop.f32.mrf.mxu1 }
 0x1b7   :  { %7305 = vmatmul.mubr.bf16.vlgmr.msra.gmra.mxu1 %v781_v46  ;;  %v780_v55 = vmul.f32 %v8948_v52, %v770_v47 }
 0x1b8   :  { %7308 = vmatprep.mubr.msk.bf16.mxu1 %vm10876_vm13, %v8665_v1  ;;  %v7300_v48 = vpop.f32.mrf.mxu1 }
 0x1b9   :  { %v783_v56 = vpack.c.bf16 %v780_v55, %v780_v55 }
 0x1ba   :  { %v773_v51 = vpop.f32.mrf.mxu1 }
 0x1bc   :  { %v7301_v53 = vpop.f32.mrf.mxu1 }
 0x1bf   :  { %7309 = vmatmul.mubr.bf16.gmra.mxu1 %v782_v54 }
 0x1c0   :  { %7312 = vmatprep.mubr.msk.bf16.mxu1 %vm10876_vm13, %v8665_v1 }
 0x1c7   :  { %7313 = vmatmul.mubr.bf16.gmra.mxu1 %v783_v56 }
 0x1c8   :  { %7336 = vmatprep.mubr.msk.bf16.mxu1 %vm10876_vm13, %v8665_v1 }
 0x277   :  { %v819_v57 = vpop.f32.mrf.mxu1 }
 0x278   :  { %v841_v58 = vmul.f32 0.35355338, %v819_v57 }
 0x279   :  { %v7306_v59 = vpop.f32.mrf.mxu1 }
 0x27a   :  { %v846_v60 = vadd.f32 %v841_v58, %v8958_v41 }
 0x27b   :  { %v822_v61 = vpop.f32.mrf.mxu1 }
 0x27c   :  { %v842_v63 = vmul.f32 0.35355338, %v822_v61  ;;  %v851_v0 = vsel %vm706_vm2, %v846_v60, -inf }
 0x27d   :  { %852 = vmax.xlane.f32.xlu0 %v851_v0  ;;  %v7307_v2 = vpop.f32.mrf.mxu1 }
 0x27e   :  { %v847_v3 = vadd.f32 %v842_v63, %v8964_v62 }
 0x27f   :  { %v827_v4 = vpop.f32.mrf.mxu1 }
 0x280   :  { %v843_v6 = vmul.f32 0.35355338, %v827_v4  ;;  %v854_v9 = vsel %vm706_vm2, %v847_v3, -inf }
 0x281   :  { %855 = vmax.xlane.f32.xlu0 %v854_v9  ;;  %v7310_v10 = vpop.f32.mrf.mxu1 }
 0x282   :  { %v848_v11 = vadd.f32 %v843_v6, %v8971_v5 }
 0x283   :  { %v830_v12 = vpop.f32.mrf.mxu1 }
 0x284   :  { %v844_v14 = vmul.f32 0.35355338, %v830_v12  ;;  %v857_v15 = vsel %vm706_vm2, %v848_v11, -inf }
 0x285   :  { %858 = vmax.xlane.f32.xlu1 %v857_v15  ;;  %v7311_v16 = vpop.f32.mrf.mxu1 }
 0x286   :  { %v849_v18 = vadd.f32 %v844_v14, %v8978_v13 }
 0x287   :  { %v835_v19 = vpop.f32.mrf.mxu1 }
 0x288   :  { %v845_v21 = vmul.f32 0.35355338, %v835_v19  ;;  %v860_v22 = vsel %vm706_vm2, %v849_v18, -inf }
 0x289   :  { %861 = vmax.xlane.f32.xlu1 %v860_v22  ;;  %v7314_v23 = vpop.f32.mrf.mxu1 }
 0x28a   :  { %v850_v24 = vadd.f32 %v845_v21, %v8985_v20 }
 0x28b   :  { %v838_v25 = vpop.f32.mrf.mxu1 }
 0x28c   :  { %v863_v26 = vsel %vm706_vm2, %v850_v24, -inf  ;;  %v6440_v25 = vsel %vm304_vm5, 1.0, %v8665_v1  ;;  %vm340_vm5 = vcmp.ge.s32.totalorder %v8824_v31, 30 }
 0x28d   :  { %864 = vmax.xlane.f32.xlu0 %v863_v26  ;;  %v7315_v27 = vpop.f32.mrf.mxu1 }
 0x28e   :  { %v6441_v27 = vsel %vm305_vm1, 1.0, %v8665_v1 }
 0x306   :  { %v853_v28 = vpop.xlane.xlu0 %852 }
 0x307   :  { %v866_v32 = vsub.f32 %v846_v60, %v853_v28  ;;  %v6445_v28 = vadd.s32 4294967276, %v8824_v31 }
 0x309   :  { %v871_v35 = vmul.f32 1.442695, %v866_v32  ;;  %vm330_vm10 = vcmp.eq.s32.totalorder %v6445_v28, %v8819_v29  ;;  %vm331_vm12 = vcmp.eq.s32.totalorder %v6445_v28, %v8822_v30 }
 0x30a   :  { %v856_v36 = vpop.xlane.xlu0 %855 }
 0x30b   :  { %8471 = vpow2.f32 %v871_v35  ;;  %v867_v37 = vsub.f32 %v847_v3, %v856_v36  ;;  %v6448_v36 = vadd.s32 4294967266, %v8824_v31 }
 0x30d   :  { %v873_v38 = vmul.f32 1.442695, %v867_v37  ;;  %vm344_vm9 = vcmp.eq.s32.totalorder %v6448_v36, %v8819_v29  ;;  %vm345_vm1 = vcmp.eq.s32.totalorder %v6448_v36, %v8822_v30  ;;  %v8631_v36 = vld [vmem:[%s10859_s0] sm:$0xff] }
 0x30e   :  { %v859_v39 = vpop.xlane.xlu1 %858 }
 0x30f   :  { %8473 = vpow2.f32 %v873_v38  ;;  %v868_v42 = vsub.f32 %v848_v11, %v859_v39 }
 0x311   :  { %v875_v44 = vmul.f32 1.442695, %v868_v42 }
 0x312   :  { %v862_v45 = vpop.xlane.xlu1 %861 }
 0x313   :  { %8475 = vpow2.f32 %v875_v44  ;;  %v869_v46 = vsub.f32 %v849_v18, %v862_v45 }
 0x315   :  { %v877_v47 = vmul.f32 1.442695, %v869_v46 }
 0x316   :  { %v865_v48 = vpop.xlane.xlu0 %864 }
 0x317   :  { %8477 = vpow2.f32 %v877_v47  ;;  %v870_v49 = vsub.f32 %v850_v24, %v865_v48  ;;  %v6442_v24 = vadd.s32 4294967286, %v8824_v31 }
 0x318   :  { %v8472_v50 = vpop.eup %8471 }
 0x319   :  { %v879_v51 = vmul.f32 1.442695, %v870_v49  ;;  %v881_v53 = vsel %vm706_vm2, %v8472_v50, 0.0  ;;  %vm316_vm15 = vcmp.eq.s32.totalorder %v6442_v24, %v8819_v29  ;;  %vm317_vm11 = vcmp.eq.s32.totalorder %v6442_v24, %v8822_v30  ;;  %v8231_v29 = vld [vmem:[%s10862_s3 + $0xf8] sm:$0xff]   ;;  %v8232_v30 = vld [vmem:[%s10862_s3 + $0xf0] sm:$0xff]  }
 0x31a   :  { %882 = vadd.xlane.f32.xlu1 %v881_v53  ;;  %vm318_vm8 = vmand %vm314_vm14, %vm316_vm15  ;;  %v8235_v53 = vld [vmem:[%s10862_s3 + $0xd8] sm:$0xff]  }
 0x31b   :  { %8479 = vpow2.f32 %v879_v51  ;;  %v6443_v26 = vsel %vm318_vm8, 1.0, %v8665_v1  ;;  %vm319_vm3 = vmand %vm314_vm14, %vm317_vm11  ;;  %vm341_vm8 = vcmp.lt.s32.totalorder %v8824_v31, 40  ;;  %v8234_v51 = vld [vmem:[%s10862_s3 + $0xe0] sm:$0xff]  }
 0x31c   :  { %v8474_v54 = vpop.eup %8473  ;;  %v324_v32 = vadd.f32 %v6443_v26, %v6440_v25  ;;  %v6444_v35 = vsel %vm319_vm3, 1.0, %v8665_v1  ;;  %vm332_vm15 = vmand %vm328_vm7, %vm330_vm10  ;;  %vm1157_vm10 = vcmask 1041408  }
 0x31d   :  { %v884_v55 = vsel %vm706_vm2, %v8474_v54, 0.0  ;;  %v325_v37 = vadd.f32 %v6444_v35, %v6441_v27  ;;  %vm333_vm14 = vmand %vm328_vm7, %vm331_vm12  ;;  %v6446_v38 = vsel %vm332_vm15, 1.0, %v8665_v1  ;;  %vm991_vm7 = vcmask 326656   ;;  %v6486_v27 = vld [vmem:[%s10863_s4 + $0x18] ss:$0 sm:$0xff] }
 0x31e   :  { %885 = vadd.xlane.f32.xlu0 %v884_v55  ;;  %v6447_v39 = vsel %vm333_vm14, 1.0, %v8665_v1  ;;  %v338_v42 = vadd.f32 %v6446_v38, %v324_v32  ;;  %vm342_vm11 = vmand %vm340_vm5, %vm341_vm8  ;;  %vm10880_vm12 = vcmp.lt.s32.totalorder %v8824_v31, 32  ;;  %v8239_v31 = vld [vmem:[%s10862_s3 + $0x138] sm:$0xff]  }
 0x31f   :  { %v339_v44 = vadd.f32 %v6447_v39, %v325_v37  ;;  %vm346_vm3 = vmand %vm342_vm11, %vm344_vm9 }
 0x320   :  { %v8476_v56 = vpop.eup %8475  ;;  %vm347_vm4 = vmand %vm342_vm11, %vm345_vm1  ;;  %v6449_v45 = vsel %vm346_vm3, 1.0, %v8665_v1 }
 0x321   :  { %v887_v57 = vsel %vm706_vm2, %v8476_v56, 0.0  ;;  %v6450_v46 = vsel %vm347_vm4, 1.0, %v8665_v1  ;;  %v352_v47 = vadd.f32 %v6449_v45, %v338_v42 }
 0x322   :  { %888 = vadd.xlane.f32.xlu1 %v887_v57  ;;  %v353_v48 = vadd.f32 %v6450_v46, %v339_v44  ;;  %v8632_v44 = vld [vmem:[%s10859_s0 + $0x8] sm:$0x3] }
 0x324   :  { %v8478_v58 = vpop.eup %8477  ;;  %v9054_v49 = vpack.c.bf16 %v353_v48, %v352_v47 }
 0x325   :  { %v890_v59 = vsel %vm706_vm2, %v8478_v58, 0.0 }
 0x326   :  { %891 = vadd.xlane.f32.xlu0 %v890_v59 }
 0x328   :  { %v8480_v60 = vpop.eup %8479 }
 0x329   :  { %v893_v61 = vsel %vm706_vm2, %v8480_v60, 0.0 }
 0x32a   :  { %894 = vadd.xlane.f32.xlu1 %v893_v61 }
 0x3a3   :  { %v883_v63 = vpop.xlane.xlu1 %882 }
 0x3a4   :  { %8481 = vrcp.f32 %v883_v63 }
 0x3a7   :  { %v886_v0 = vpop.xlane.xlu0 %885 }
 0x3a8   :  { %8483 = vrcp.f32 %v886_v0 }
 0x3ab   :  { %v889_v2 = vpop.xlane.xlu1 %888 }
 0x3ac   :  { %8485 = vrcp.f32 %v889_v2 }
 0x3af   :  { %v892_v3 = vpop.xlane.xlu0 %891 }
 0x3b0   :  { %8487 = vrcp.f32 %v892_v3 }
 0x3b1   :  { %v8482_v4 = vpop.eup %8481 }
 0x3b2   :  { %v901_v6 = vmul.f32 %v8482_v4, %v8472_v50  ;;  %v8233_v50 = vld [vmem:[%s10862_s3 + $0xe8] sm:$0xff]  }
 0x3b3   :  { %v895_v9 = vpop.xlane.xlu1 %894 }
 0x3b4   :  { %8489 = vrcp.f32 %v895_v9  ;;  %906 = vst.msk [vmem:[%s10865_s6] sm:$0xff] %vm706_vm2, %v901_v6 }
 0x3b5   :  { %v8484_v10 = vpop.eup %8483 }
 0x3b6   :  { %v902_v11 = vmul.f32 %v8484_v10, %v8474_v54  ;;  %v8236_v54 = vld [vmem:[%s10862_s3 + $0xd0] sm:$0xff]  }
 0x3b8   :  { %907 = vst.msk [vmem:[%s10865_s6 + $0x8] sm:$0xff] %vm706_vm2, %v902_v11  ;;  %v911_v12 = vpack.c.bf16 %v902_v11, %v901_v6 }
 0x3b9   :  { %v8486_v14 = vpop.eup %8485 }
 0x3ba   :  { %7319 = vmatmul.mubr.msk.bf16.vlgmr.msra.gmra.mxu0 %vm706_vm2, %v911_v12  ;;  %v903_v15 = vmul.f32 %v8486_v14, %v8476_v56 }
 0x3bb   :  { %7322 = vmatprep.mubr.msk.bf16.mxu0 %vm10876_vm13, %v8665_v1  ;;  %7341 = vmatpush3.bf16.msra.mxu0 %v8231_v29  ;;  %v9116_v29 = vsel %vm10880_vm12, 1.0, %v8665_v1 }
 0x3bc   :  { %908 = vst.msk [vmem:[%s10865_s6 + $0x10] sm:$0xff] %vm706_vm2, %v903_v15  ;;  %7342 = vmatprep.subr.bf16.mxu0 %v8665_v1 }
 0x3bd   :  { %v8488_v16 = vpop.eup %8487 }
 0x3be   :  { %v904_v18 = vmul.f32 %v8488_v16, %v8478_v58 }
 0x3bf   :  { %7343 = vmatpush3.bf16.msra.mxu0 %v8232_v30 }
 0x3c0   :  { %909 = vst.msk [vmem:[%s10865_s6 + $0x18] sm:$0xff] %vm706_vm2, %v904_v18  ;;  %v912_v19 = vpack.c.bf16 %v904_v18, %v903_v15  ;;  %7344 = vmatprep.subr.bf16.mxu0 %v8665_v1 }
 0x3c1   :  { %v8490_v21 = vpop.eup %8489 }
 0x3c2   :  { %7323 = vmatmul.mubr.msk.bf16.gmra.mxu0 %vm706_vm2, %v912_v19  ;;  %v905_v22 = vmul.f32 %v8490_v21, %v8480_v60  ;;  %v8237_v19 = vld [vmem:[%s10862_s3 + $0xc8] sm:$0xff]   ;;  %v8238_v21 = vld [vmem:[%s10862_s3 + $0xc0] sm:$0xff]  }
 0x3c3   :  { %7326 = vmatprep.mubr.msk.bf16.mxu0 %vm10876_vm13, %v8665_v1  ;;  %7345 = vmatpush3.bf16.msra.mxu0 %v8233_v50 }
 0x3c4   :  { %910 = vst.msk [vmem:[%s10865_s6 + $0x20] sm:$0xff] %vm706_vm2, %v905_v22  ;;  %v913_v23 = vpack.c.bf16 %v905_v22, %v905_v22  ;;  %7346 = vmatprep.subr.bf16.mxu0 %v8665_v1 }
 0x3c7   :  { %7347 = vmatpush3.bf16.msra.mxu0 %v8234_v51 }
 0x3c8   :  { %7348 = vmatprep.subr.bf16.mxu0 %v8665_v1 }
 0x3ca   :  { %7327 = vmatmul.mubr.msk.bf16.gmra.mxu0 %vm706_vm2, %v913_v23 }
 0x3cb   :  { %7356 = vmatprep.mubr.msk.bf16.mxu0 %vm10876_vm13, %v8665_v1  ;;  %7349 = vmatpush3.bf16.msra.mxu0 %v8235_v53 }
 0x3cc   :  { %7350 = vmatprep.subr.bf16.mxu0 %v8665_v1 }
 0x3cf   :  { %7351 = vmatpush3.bf16.msra.mxu0 %v8236_v54 }
 0x3d0   :  { %7352 = vmatprep.subr.bf16.mxu0 %v8665_v1 }
 0x3d3   :  { %7353 = vmatpush3.bf16.msra.mxu0 %v8237_v19 }
 0x3d4   :  { %7354 = vmatprep.subr.bf16.mxu0 %v8665_v1 }
 0x3d7   :  { %7355 = vmatpush3.bf16.msra.mxu0 %v8238_v21 }
 0x3d8   :  { %7380 = vmatprep.subr.bf16.mxu0 %v8665_v1 }
 0x47a   :  { %v961_v55 = vpop.f32.mrf.mxu0 }
 0x47b   :  { %v983_v16 = vmul.f32 %v8937_v33, %v961_v55 }
 0x47c   :  { %v7320_v56 = vpop.f32.mrf.mxu0 }
 0x47e   :  { %v964_v57 = vpop.f32.mrf.mxu0 }
 0x47f   :  { %v984_v14 = vmul.f32 %v964_v57, %v8839_v34 }
 0x480   :  { %v7321_v58 = vpop.f32.mrf.mxu0 }
 0x481   :  { %v988_v18 = vpack.c.bf16 %v984_v14, %v983_v16 }
 0x482   :  { %v969_v59 = vpop.f32.mrf.mxu0 }
 0x483   :  { %v985_v11 = vmul.f32 %v969_v59, %v8853_v40  ;;  %v8240_v59 = vld [vmem:[%s10862_s3 + $0x130] sm:$0xff]  }
 0x484   :  { %v7324_v60 = vpop.f32.mrf.mxu0 }
 0x485   :  { %v8241_v60 = vld [vmem:[%s10862_s3 + $0x128] sm:$0xff]  }
 0x486   :  { %v972_v61 = vpop.f32.mrf.mxu0 }
 0x487   :  { %v986_v6 = vmul.f32 %v972_v61, %v8865_v43  ;;  %v8242_v61 = vld [vmem:[%s10862_s3 + $0x120] sm:$0xff]  }
 0x488   :  { %v7325_v63 = vpop.f32.mrf.mxu0 }
 0x489   :  { %v989_v15 = vpack.c.bf16 %v986_v6, %v985_v11  ;;  %v8243_v63 = vld [vmem:[%s10862_s3 + $0x118] sm:$0xff]   ;;  %v8248_v6 = vld [vmem:[%s10862_s3 + $0x170] sm:$0xff]  }
 0x48a   :  { %v977_v0 = vpop.f32.mrf.mxu0  ;;  %v8251_v11 = vld [vmem:[%s10862_s3 + $0x158] sm:$0xff]  }
 0x48b   :  { %v987_v2 = vmul.f32 %v8948_v52, %v977_v0  ;;  %v8244_v0 = vld [vmem:[%s10862_s3 + $0x110] sm:$0xff]  }
 0x48c   :  { %v7328_v3 = vpop.f32.mrf.mxu0 }
 0x48d   :  { %v990_v4 = vpack.c.bf16 %v987_v2, %v987_v2  ;;  %v8245_v2 = vld [vmem:[%s10862_s3 + $0x108] sm:$0xff]   ;;  %v8246_v3 = vld [vmem:[%s10862_s3 + $0x100] sm:$0xff]  }
 0x48e   :  { %v980_v9 = vpop.f32.mrf.mxu0 }
 0x48f   :  { %v997_v10 = vsel %vm995_vm0, %v990_v4, 0  ;;  %v8247_v4 = vld [vmem:[%s10862_s3 + $0x178] sm:$0xff]   ;;  %v8249_v9 = vld [vmem:[%s10862_s3 + $0x168] sm:$0xff]  }
 0x490   :  { %v7329_v12 = vpop.f32.mrf.mxu0  ;;  %7331 = vmatpush3.bf16.msra.mxu1 %v997_v10  ;;  %v8250_v10 = vld [vmem:[%s10862_s3 + $0x160] sm:$0xff]  }
 0x491   :  { %7332 = vmatprep.subr.bf16.mxu1 %v8665_v1 }
 0x494   :  { %7333 = vmatpush3.bf16.msra.mxu1 %v989_v15 }
 0x495   :  { %7334 = vmatprep.subr.bf16.mxu1 %v8665_v1 }
 0x498   :  { %7335 = vmatpush3.bf16.msra.mxu1 %v988_v18 }
 0x499   :  { %7360 = vmatprep.subr.bf16.mxu1 %v8665_v1 }
 0x49b   :  { %7337 = vmatmul.mubr.msk.bf16.vlgmr.msra.gmra.mxu1 %vm991_vm7, %v9054_v49 }
 0x49c   :  { %7376 = vmatprep.mubr.msk.bf16.mxu1 %vm10876_vm13, %v8665_v1  ;;  %7361 = vmatpush3.bf16.msra.mxu1 %v8239_v31 }
 0x49d   :  { %7362 = vmatprep.subr.bf16.mxu1 %v8665_v1 }
 0x4a0   :  { %7363 = vmatpush3.bf16.msra.mxu1 %v8240_v59 }
 0x4a1   :  { %7364 = vmatprep.subr.bf16.mxu1 %v8665_v1 }
 0x4a4   :  { %7365 = vmatpush3.bf16.msra.mxu1 %v8241_v60 }
 0x4a5   :  { %7366 = vmatprep.subr.bf16.mxu1 %v8665_v1 }
 0x4a8   :  { %7367 = vmatpush3.bf16.msra.mxu1 %v8242_v61 }
 0x4a9   :  { %7368 = vmatprep.subr.bf16.mxu1 %v8665_v1 }
 0x4ac   :  { %7369 = vmatpush3.bf16.msra.mxu1 %v8243_v63 }
 0x4ad   :  { %7370 = vmatprep.subr.bf16.mxu1 %v8665_v1 }
 0x4b0   :  { %7371 = vmatpush3.bf16.msra.mxu1 %v8244_v0 }
 0x4b1   :  { %7372 = vmatprep.subr.bf16.mxu1 %v8665_v1 }
 0x4b4   :  { %7373 = vmatpush3.bf16.msra.mxu1 %v8245_v2 }
 0x4b5   :  { %7374 = vmatprep.subr.bf16.mxu1 %v8665_v1 }
 0x4b8   :  { %7375 = vmatpush3.bf16.msra.mxu1 %v8246_v3 }
 0x4b9   :  { %7400 = vmatprep.subr.bf16.mxu1 %v8665_v1 }
 0x55b   :  { %v1033_v22 = vpop.f32.mrf.mxu1 }
 0x55d   :  { %v7338_v23 = vpop.f32.mrf.mxu1 }
 0x55e   :  { %v6495_v23 = vld [vmem:[%s10863_s4 + $0x20] ss:$0 sm:$0xff] }
 0x55f   :  { %v1036_v24 = vpop.f32.mrf.mxu1 }
 0x560   :  { %v1056_v25 = vpack.c.bf16 %v1036_v24, %v1033_v22 }
 0x561   :  { %v7339_v26 = vpop.f32.mrf.mxu1 }
 0x562   :  { %7357 = vmatmul.mubr.bf16.vlgmr.msra.gmra.mxu0 %v1056_v25 }
 0x563   :  { %7396 = vmatprep.mubr.msk.bf16.mxu0 %vm10876_vm13, %v8665_v1  ;;  %7381 = vmatpush3.bf16.msra.mxu0 %v8247_v4 }
 0x564   :  { %7382 = vmatprep.subr.bf16.mxu0 %v8665_v1 }
 0x567   :  { %7383 = vmatpush3.bf16.msra.mxu0 %v8248_v6 }
 0x568   :  { %7384 = vmatprep.subr.bf16.mxu0 %v8665_v1 }
 0x56b   :  { %7385 = vmatpush3.bf16.msra.mxu0 %v8249_v9 }
 0x56c   :  { %7386 = vmatprep.subr.bf16.mxu0 %v8665_v1 }
 0x56f   :  { %7387 = vmatpush3.bf16.msra.mxu0 %v8250_v10 }
 0x570   :  { %7388 = vmatprep.subr.bf16.mxu0 %v8665_v1 }
 0x573   :  { %7389 = vmatpush3.bf16.msra.mxu0 %v8251_v11 }
 0x574   :  { %7390 = vmatprep.subr.bf16.mxu0 %v8665_v1 }
 0x622   :  { %v1144_v28 = vpop.f32.mrf.mxu0 }
 0x623   :  { %v1145_v32 = vadd.f32 %v6486_v27, %v1144_v28 }
 0x624   :  { %v7358_v35 = vpop.f32.mrf.mxu0 }
 0x625   :  { %v1151_v37 = vadd.f32 %v8631_v36, %v1145_v32 }
 0x626   :  { %v1147_v38 = vpop.f32.mrf.mxu0 }
 0x627   :  { %v1148_v39 = vadd.f32 %v6486_v27, %v1147_v38  ;;  %1155 = vadd.xlane.f32.xlu1 %v1151_v37  ;;  %v6496_v27 = vld [vmem:[%s10863_s4 + $0x28] ss:$0 sm:$0xff] }
 0x628   :  { %v7359_v42 = vpop.f32.mrf.mxu0  ;;  %v8253_v38 = vld [vmem:[%s10862_s3 + $0x148] sm:$0xff]  }
 0x629   :  { %v1152_v45 = vadd.f32 %v8632_v44, %v1148_v39  ;;  %v8254_v39 = vld [vmem:[%s10862_s3 + $0x140] sm:$0xff]   ;;  %v6497_v42 = vld [vmem:[%s10863_s4 + $0x30] ss:$0 sm:$0xff] }
 0x62b   :  { %v1158_v46 = vsel %vm1157_vm10, %v1152_v45, 0.0 }
 0x62c   :  { %1159 = vadd.xlane.f32.xlu0 %v1158_v46 }
 0x6b0   :  { %v1156_v47 = vpop.xlane.xlu1 %1155 }
 0x6b1   :  { %v1161_v48 = vmul.f32 0.03125, %v1156_v47 }
 0x6b3   :  { %v1163_v30 = vsub.f32 %v1151_v37, %v1161_v48  ;;  %v8252_v37 = vld [vmem:[%s10862_s3 + $0x150] sm:$0xff]  }
 0x6b4   :  { %7391 = vmatpush3.bf16.msra.mxu0 %v8252_v37  ;;  %v8269_v37 = vld [vmem:[%s10862_s3 + $0x180] sm:$0xff]  }
 0x6b5   :  { %v1160_v50 = vpop.xlane.xlu0 %1159  ;;  %v1165_v51 = vmul.f32 %v9116_v29, %v1163_v30  ;;  %7392 = vmatprep.subr.bf16.mxu0 %v8665_v1 }
 0x6b6   :  { %v1162_v53 = vmul.f32 0.03125, %v1160_v50 }
 0x6b7   :  { %v1167_v54 = vmul.f32 %v1165_v51, %v1165_v51 }
 0x6b8   :  { %v1164_v55 = vsub.f32 %v1152_v45, %v1162_v53  ;;  %7393 = vmatpush3.bf16.msra.mxu0 %v8253_v38  ;;  %v8270_v38 = vld [vmem:[%s10862_s3 + $0x1c0] sm:$0xff]  }
 0x6b9   :  { %1169 = vadd.xlane.f32.xlu0 %v1167_v54  ;;  %7394 = vmatprep.subr.bf16.mxu0 %v8665_v1  ;;  %v6506_v54 = vld [vmem:[%s10863_s4 + $0x38] ss:$0 sm:$0xff] }
 0x6ba   :  { %v1166_v56 = vmul.f32 %v9116_v29, %v1164_v55 }
 0x6bc   :  { %v1168_v57 = vmul.f32 %v1166_v56, %v1166_v56  ;;  %7395 = vmatpush3.bf16.msra.mxu0 %v8254_v39 }
 0x6bd   :  { %7420 = vmatprep.subr.bf16.mxu0 %v8665_v1 }
 0x6be   :  { %v1171_v58 = vsel %vm1157_vm10, %v1168_v57, 0.0 }
 0x6bf   :  { %1172 = vadd.xlane.f32.xlu1 %v1171_v58 }
 0x742   :  { %v1170_v12 = vpop.xlane.xlu0 %1169 }
 0x743   :  { %v1174_v14 = vmul.f32 0.03125, %v1170_v12 }
 0x745   :  { %v1176_v15 = vadd.f32 1e-05, %v1174_v14 }
 0x747   :  { %8491 = vrsqrt.f32 %v1176_v15 }
 0x748   :  { %v1173_v16 = vpop.xlane.xlu1 %1172 }
 0x749   :  { %v1175_v18 = vmul.f32 0.03125, %v1173_v16  ;;  %v8255_v16 = vld [vmem:[%s10862_s3 + $0x1b8] sm:$0xff]  }
 0x74b   :  { %v1177_v19 = vadd.f32 1e-05, %v1175_v18  ;;  %v8256_v18 = vld [vmem:[%s10862_s3 + $0x1f8] sm:$0xff]  }
 0x74d   :  { %8493 = vrsqrt.f32 %v1177_v19  ;;  %v8257_v19 = vld [vmem:[%s10862_s3 + $0x1b0] sm:$0xff]  }
 0x754   :  { %v8492_v21 = vpop.eup %8491 }
 0x755   :  { %v1180_v22 = vmul.f32 %v8492_v21, %v1165_v51  ;;  %v8258_v21 = vld [vmem:[%s10862_s3 + $0x1f0] sm:$0xff]  }
 0x757   :  { %v1186_v26 = vmul.f32 %v6495_v23, %v1180_v22  ;;  %v8259_v22 = vld [vmem:[%s10862_s3 + $0x1a8] sm:$0xff]  }
 0x759   :  { %v1192_v32 = vadd.f32 %v6496_v27, %v1186_v26  ;;  %v8263_v26 = vld [vmem:[%s10862_s3 + $0x198] sm:$0xff]  }
 0x75a   :  { %v8494_v24 = vpop.eup %8493 }
 0x75b   :  { %v1181_v25 = vmul.f32 %v8494_v24, %v1166_v56  ;;  %v8261_v24 = vld [vmem:[%s10862_s3 + $0x1a0] sm:$0xff]  }
 0x75d   :  { %v1187_v28 = vmul.f32 %v6495_v23, %v1181_v25  ;;  %v8260_v23 = vld [vmem:[%s10862_s3 + $0x1e8] sm:$0xff]   ;;  %v8262_v25 = vld [vmem:[%s10862_s3 + $0x1e0] sm:$0xff]  }
 0x75f   :  { %v1193_v35 = vadd.f32 %v6496_v27, %v1187_v28  ;;  %v8264_v27 = vld [vmem:[%s10862_s3 + $0x1d8] sm:$0xff]   ;;  %v8265_v28 = vld [vmem:[%s10862_s3 + $0x190] sm:$0xff]  }
 0x761   :  { %v1210_v36 = vpack.c.bf16 %v1193_v35, %v1192_v32 }
 0x763   :  { %7377 = vmatmul.mubr.bf16.vlgmr.msra.gmra.mxu1 %v1210_v36  ;;  %v8268_v36 = vld [vmem:[%s10862_s3 + $0x1c8] sm:$0xff]  }
 0x764   :  { %7416 = vmatprep.mubr.msk.bf16.mxu1 %vm10876_vm13, %v8665_v1  ;;  %7401 = vmatpush3.bf16.msra.mxu1 %v8255_v16 }
 0x765   :  { %7402 = vmatprep.subr.bf16.mxu1 %v8665_v1 }
 0x768   :  { %7403 = vmatpush3.bf16.msra.mxu1 %v8257_v19 }
 0x769   :  { %7404 = vmatprep.subr.bf16.mxu1 %v8665_v1 }
 0x76c   :  { %7405 = vmatpush3.bf16.msra.mxu1 %v8259_v22 }
 0x76d   :  { %7406 = vmatprep.subr.bf16.mxu1 %v8665_v1 }
 0x770   :  { %7407 = vmatpush3.bf16.msra.mxu1 %v8261_v24 }
 0x771   :  { %7408 = vmatprep.subr.bf16.mxu1 %v8665_v1 }
 0x774   :  { %7409 = vmatpush3.bf16.msra.mxu1 %v8263_v26 }
 0x775   :  { %7410 = vmatprep.subr.bf16.mxu1 %v8665_v1 }
 0x778   :  { %7411 = vmatpush3.bf16.msra.mxu1 %v8265_v28 }
 0x779   :  { %7412 = vmatprep.subr.bf16.mxu1 %v8665_v1 }
 0x823   :  { %v1298_v44 = vpop.f32.mrf.mxu1 }
 0x824   :  { %v1299_v46 = vadd.f32 %v6497_v42, %v1298_v44 }
 0x825   :  { %v7378_v45 = vpop.f32.mrf.mxu1 }
 0x826   :  { %v1305_v50 = vmax.f32 %v1299_v46, 0.0 }
 0x827   :  { %v1301_v47 = vpop.f32.mrf.mxu1 }
 0x828   :  { %v1302_v48 = vadd.f32 %v6497_v42, %v1301_v47 }
 0x829   :  { %v7379_v30 = vpop.f32.mrf.mxu1 }
 0x82a   :  { %v1306_v51 = vmax.f32 %v1302_v48, 0.0 }
 0x82c   :  { %v1323_v53 = vpack.c.bf16 %v1306_v51, %v1305_v50  ;;  %v6515_v50 = vld [vmem:[%s10863_s4 + $0x40] ss:$0 sm:$0xff] }
 0x82e   :  { %7397 = vmatmul.mubr.bf16.vlgmr.msra.gmra.mxu0 %v1323_v53 }
 0x82f   :  { %7436 = vmatprep.mubr.msk.bf16.mxu0 %vm10876_vm13, %v8665_v1  ;;  %7421 = vmatpush3.bf16.msra.mxu0 %v8256_v18 }
 0x830   :  { %7422 = vmatprep.subr.bf16.mxu0 %v8665_v1 }
 0x833   :  { %7423 = vmatpush3.bf16.msra.mxu0 %v8258_v21 }
 0x834   :  { %7424 = vmatprep.subr.bf16.mxu0 %v8665_v1 }
 0x837   :  { %7425 = vmatpush3.bf16.msra.mxu0 %v8260_v23 }
 0x838   :  { %7426 = vmatprep.subr.bf16.mxu0 %v8665_v1 }
 0x83b   :  { %7427 = vmatpush3.bf16.msra.mxu0 %v8262_v25 }
 0x83c   :  { %7428 = vmatprep.subr.bf16.mxu0 %v8665_v1 }
 0x83f   :  { %7429 = vmatpush3.bf16.msra.mxu0 %v8264_v27 }
 0x840   :  { %7430 = vmatprep.subr.bf16.mxu0 %v8665_v1 }
 0x8ee   :  { %v1411_v55 = vpop.f32.mrf.mxu0 }
 0x8ef   :  { %v1412_v56 = vadd.f32 %v6506_v54, %v1411_v55  ;;  %v6516_v55 = vld [vmem:[%s10863_s4 + $0x48] ss:$0 sm:$0xff] }
 0x8f0   :  { %v7398_v57 = vpop.f32.mrf.mxu0 }
 0x8f1   :  { %v1418_v58 = vadd.f32 %v1412_v56, %v1192_v32  ;;  %v8266_v32 = vld [vmem:[%s10862_s3 + $0x1d0] sm:$0xff]  }
 0x8f2   :  { %v1414_v31 = vpop.f32.mrf.mxu0  ;;  %7431 = vmatpush3.bf16.msra.mxu0 %v8266_v32  ;;  %v6535_v32 = vld [vmem:[%s10863_s4 + $0x60] ss:$0 sm:$0xff] }
 0x8f3   :  { %v1415_v59 = vadd.f32 %v6506_v54, %v1414_v31  ;;  %1422 = vadd.xlane.f32.xlu1 %v1418_v58  ;;  %7432 = vmatprep.subr.bf16.mxu0 %v8665_v1  ;;  %v8271_v31 = vld [vmem:[%s10862_s3 + $0x238] sm:$0xff]  }
 0x8f4   :  { %v7399_v60 = vpop.f32.mrf.mxu0 }
 0x8f5   :  { %v1419_v61 = vadd.f32 %v1415_v59, %v1193_v35  ;;  %v8267_v35 = vld [vmem:[%s10862_s3 + $0x188] sm:$0xff]   ;;  %v8272_v60 = vld [vmem:[%s10862_s3 + $0x230] sm:$0xff]  }
 0x8f6   :  { %7413 = vmatpush3.bf16.msra.mxu1 %v8267_v35  ;;  %7433 = vmatpush3.bf16.msra.mxu0 %v8268_v36 }
 0x8f7   :  { %v1424_v63 = vsel %vm1157_vm10, %v1419_v61, 0.0  ;;  %7414 = vmatprep.subr.bf16.mxu1 %v8665_v1  ;;  %7434 = vmatprep.subr.bf16.mxu0 %v8665_v1 }
 0x8f8   :  { %1425 = vadd.xlane.f32.xlu0 %v1424_v63  ;;  %v8274_v63 = vld [vmem:[%s10862_s3 + $0x220] sm:$0xff]  }
 0x8fa   :  { %7415 = vmatpush3.bf16.msra.mxu1 %v8269_v37  ;;  %7435 = vmatpush3.bf16.msra.mxu0 %v8270_v38 }
 0x8fb   :  { %7440 = vmatprep.subr.bf16.mxu1 %v8665_v1  ;;  %7460 = vmatprep.subr.bf16.mxu0 %v8665_v1 }
 0x97c   :  { %v1423_v0 = vpop.xlane.xlu1 %1422 }
 0x97d   :  { %v1427_v2 = vmul.f32 0.03125, %v1423_v0  ;;  %v8275_v0 = vld [vmem:[%s10862_s3 + $0x218] sm:$0xff]  }
 0x97f   :  { %v1429_v3 = vsub.f32 %v1418_v58, %v1427_v2  ;;  %v8276_v2 = vld [vmem:[%s10862_s3 + $0x210] sm:$0xff]  }
 0x981   :  { %v1426_v4 = vpop.xlane.xlu0 %1425  ;;  %v9203_v6 = vmul.f32 %v9116_v29, %v1429_v3  ;;  %v8277_v3 = vld [vmem:[%s10862_s3 + $0x208] sm:$0xff]  }
 0x982   :  { %v1428_v9 = vmul.f32 0.03125, %v1426_v4  ;;  %v8278_v4 = vld [vmem:[%s10862_s3 + $0x200] sm:$0xff]  }
 0x983   :  { %v1433_v10 = vmul.f32 %v9203_v6, %v9203_v6 }
 0x984   :  { %v1430_v11 = vsub.f32 %v1419_v61, %v1428_v9  ;;  %v8273_v61 = vld [vmem:[%s10862_s3 + $0x228] sm:$0xff]  }
 0x985   :  { %1435 = vadd.xlane.f32.xlu0 %v1433_v10  ;;  %v6517_v10 = vld [vmem:[%s10863_s4 + $0x50] ss:$0 sm:$0xff] }
 0x986   :  { %v9208_v12 = vmul.f32 %v9116_v29, %v1430_v11  ;;  %v6526_v11 = vld [vmem:[%s10863_s4 + $0x58] ss:$0 sm:$0xff] }
 0x988   :  { %v1434_v14 = vmul.f32 %v9208_v12, %v9208_v12 }
 0x98a   :  { %v1437_v15 = vsel %vm1157_vm10, %v1434_v14, 0.0 }
 0x98b   :  { %1438 = vadd.xlane.f32.xlu1 %v1437_v15 }
 0xa0e   :  { %v1436_v39 = vpop.xlane.xlu0 %1435 }
 0xa0f   :  { %v1440_v42 = vmul.f32 0.03125, %v1436_v39 }
 0xa11   :  { %v1442_v44 = vadd.f32 1e-05, %v1440_v42 }
 0xa13   :  { %8495 = vrsqrt.f32 %v1442_v44 }
 0xa14   :  { %v1439_v45 = vpop.xlane.xlu1 %1438 }
 0xa15   :  { %v1441_v46 = vmul.f32 0.03125, %v1439_v45 }
 0xa17   :  { %v1443_v47 = vadd.f32 1e-05, %v1441_v46 }
 0xa19   :  { %8497 = vrsqrt.f32 %v1443_v47 }
 0xa20   :  { %v8496_v48 = vpop.eup %8495 }
 0xa21   :  { %v1446_v30 = vmul.f32 %v8496_v48, %v9203_v6 }
 0xa23   :  { %v1452_v54 = vmul.f32 %v6515_v50, %v1446_v30 }
 0xa25   :  { %v9285_v57 = vadd.f32 %v6516_v55, %v1452_v54 }
 0xa26   :  { %v8498_v51 = vpop.eup %8497 }
 0xa27   :  { %v1447_v53 = vmul.f32 %v8498_v51, %v9208_v12 }
 0xa29   :  { %v1453_v56 = vmul.f32 %v6515_v50, %v1447_v53 }
 0xa2b   :  { %v9287_v58 = vadd.f32 %v6516_v55, %v1453_v56 }
 0xa2d   :  { %v1476_v59 = vpack.c.bf16 %v9287_v58, %v9285_v57 }
 0xa2f   :  { %7417 = vmatmul.mubr.bf16.vlgmr.msra.gmra.mxu1 %v1476_v59  ;;  %7437 = vmatmul.mubr.bf16.vlgmr.msra.gmra.mxu0 %v1476_v59 }
 0xa30   :  { %7441 = vmatpush3.bf16.msra.mxu1 %v8271_v31  ;;  %7456 = vmatprep.mubr.msk.bf16.mxu1 %vm10876_vm13, %v8665_v1 }
 0xa31   :  { %7442 = vmatprep.subr.bf16.mxu1 %v8665_v1  ;;  %7462 = vmatprep.mubr.msk.bf16.mxu0 %vm10876_vm13, %v8665_v1 }
 0xa34   :  { %7443 = vmatpush3.bf16.msra.mxu1 %v8272_v60 }
 0xa35   :  { %7444 = vmatprep.subr.bf16.mxu1 %v8665_v1 }
 0xa38   :  { %7445 = vmatpush3.bf16.msra.mxu1 %v8273_v61 }
 0xa39   :  { %7446 = vmatprep.subr.bf16.mxu1 %v8665_v1 }
 0xa3c   :  { %7447 = vmatpush3.bf16.msra.mxu1 %v8274_v63 }
 0xa3d   :  { %7448 = vmatprep.subr.bf16.mxu1 %v8665_v1 }
 0xa40   :  { %7449 = vmatpush3.bf16.msra.mxu1 %v8275_v0 }
 0xa41   :  { %7450 = vmatprep.subr.bf16.mxu1 %v8665_v1 }
 0xa44   :  { %7451 = vmatpush3.bf16.msra.mxu1 %v8276_v2 }
 0xa45   :  { %7452 = vmatprep.subr.bf16.mxu1 %v8665_v1 }
 0xa48   :  { %7453 = vmatpush3.bf16.msra.mxu1 %v8277_v3 }
 0xa49   :  { %7454 = vmatprep.subr.bf16.mxu1 %v8665_v1 }
 0xa4c   :  { %7455 = vmatpush3.bf16.msra.mxu1 %v8278_v4 }
 0xa4d   :  { %7474 = vmatprep.subr.bf16.mxu1 %v8665_v1 }
 0xa4f   :  { %7457 = vmatmul.mubr.bf16.vlgmr.msra.gmra.mxu1 %v1476_v59 }
 0xa50   :  { %7476 = vmatprep.mubr.msk.bf16.mxu1 %vm10876_vm13, %v8665_v1 }
 0xaef   :  { %v1564_v6 = vpop.f32.mrf.mxu1  ;;  %v1674_v9 = vpop.f32.mrf.mxu0 }
 0xaf0   :  { %v1565_v18 = vadd.f32 %v6517_v10, %v1564_v6  ;;  %v1675_v19 = vadd.f32 %v6526_v11, %v1674_v9 }
 0xaf1   :  { %v7418_v12 = vpop.f32.mrf.mxu1  ;;  %v7438_v14 = vpop.f32.mrf.mxu0 }
 0xaf3   :  { %v1567_v15 = vpop.f32.mrf.mxu1  ;;  %v1677_v16 = vpop.f32.mrf.mxu0 }
 0xaf4   :  { %v1568_v21 = vadd.f32 %v6517_v10, %v1567_v15  ;;  %v1678_v22 = vadd.f32 %v6526_v11, %v1677_v16 }
 0xaf5   :  { %v7419_v23 = vpop.f32.mrf.mxu1  ;;  %v7439_v24 = vpop.f32.mrf.mxu0 }
 0xaf6   :  { %v1791_v25 = vpack.c.bf16 %v1568_v21, %v1565_v18  ;;  %v1859_v26 = vpack.c.bf16 %v1678_v22, %v1675_v19 }
 0xaf8   :  { %7475 = vmatpush3.bf16.xpose.msra.mxu1 %v1859_v26  ;;  %v1793_v27 = vsel %vm716_vm6, %v1791_v25, 0 }
 0xaf9   :  { %7461 = vmatpush3.bf16.msra.mxu0 %v1793_v27  ;;  %7502 = vmatprep.subr.bf16.mxu1 %v8665_v1 }
 0xafa   :  { %7488 = vmatprep.subr.bf16.mxu0 %v8665_v1 }
 0xafc   :  { %7463 = vmatmul.mubr.msk.bf16.vlgmr.msra.gmra.mxu0 %vm706_vm2, %v8903_v7 }
 0xafd   :  { %7466 = vmatprep.mubr.msk.bf16.mxu0 %vm10876_vm13, %v8665_v1 }
 0xb04   :  { %7467 = vmatmul.mubr.msk.bf16.gmra.mxu0 %vm706_vm2, %v8905_v8 }
 0xb05   :  { %7470 = vmatprep.mubr.msk.bf16.mxu0 %vm10876_vm13, %v8665_v1 }
 0xb0c   :  { %7471 = vmatmul.mubr.msk.bf16.gmra.mxu0 %vm706_vm2, %v8922_v17 }
 0xb0d   :  { %7490 = vmatprep.mubr.msk.bf16.mxu0 %vm10876_vm13, %v8665_v1 }
 0xb0f   :  { %v1784_v28 = vpop.f32.mrf.mxu1 }
 0xb10   :  { %v1785_v37 = vadd.f32 %v6535_v32, %v1784_v28 }
 0xb11   :  { %v7458_v35 = vpop.f32.mrf.mxu1 }
 0xb13   :  { %v1787_v36 = vpop.f32.mrf.mxu1 }
 0xb14   :  { %v1788_v38 = vadd.f32 %v6535_v32, %v1787_v36 }
 0xb15   :  { %v7459_v39 = vpop.f32.mrf.mxu1 }
 0xb16   :  { %v1990_v42 = vpack.c.bf16 %v1788_v38, %v1785_v37 }
 0xb18   :  { %v2001_v44 = vsel %vm716_vm6, %v1990_v42, 0 }
 0xb19   :  { %7489 = vmatpush3.bf16.msra.mxu0 %v2001_v44 }
 0xb1a   :  { %7512 = vmatprep.subr.bf16.mxu0 %v8665_v1 }
 0xbbc   :  { %v1829_v45 = vpop.f32.mrf.mxu0 }
 0xbbd   :  { %v1851_v48 = vmul.f32 %v8937_v33, %v1829_v45 }
 0xbbe   :  { %v7464_v46 = vpop.f32.mrf.mxu0 }
 0xbc0   :  { %v1832_v47 = vpop.f32.mrf.mxu0 }
 0xbc1   :  { %v1852_v30 = vmul.f32 %v1832_v47, %v8839_v34 }
 0xbc2   :  { %v7465_v50 = vpop.f32.mrf.mxu0 }
 0xbc3   :  { %v1856_v51 = vpack.c.bf16 %v1852_v30, %v1851_v48 }
 0xbc4   :  { %v1837_v53 = vpop.f32.mrf.mxu0 }
 0xbc5   :  { %7477 = vmatmul.mubr.bf16.vlgmr.msra.gmra.mxu1 %v1856_v51  ;;  %v1853_v56 = vmul.f32 %v1837_v53, %v8853_v40 }
 0xbc6   :  { %v7468_v54 = vpop.f32.mrf.mxu0  ;;  %7480 = vmatprep.mubr.msk.bf16.mxu1 %vm10876_vm13, %v8665_v1 }
 0xbc8   :  { %v1840_v55 = vpop.f32.mrf.mxu0 }
 0xbc9   :  { %v1854_v31 = vmul.f32 %v1840_v55, %v8865_v43 }
 0xbca   :  { %v7469_v59 = vpop.f32.mrf.mxu0 }
 0xbcb   :  { %v1857_v60 = vpack.c.bf16 %v1854_v31, %v1853_v56 }
 0xbcc   :  { %v1845_v61 = vpop.f32.mrf.mxu0 }
 0xbcd   :  { %7481 = vmatmul.mubr.bf16.gmra.mxu1 %v1857_v60  ;;  %v1855_v63 = vmul.f32 %v8948_v52, %v1845_v61 }
 0xbce   :  { %v7472_v0 = vpop.f32.mrf.mxu0  ;;  %7484 = vmatprep.mubr.msk.bf16.mxu1 %vm10876_vm13, %v8665_v1 }
 0xbcf   :  { %v1858_v3 = vpack.c.bf16 %v1855_v63, %v1855_v63 }
 0xbd0   :  { %v1848_v2 = vpop.f32.mrf.mxu0 }
 0xbd2   :  { %v7473_v4 = vpop.f32.mrf.mxu0 }
 0xbd5   :  { %7485 = vmatmul.mubr.bf16.gmra.mxu1 %v1858_v3 }
 0xbd6   :  { %7508 = vmatprep.mubr.msk.bf16.mxu1 %vm10876_vm13, %v8665_v1 }
 0xc85   :  { %v1894_v6 = vpop.f32.mrf.mxu1 }
 0xc86   :  { %v1916_v9 = vmul.f32 0.35355338, %v1894_v6 }
 0xc87   :  { %v7478_v10 = vpop.f32.mrf.mxu1 }
 0xc88   :  { %v1921_v11 = vadd.f32 %v1916_v9, %v8958_v41 }
 0xc89   :  { %v1897_v12 = vpop.f32.mrf.mxu1 }
 0xc8a   :  { %v1917_v14 = vmul.f32 0.35355338, %v1897_v12  ;;  %v1926_v15 = vsel %vm706_vm2, %v1921_v11, -inf }
 0xc8b   :  { %1927 = vmax.xlane.f32.xlu0 %v1926_v15  ;;  %v7479_v16 = vpop.f32.mrf.mxu1 }
 0xc8c   :  { %v1922_v18 = vadd.f32 %v1917_v14, %v8964_v62 }
 0xc8d   :  { %v1902_v19 = vpop.f32.mrf.mxu1 }
 0xc8e   :  { %v1918_v21 = vmul.f32 0.35355338, %v1902_v19  ;;  %v1929_v22 = vsel %vm706_vm2, %v1922_v18, -inf }
 0xc8f   :  { %1930 = vmax.xlane.f32.xlu1 %v1929_v22  ;;  %v7482_v23 = vpop.f32.mrf.mxu1 }
 0xc90   :  { %v1923_v24 = vadd.f32 %v1918_v21, %v8971_v5 }
 0xc91   :  { %v1905_v25 = vpop.f32.mrf.mxu1 }
 0xc92   :  { %v1919_v26 = vmul.f32 0.35355338, %v1905_v25  ;;  %v1932_v41 = vsel %vm706_vm2, %v1923_v24, -inf }
 0xc93   :  { %1933 = vmax.xlane.f32.xlu0 %v1932_v41  ;;  %v7483_v27 = vpop.f32.mrf.mxu1 }
 0xc94   :  { %v1924_v28 = vadd.f32 %v1919_v26, %v8978_v13 }
 0xc95   :  { %v1910_v32 = vpop.f32.mrf.mxu1 }
 0xc96   :  { %v1920_v35 = vmul.f32 0.35355338, %v1910_v32  ;;  %v1935_v62 = vsel %vm706_vm2, %v1924_v28, -inf  ;;  %v8279_v32 = vld [vmem:[%s10862_s3 + $0x278] sm:$0xff]  }
 0xc97   :  { %1936 = vmax.xlane.f32.xlu1 %v1935_v62  ;;  %v7486_v36 = vpop.f32.mrf.mxu1  ;;  %v8281_v62 = vld [vmem:[%s10862_s3 + $0x268] sm:$0xff]  }
 0xc98   :  { %v1925_v37 = vadd.f32 %v1920_v35, %v8985_v20  ;;  %v8280_v35 = vld [vmem:[%s10862_s3 + $0x270] sm:$0xff]   ;;  %v8282_v36 = vld [vmem:[%s10862_s3 + $0x260] sm:$0xff]  }
 0xc99   :  { %v1913_v38 = vpop.f32.mrf.mxu1 }
 0xc9a   :  { %v1938_v39 = vsel %vm706_vm2, %v1925_v37, -inf  ;;  %v8284_v38 = vld [vmem:[%s10862_s3 + $0x250] sm:$0xff]  }
 0xc9b   :  { %1939 = vmax.xlane.f32.xlu0 %v1938_v39  ;;  %v7487_v5 = vpop.f32.mrf.mxu1 }
 0xd14   :  { %v1928_v42 = vpop.xlane.xlu0 %1927 }
 0xd15   :  { %v1941_v44 = vsub.f32 %v1921_v11, %v1928_v42 }
 0xd17   :  { %v1946_v45 = vmul.f32 1.442695, %v1941_v44 }
 0xd18   :  { %v1931_v46 = vpop.xlane.xlu1 %1930 }
 0xd19   :  { %8499 = vpow2.f32 %v1946_v45  ;;  %v1942_v47 = vsub.f32 %v1922_v18, %v1931_v46 }
 0xd1b   :  { %v1948_v13 = vmul.f32 1.442695, %v1942_v47 }
 0xd1c   :  { %v1934_v48 = vpop.xlane.xlu0 %1933 }
 0xd1d   :  { %8501 = vpow2.f32 %v1948_v13  ;;  %v1943_v30 = vsub.f32 %v1923_v24, %v1934_v48 }
 0xd1f   :  { %v1950_v50 = vmul.f32 1.442695, %v1943_v30 }
 0xd20   :  { %v1937_v51 = vpop.xlane.xlu1 %1936 }
 0xd21   :  { %8503 = vpow2.f32 %v1950_v50  ;;  %v1944_v53 = vsub.f32 %v1924_v28, %v1937_v51 }
 0xd23   :  { %v1952_v20 = vmul.f32 1.442695, %v1944_v53 }
 0xd24   :  { %v1940_v54 = vpop.xlane.xlu0 %1939 }
 0xd25   :  { %8505 = vpow2.f32 %v1952_v20  ;;  %v1945_v55 = vsub.f32 %v1925_v37, %v1940_v54  ;;  %v8283_v37 = vld [vmem:[%s10862_s3 + $0x258] sm:$0xff]  }
 0xd26   :  { %v8500_v56 = vpop.eup %8499 }
 0xd27   :  { %v1954_v31 = vmul.f32 1.442695, %v1945_v55  ;;  %v1956_v59 = vsel %vm706_vm2, %v8500_v56, 0.0 }
 0xd28   :  { %1957 = vadd.xlane.f32.xlu1 %v1956_v59 }
 0xd29   :  { %8507 = vpow2.f32 %v1954_v31 }
 0xd2a   :  { %v8502_v60 = vpop.eup %8501 }
 0xd2b   :  { %v1959_v61 = vsel %vm706_vm2, %v8502_v60, 0.0 }
 0xd2c   :  { %1960 = vadd.xlane.f32.xlu0 %v1959_v61 }
 0xd2e   :  { %v8504_v63 = vpop.eup %8503 }
 0xd2f   :  { %v1962_v0 = vsel %vm706_vm2, %v8504_v63, 0.0 }
 0xd30   :  { %1963 = vadd.xlane.f32.xlu1 %v1962_v0  ;;  %v8286_v0 = vld [vmem:[%s10862_s3 + $0x240] sm:$0xff]  }
 0xd32   :  { %v8506_v2 = vpop.eup %8505 }
 0xd33   :  { %v1965_v3 = vsel %vm706_vm2, %v8506_v2, 0.0 }
 0xd34   :  { %1966 = vadd.xlane.f32.xlu0 %v1965_v3 }
 0xd36   :  { %v8508_v4 = vpop.eup %8507 }
 0xd37   :  { %v1968_v6 = vsel %vm706_vm2, %v8508_v4, 0.0 }
 0xd38   :  { %1969 = vadd.xlane.f32.xlu1 %v1968_v6 }
 0xdb1   :  { %v1958_v9 = vpop.xlane.xlu1 %1957 }
 0xdb2   :  { %8509 = vrcp.f32 %v1958_v9 }
 0xdb5   :  { %v1961_v10 = vpop.xlane.xlu0 %1960 }
 0xdb6   :  { %8511 = vrcp.f32 %v1961_v10  ;;  %v6556_v10 = vld [vmem:[%s10863_s4 + $0x68] ss:$0 sm:$0xff] }
 0xdb9   :  { %v1964_v11 = vpop.xlane.xlu1 %1963 }
 0xdba   :  { %8513 = vrcp.f32 %v1964_v11 }
 0xdbd   :  { %v1967_v12 = vpop.xlane.xlu0 %1966 }
 0xdbe   :  { %8515 = vrcp.f32 %v1967_v12 }
 0xdbf   :  { %v8510_v14 = vpop.eup %8509 }
 0xdc0   :  { %v1976_v15 = vmul.f32 %v8510_v14, %v8500_v56 }
 0xdc1   :  { %v1970_v16 = vpop.xlane.xlu1 %1969 }
 0xdc2   :  { %6547 = vst.msk [vmem:[%s10865_s6 + $0x28] sm:$0xff] %vm706_vm2, %v1976_v15  ;;  %8517 = vrcp.f32 %v1970_v16 }
 0xdc3   :  { %v8512_v18 = vpop.eup %8511 }
 0xdc4   :  { %v1977_v19 = vmul.f32 %v8512_v18, %v8502_v60 }
 0xdc6   :  { %6548 = vst.msk [vmem:[%s10865_s6 + $0x30] sm:$0xff] %vm706_vm2, %v1977_v19  ;;  %v1987_v21 = vpack.c.bf16 %v1977_v19, %v1976_v15 }
 0xdc7   :  { %v8514_v22 = vpop.eup %8513 }
 0xdc8   :  { %7491 = vmatmul.mubr.msk.bf16.vlgmr.msra.gmra.mxu0 %vm706_vm2, %v1987_v21  ;;  %v1978_v23 = vmul.f32 %v8514_v22, %v8504_v63  ;;  %v8285_v63 = vld [vmem:[%s10862_s3 + $0x248] sm:$0xff]  }
 0xdc9   :  { %7494 = vmatprep.mubr.msk.bf16.mxu0 %vm10876_vm13, %v8665_v1  ;;  %7513 = vmatpush3.bf16.msra.mxu0 %v8279_v32 }
 0xdca   :  { %6549 = vst.msk [vmem:[%s10865_s6 + $0x38] sm:$0xff] %vm706_vm2, %v1978_v23  ;;  %7514 = vmatprep.subr.bf16.mxu0 %v8665_v1 }
 0xdcb   :  { %v8516_v24 = vpop.eup %8515 }
 0xdcc   :  { %v1979_v25 = vmul.f32 %v8516_v24, %v8506_v2 }
 0xdcd   :  { %7515 = vmatpush3.bf16.msra.mxu0 %v8280_v35 }
 0xdce   :  { %6550 = vst.msk [vmem:[%s10865_s6 + $0x40] sm:$0xff] %vm706_vm2, %v1979_v25  ;;  %v1988_v26 = vpack.c.bf16 %v1979_v25, %v1978_v23  ;;  %7516 = vmatprep.subr.bf16.mxu0 %v8665_v1 }
 0xdcf   :  { %v8518_v41 = vpop.eup %8517 }
 0xdd0   :  { %7495 = vmatmul.mubr.msk.bf16.gmra.mxu0 %vm706_vm2, %v1988_v26  ;;  %v1980_v27 = vmul.f32 %v8518_v41, %v8508_v4 }
 0xdd1   :  { %7498 = vmatprep.mubr.msk.bf16.mxu0 %vm10876_vm13, %v8665_v1  ;;  %7517 = vmatpush3.bf16.msra.mxu0 %v8281_v62 }
 0xdd2   :  { %6551 = vst.msk [vmem:[%s10865_s6 + $0x48] sm:$0xff] %vm706_vm2, %v1980_v27  ;;  %v1989_v28 = vpack.c.bf16 %v1980_v27, %v1980_v27  ;;  %7518 = vmatprep.subr.bf16.mxu0 %v8665_v1 }
 0xdd5   :  { %7519 = vmatpush3.bf16.msra.mxu0 %v8282_v36  ;;  %v8288_v36 = vld [vmem:[%s10862_s3 + $0x2b0] sm:$0xff]  }
 0xdd6   :  { %7520 = vmatprep.subr.bf16.mxu0 %v8665_v1 }
 0xdd8   :  { %7499 = vmatmul.mubr.msk.bf16.gmra.mxu0 %vm706_vm2, %v1989_v28 }
 0xdd9   :  { %7528 = vmatprep.mubr.msk.bf16.mxu0 %vm10876_vm13, %v8665_v1  ;;  %7521 = vmatpush3.bf16.msra.mxu0 %v8283_v37  ;;  %v8289_v37 = vld [vmem:[%s10862_s3 + $0x2a8] sm:$0xff]  }
 0xdda   :  { %7522 = vmatprep.subr.bf16.mxu0 %v8665_v1 }
 0xddd   :  { %7523 = vmatpush3.bf16.msra.mxu0 %v8284_v38  ;;  %v8290_v38 = vld [vmem:[%s10862_s3 + $0x2a0] sm:$0xff]  }
 0xdde   :  { %7524 = vmatprep.subr.bf16.mxu0 %v8665_v1 }
 0xde1   :  { %7525 = vmatpush3.bf16.msra.mxu0 %v8285_v63 }
 0xde2   :  { %7526 = vmatprep.subr.bf16.mxu0 %v8665_v1 }
 0xde5   :  { %7527 = vmatpush3.bf16.msra.mxu0 %v8286_v0  ;;  %v6566_v0 = vld [vmem:[%s10863_s4 + $0x78] ss:$0 sm:$0xff] }
 0xde6   :  { %7552 = vmatprep.subr.bf16.mxu0 %v8665_v1 }
 0xe88   :  { %v2037_v39 = vpop.f32.mrf.mxu0 }
 0xe89   :  { %v2059_v60 = vmul.f32 %v8937_v33, %v2037_v39  ;;  %v8291_v39 = vld [vmem:[%s10862_s3 + $0x298] sm:$0xff]  }
 0xe8a   :  { %v7492_v5 = vpop.f32.mrf.mxu0 }
 0xe8b   :  { %v8292_v5 = vld [vmem:[%s10862_s3 + $0x290] sm:$0xff]  }
 0xe8c   :  { %v2040_v42 = vpop.f32.mrf.mxu0 }
 0xe8d   :  { %v2060_v31 = vmul.f32 %v2040_v42, %v8839_v34  ;;  %v8293_v42 = vld [vmem:[%s10862_s3 + $0x288] sm:$0xff]  }
 0xe8e   :  { %v7493_v44 = vpop.f32.mrf.mxu0 }
 0xe8f   :  { %v2064_v61 = vpack.c.bf16 %v2060_v31, %v2059_v60  ;;  %v8294_v44 = vld [vmem:[%s10862_s3 + $0x280] sm:$0xff]  }
 0xe90   :  { %v2045_v45 = vpop.f32.mrf.mxu0 }
 0xe91   :  { %v2061_v55 = vmul.f32 %v2045_v45, %v8853_v40  ;;  %v8303_v45 = vld [vmem:[%s10862_s3 + $0x2f8] sm:$0xff]  }
 0xe92   :  { %v7496_v46 = vpop.f32.mrf.mxu0 }
 0xe93   :  { %v8304_v46 = vld [vmem:[%s10862_s3 + $0x2f0] sm:$0xff]  }
 0xe94   :  { %v2048_v47 = vpop.f32.mrf.mxu0 }
 0xe95   :  { %v2062_v53 = vmul.f32 %v2048_v47, %v8865_v43  ;;  %v8305_v47 = vld [vmem:[%s10862_s3 + $0x2e8] sm:$0xff]  }
 0xe96   :  { %v7497_v13 = vpop.f32.mrf.mxu0 }
 0xe97   :  { %v2065_v59 = vpack.c.bf16 %v2062_v53, %v2061_v55  ;;  %v8306_v13 = vld [vmem:[%s10862_s3 + $0x2e0] sm:$0xff]  }
 0xe98   :  { %v2053_v48 = vpop.f32.mrf.mxu0 }
 0xe99   :  { %v2063_v30 = vmul.f32 %v8948_v52, %v2053_v48  ;;  %v8307_v48 = vld [vmem:[%s10862_s3 + $0x2d8] sm:$0xff]  }
 0xe9a   :  { %v7500_v50 = vpop.f32.mrf.mxu0 }
 0xe9b   :  { %v2066_v51 = vpack.c.bf16 %v2063_v30, %v2063_v30  ;;  %v8308_v30 = vld [vmem:[%s10862_s3 + $0x2d0] sm:$0xff]  }
 0xe9c   :  { %v2056_v20 = vpop.f32.mrf.mxu0 }
 0xe9d   :  { %v2068_v54 = vsel %vm995_vm0, %v2066_v51, 0 }
 0xe9e   :  { %v7501_v56 = vpop.f32.mrf.mxu0  ;;  %7503 = vmatpush3.bf16.msra.mxu1 %v2068_v54 }
 0xe9f   :  { %7504 = vmatprep.subr.bf16.mxu1 %v8665_v1 }
 0xea2   :  { %7505 = vmatpush3.bf16.msra.mxu1 %v2065_v59  ;;  %v6565_v59 = vld [vmem:[%s10863_s4 + $0x70] ss:$0 sm:$0xff] }
 0xea3   :  { %7506 = vmatprep.subr.bf16.mxu1 %v8665_v1 }
 0xea6   :  { %7507 = vmatpush3.bf16.msra.mxu1 %v2064_v61 }
 0xea7   :  { %7532 = vmatprep.subr.bf16.mxu1 %v8665_v1 }
 0xea9   :  { %7509 = vmatmul.mubr.msk.bf16.vlgmr.msra.gmra.mxu1 %vm991_vm7, %v9054_v49 }
 0xeaa   :  { %7548 = vmatprep.mubr.msk.bf16.mxu1 %vm10876_vm13, %v8665_v1 }
 0xf69   :  { %v2104_v2 = vpop.f32.mrf.mxu1 }
 0xf6b   :  { %v7510_v3 = vpop.f32.mrf.mxu1 }
 0xf6d   :  { %v2107_v4 = vpop.f32.mrf.mxu1 }
 0xf6e   :  { %v2127_v6 = vpack.c.bf16 %v2107_v4, %v2104_v2 }
 0xf6f   :  { %v7511_v9 = vpop.f32.mrf.mxu1 }
 0xf70   :  { %7529 = vmatmul.mubr.bf16.vlgmr.msra.gmra.mxu0 %v2127_v6  ;;  %v8295_v6 = vld [vmem:[%s10862_s3 + $0x338] sm:$0xff]  }
 0xf71   :  { %7568 = vmatprep.mubr.msk.bf16.mxu0 %vm10876_vm13, %v8665_v1  ;;  %7553 = vmatpush3.bf16.msra.mxu0 %v8303_v45 }
 0xf72   :  { %7554 = vmatprep.subr.bf16.mxu0 %v8665_v1 }
 0xf75   :  { %7555 = vmatpush3.bf16.msra.mxu0 %v8304_v46  ;;  %v8317_v46 = vld [vmem:[%s10862_s3 + $0x348] sm:$0xff]  }
 0xf76   :  { %7556 = vmatprep.subr.bf16.mxu0 %v8665_v1 }
 0xf79   :  { %7557 = vmatpush3.bf16.msra.mxu0 %v8305_v47 }
 0xf7a   :  { %7558 = vmatprep.subr.bf16.mxu0 %v8665_v1 }
 0xf7d   :  { %7559 = vmatpush3.bf16.msra.mxu0 %v8306_v13 }
 0xf7e   :  { %7560 = vmatprep.subr.bf16.mxu0 %v8665_v1 }
 0xf81   :  { %7561 = vmatpush3.bf16.msra.mxu0 %v8307_v48 }
 0xf82   :  { %7562 = vmatprep.subr.bf16.mxu0 %v8665_v1 }
 0xf85   :  { %7563 = vmatpush3.bf16.msra.mxu0 %v8308_v30  ;;  %v8318_v30 = vld [vmem:[%s10862_s3 + $0x340] sm:$0xff]  }
 0xf86   :  { %7564 = vmatprep.subr.bf16.mxu0 %v8665_v1 }
0x1030   :  { %v2215_v11 = vpop.f32.mrf.mxu0 }
0x1031   :  { %v2216_v12 = vadd.f32 %v6556_v10, %v2215_v11  ;;  %v8297_v11 = vld [vmem:[%s10862_s3 + $0x328] sm:$0xff]  }
0x1032   :  { %v7530_v14 = vpop.f32.mrf.mxu0 }
0x1033   :  { %v2222_v15 = vadd.f32 %v2216_v12, %v9285_v57  ;;  %v8298_v12 = vld [vmem:[%s10862_s3 + $0x320] sm:$0xff]   ;;  %v8299_v14 = vld [vmem:[%s10862_s3 + $0x318] sm:$0xff]  }
0x1034   :  { %v2218_v16 = vpop.f32.mrf.mxu0 }
0x1035   :  { %v2219_v18 = vadd.f32 %v6556_v10, %v2218_v16  ;;  %2226 = vadd.xlane.f32.xlu1 %v2222_v15  ;;  %v8296_v10 = vld [vmem:[%s10862_s3 + $0x330] sm:$0xff]   ;;  %v8301_v16 = vld [vmem:[%s10862_s3 + $0x308] sm:$0xff]  }
0x1036   :  { %v7531_v19 = vpop.f32.mrf.mxu0 }
0x1037   :  { %v2223_v21 = vadd.f32 %v2219_v18, %v9287_v58  ;;  %v8287_v58 = vld [vmem:[%s10862_s3 + $0x2b8] sm:$0xff]   ;;  %v8302_v18 = vld [vmem:[%s10862_s3 + $0x300] sm:$0xff]  }
0x1038   :  { %7533 = vmatpush3.bf16.msra.mxu1 %v8287_v58  ;;  %v9569_v19 = vld [vmem:[%s10860_s1] sm:$0xff]  ;;  %v8311_v58 = vld [vmem:[%s10862_s3 + $0x378] sm:$0xff]  }
0x1039   :  { %v2228_v22 = vsel %vm1157_vm10, %v2223_v21, 0.0  ;;  %7534 = vmatprep.subr.bf16.mxu1 %v8665_v1 }
0x103a   :  { %2229 = vadd.xlane.f32.xlu0 %v2228_v22 }
0x103c   :  { %7535 = vmatpush3.bf16.msra.mxu1 %v8288_v36 }
0x103d   :  { %7536 = vmatprep.subr.bf16.mxu1 %v8665_v1 }
0x1040   :  { %7537 = vmatpush3.bf16.msra.mxu1 %v8289_v37  ;;  %v8312_v37 = vld [vmem:[%s10862_s3 + $0x370] sm:$0xff]  }
0x1041   :  { %7538 = vmatprep.subr.bf16.mxu1 %v8665_v1 }
0x1044   :  { %7539 = vmatpush3.bf16.msra.mxu1 %v8290_v38  ;;  %v8313_v38 = vld [vmem:[%s10862_s3 + $0x368] sm:$0xff]  }
0x1045   :  { %7540 = vmatprep.subr.bf16.mxu1 %v8665_v1 }
0x1048   :  { %7541 = vmatpush3.bf16.msra.mxu1 %v8291_v39  ;;  %v8314_v39 = vld [vmem:[%s10862_s3 + $0x360] sm:$0xff]  }
0x1049   :  { %7542 = vmatprep.subr.bf16.mxu1 %v8665_v1 }
0x104c   :  { %7543 = vmatpush3.bf16.msra.mxu1 %v8292_v5  ;;  %v8315_v5 = vld [vmem:[%s10862_s3 + $0x358] sm:$0xff]  }
0x104d   :  { %7544 = vmatprep.subr.bf16.mxu1 %v8665_v1 }
0x1050   :  { %7545 = vmatpush3.bf16.msra.mxu1 %v8293_v42  ;;  %v8316_v42 = vld [vmem:[%s10862_s3 + $0x350] sm:$0xff]  }
0x1051   :  { %7546 = vmatprep.subr.bf16.mxu1 %v8665_v1 }
0x1054   :  { %7547 = vmatpush3.bf16.msra.mxu1 %v8294_v44  ;;  %v6587_v44 = vld [vmem:[%s10863_s4 + $0xa0] ss:$0 sm:$0xff] }
0x1055   :  { %7572 = vmatprep.subr.bf16.mxu1 %v8665_v1 }
0x10be   :  { %v2227_v23 = vpop.xlane.xlu1 %2226 }
0x10bf   :  { %v2231_v24 = vmul.f32 0.03125, %v2227_v23  ;;  %v8309_v23 = vld [vmem:[%s10862_s3 + $0x2c8] sm:$0xff]  }
0x10c0   :  { %7565 = vmatpush3.bf16.msra.mxu0 %v8309_v23 }
0x10c1   :  { %v2233_v25 = vsub.f32 %v2222_v15, %v2231_v24  ;;  %v8300_v15 = vld [vmem:[%s10862_s3 + $0x310] sm:$0xff]   ;;  %7566 = vmatprep.subr.bf16.mxu0 %v8665_v1  ;;  %v8310_v24 = vld [vmem:[%s10862_s3 + $0x2c0] sm:$0xff]  }
0x10c3   :  { %v2230_v26 = vpop.xlane.xlu0 %2229  ;;  %v2235_v41 = vmul.f32 %v9116_v29, %v2233_v25  ;;  %v6567_v25 = vld [vmem:[%s10863_s4 + $0x80] ss:$0 sm:$0xff] }
0x10c4   :  { %v2232_v27 = vmul.f32 0.03125, %v2230_v26  ;;  %7567 = vmatpush3.bf16.msra.mxu0 %v8310_v24 }
0x10c5   :  { %v2237_v28 = vmul.f32 %v2235_v41, %v2235_v41  ;;  %7592 = vmatprep.subr.bf16.mxu0 %v8665_v1 }
0x10c6   :  { %v2234_v32 = vsub.f32 %v2223_v21, %v2232_v27  ;;  %v9574_v21 = vld [vmem:[%s10860_s1 + $0x8] sm:$0x3]  ;;  %s8643_s1 = scalar_lea.vmem %s6395_s28, 256 }
0x10c7   :  { %2239 = vadd.xlane.f32.xlu0 %v2237_v28  ;;  %v9579_v22 = vpack.c.bf16 %v9574_v21, %v9569_v19  ;;  %p8644_p0 = scmp.ne.s32.totalorder %s6395_s28, %s8643_s1  ;;  %p8649_p2 = scmp.lt.s32.totalorder %s8643_s1, %s8643_s1 }
0x10c8   :  { %v2236_v57 = vmul.f32 %v9116_v29, %v2234_v32 }
0x10c9   :  { %p8650_p3 = por %p8649_p2, %p8648_p1 }
0x10ca   :  { %v2238_v35 = vmul.f32 %v2236_v57, %v2236_v57 }
0x10cb   :  { %p8651_p4 = pnand %p8650_p3, %p8644_p0 }
0x10cc   :  { %v2241_v62 = vsel %vm1157_vm10, %v2238_v35, 0.0 }
0x10cd   :  { %2242 = vadd.xlane.f32.xlu1 %v2241_v62 }
0x1150   :  { %v2240_v50 = vpop.xlane.xlu0 %2239 }
0x1151   :  { %v2244_v51 = vmul.f32 0.03125, %v2240_v50 }
0x1153   :  { %v2246_v53 = vadd.f32 1e-05, %v2244_v51 }
0x1155   :  { %8519 = vrsqrt.f32 %v2246_v53 }
0x1156   :  { %v2243_v20 = vpop.xlane.xlu1 %2242 }
0x1157   :  { %v2245_v54 = vmul.f32 0.03125, %v2243_v20 }
0x1159   :  { %v2247_v55 = vadd.f32 1e-05, %v2245_v54  ;;  %v8319_v54 = vld [vmem:[%s10862_s3 + $0x3b8] sm:$0xff]  }
0x115b   :  { %8521 = vrsqrt.f32 %v2247_v55  ;;  %v8320_v55 = vld [vmem:[%s10862_s3 + $0x3b0] sm:$0xff]  }
0x1162   :  { %v8520_v56 = vpop.eup %8519 }
0x1163   :  { %v2250_v31 = vmul.f32 %v8520_v56, %v2235_v41  ;;  %v8321_v56 = vld [vmem:[%s10862_s3 + $0x3a8] sm:$0xff]  }
0x1165   :  { %v2256_v63 = vmul.f32 %v6565_v59, %v2250_v31  ;;  %v8322_v31 = vld [vmem:[%s10862_s3 + $0x3a0] sm:$0xff]  }
0x1167   :  { %v9528_v3 = vadd.f32 %v6566_v0, %v2256_v63  ;;  %v8326_v63 = vld [vmem:[%s10862_s3 + $0x380] sm:$0xff]  }
0x1168   :  { %v8522_v60 = vpop.eup %8521 }
0x1169   :  { %v2251_v61 = vmul.f32 %v8522_v60, %v2236_v57  ;;  %v8324_v60 = vld [vmem:[%s10862_s3 + $0x390] sm:$0xff]  }
0x116b   :  { %v2257_v2 = vmul.f32 %v6565_v59, %v2251_v61  ;;  %v8323_v59 = vld [vmem:[%s10862_s3 + $0x398] sm:$0xff]   ;;  %v8325_v61 = vld [vmem:[%s10862_s3 + $0x388] sm:$0xff]  }
0x116d   :  { %v9530_v4 = vadd.f32 %v6566_v0, %v2257_v2 }
0x116f   :  { %v2280_v9 = vpack.c.bf16 %v9530_v4, %v9528_v3 }
0x1171   :  { %7549 = vmatmul.mubr.bf16.vlgmr.msra.gmra.mxu1 %v2280_v9 }
0x1172   :  { %7573 = vmatpush3.bf16.msra.mxu1 %v8295_v6  ;;  %7588 = vmatprep.mubr.msk.bf16.mxu1 %vm10876_vm13, %v8665_v1 }
0x1173   :  { %7574 = vmatprep.subr.bf16.mxu1 %v8665_v1 }
0x1176   :  { %7575 = vmatpush3.bf16.msra.mxu1 %v8296_v10 }
0x1177   :  { %7576 = vmatprep.subr.bf16.mxu1 %v8665_v1 }
0x117a   :  { %7577 = vmatpush3.bf16.msra.mxu1 %v8297_v11  ;;  %v6596_v11 = vld [vmem:[%s10863_s4 + $0xa8] ss:$0 sm:$0xff] }
0x117b   :  { %7578 = vmatprep.subr.bf16.mxu1 %v8665_v1 }
0x117e   :  { %7579 = vmatpush3.bf16.msra.mxu1 %v8298_v12 }
0x117f   :  { %7580 = vmatprep.subr.bf16.mxu1 %v8665_v1 }
0x1182   :  { %7581 = vmatpush3.bf16.msra.mxu1 %v8299_v14 }
0x1183   :  { %7582 = vmatprep.subr.bf16.mxu1 %v8665_v1 }
0x1186   :  { %7583 = vmatpush3.bf16.msra.mxu1 %v8300_v15 }
0x1187   :  { %7584 = vmatprep.subr.bf16.mxu1 %v8665_v1 }
0x118a   :  { %7585 = vmatpush3.bf16.msra.mxu1 %v8301_v16 }
0x118b   :  { %7586 = vmatprep.subr.bf16.mxu1 %v8665_v1 }
0x118e   :  { %7587 = vmatpush3.bf16.msra.mxu1 %v8302_v18 }
0x118f   :  { %7612 = vmatprep.subr.bf16.mxu1 %v8665_v1 }
0x1191   :  { %7589 = vmatmul.mubr.bf16.vlgmr.msra.gmra.mxu1 %v9579_v22 }
0x1192   :  { %7628 = vmatprep.mubr.msk.bf16.mxu1 %vm10876_vm13, %v8665_v1  ;;  %7613 = vmatpush3.bf16.msra.mxu1 %v8319_v54 }
0x1193   :  { %7614 = vmatprep.subr.bf16.mxu1 %v8665_v1 }
0x1196   :  { %7615 = vmatpush3.bf16.msra.mxu1 %v8320_v55  ;;  %v362_v55 = vld [vmem:[%s10861_s2 + $0x28] sm:$0xff] }
0x1197   :  { %7616 = vmatprep.subr.bf16.mxu1 %v8665_v1 }
0x119a   :  { %7617 = vmatpush3.bf16.msra.mxu1 %v8321_v56 }
0x119b   :  { %7618 = vmatprep.subr.bf16.mxu1 %v8665_v1 }
0x119e   :  { %7619 = vmatpush3.bf16.msra.mxu1 %v8322_v31 }
0x119f   :  { %7620 = vmatprep.subr.bf16.mxu1 %v8665_v1 }
0x11a2   :  { %7621 = vmatpush3.bf16.msra.mxu1 %v8323_v59 }
0x11a3   :  { %7622 = vmatprep.subr.bf16.mxu1 %v8665_v1 }
0x11a6   :  { %7623 = vmatpush3.bf16.msra.mxu1 %v8324_v60 }
0x11a7   :  { %7624 = vmatprep.subr.bf16.mxu1 %v8665_v1 }
0x11aa   :  { %7625 = vmatpush3.bf16.msra.mxu1 %v8325_v61  ;;  %v363_v61 = vld [vmem:[%s10861_s2 + $0x30] sm:$0xff] }
0x11ab   :  { %7626 = vmatprep.subr.bf16.mxu1 %v8665_v1 }
0x11ae   :  { %7627 = vmatpush3.bf16.msra.mxu1 %v8326_v63 }
0x11af   :  { %7646 = vmatprep.subr.bf16.mxu1 %v8665_v1 }
0x11b1   :  { %7629 = vmatmul.mubr.bf16.vlgmr.msra.gmra.mxu1 %v9579_v22 }
0x11b2   :  { %7648 = vmatprep.mubr.msk.bf16.mxu1 %vm10876_vm13, %v8665_v1 }
0x1231   :  { %v2368_v26 = vpop.f32.mrf.mxu1 }
0x1232   :  { %v2369_v27 = vadd.f32 %v6567_v25, %v2368_v26 }
0x1233   :  { %v7550_v41 = vpop.f32.mrf.mxu1 }
0x1234   :  { %v2375_v35 = vmax.f32 %v2369_v27, 0.0 }
0x1235   :  { %v2371_v28 = vpop.f32.mrf.mxu1 }
0x1236   :  { %v2372_v32 = vadd.f32 %v6567_v25, %v2371_v28 }
0x1237   :  { %v7551_v57 = vpop.f32.mrf.mxu1 }
0x1238   :  { %v2376_v62 = vmax.f32 %v2372_v32, 0.0 }
0x123a   :  { %v2393_v36 = vpack.c.bf16 %v2376_v62, %v2375_v35 }
0x123c   :  { %7569 = vmatmul.mubr.bf16.vlgmr.msra.gmra.mxu0 %v2393_v36 }
0x123d   :  { %7593 = vmatpush3.bf16.msra.mxu0 %v8311_v58  ;;  %7608 = vmatprep.mubr.msk.bf16.mxu0 %vm10876_vm13, %v8665_v1 }
0x123e   :  { %7594 = vmatprep.subr.bf16.mxu0 %v8665_v1 }
0x1241   :  { %7595 = vmatpush3.bf16.msra.mxu0 %v8312_v37 }
0x1242   :  { %7596 = vmatprep.subr.bf16.mxu0 %v8665_v1 }
0x1245   :  { %7597 = vmatpush3.bf16.msra.mxu0 %v8313_v38 }
0x1246   :  { %7598 = vmatprep.subr.bf16.mxu0 %v8665_v1 }
0x1249   :  { %7599 = vmatpush3.bf16.msra.mxu0 %v8314_v39 }
0x124a   :  { %7600 = vmatprep.subr.bf16.mxu0 %v8665_v1 }
0x124d   :  { %7601 = vmatpush3.bf16.msra.mxu0 %v8315_v5 }
0x124e   :  { %7602 = vmatprep.subr.bf16.mxu0 %v8665_v1 }
0x1251   :  { %v2636_v45 = vpop.f32.mrf.mxu1  ;;  %7603 = vmatpush3.bf16.msra.mxu0 %v8316_v42 }
0x1252   :  { %7604 = vmatprep.subr.bf16.mxu0 %v8665_v1  ;;  %v2637_v13 = vadd.f32 %v6587_v44, %v2636_v45 }
0x1253   :  { %v7590_v47 = vpop.f32.mrf.mxu1 }
0x1255   :  { %v2639_v48 = vpop.f32.mrf.mxu1  ;;  %7605 = vmatpush3.bf16.msra.mxu0 %v8317_v46  ;;  %v6605_v46 = vld [vmem:[%s10863_s4 + $0xb0] ss:$0 sm:$0xff] }
0x1256   :  { %v2640_v50 = vadd.f32 %v6587_v44, %v2639_v48  ;;  %7606 = vmatprep.subr.bf16.mxu0 %v8665_v1 }
0x1257   :  { %v7591_v51 = vpop.f32.mrf.mxu1 }
0x1258   :  { %v2863_v53 = vpack.c.bf16 %v2640_v50, %v2637_v13 }
0x1259   :  { %7607 = vmatpush3.bf16.msra.mxu0 %v8318_v30 }
0x125a   :  { %7632 = vmatprep.subr.bf16.mxu0 %v8665_v1  ;;  %v2865_v20 = vsel %vm716_vm6, %v2863_v53, 0 }
0x125c   :  { %7609 = vmatmul.mubr.bf16.vlgmr.msra.gmra.mxu0 %v9579_v22 }
0x125d   :  { %7633 = vmatpush3.bf16.msra.mxu0 %v2865_v20  ;;  %7634 = vmatprep.mubr.msk.bf16.mxu0 %vm10876_vm13, %v8665_v1 }
0x125e   :  { %7660 = vmatprep.subr.bf16.mxu0 %v8665_v1 }
0x1264   :  { %7635 = vmatmul.mubr.msk.bf16.vlgmr.msra.gmra.mxu0 %vm706_vm2, %v8903_v7 }
0x1265   :  { %7638 = vmatprep.mubr.msk.bf16.mxu0 %vm10876_vm13, %v8665_v1 }
0x126c   :  { %7639 = vmatmul.mubr.msk.bf16.gmra.mxu0 %vm706_vm2, %v8905_v8 }
0x126d   :  { %7642 = vmatprep.mubr.msk.bf16.mxu0 %vm10876_vm13, %v8665_v1 }
0x1271   :  { %v2856_v47 = vpop.f32.mrf.mxu1 }
0x1272   :  { %v2857_v48 = vadd.f32 %v6605_v46, %v2856_v47 }
0x1273   :  { %v7630_v13 = vpop.f32.mrf.mxu1 }
0x1274   :  { %7643 = vmatmul.mubr.msk.bf16.gmra.mxu0 %vm706_vm2, %v8922_v17 }
0x1275   :  { %7662 = vmatprep.mubr.msk.bf16.mxu0 %vm10876_vm13, %v8665_v1  ;;  %v2859_v30 = vpop.f32.mrf.mxu1 }
0x1276   :  { %v2860_v50 = vadd.f32 %v6605_v46, %v2859_v30 }
0x1277   :  { %v7631_v51 = vpop.f32.mrf.mxu1 }
0x1278   :  { %v3062_v53 = vpack.c.bf16 %v2860_v50, %v2857_v48 }
0x127a   :  { %v3073_v20 = vsel %vm716_vm6, %v3062_v53, 0 }
0x127b   :  { %7661 = vmatpush3.bf16.msra.mxu0 %v3073_v20 }
0x127c   :  { %7684 = vmatprep.subr.bf16.mxu0 %v8665_v1 }
0x12fc   :  { %v9685_v0 = vpop.f32.mrf.mxu0 }
0x12fe   :  { %v7570_v2 = vpop.f32.mrf.mxu0 }
0x1300   :  { %v9687_v6 = vpop.f32.mrf.mxu0 }
0x1302   :  { %v7571_v9 = vpop.f32.mrf.mxu0 }
0x131c   :  { %v2746_v10 = vpop.f32.mrf.mxu0 }
0x131d   :  { %v2747_v15 = vadd.f32 %v6596_v11, %v2746_v10 }
0x131e   :  { %v7610_v12 = vpop.f32.mrf.mxu0 }
0x131f   :  { %v364_v12 = vld [vmem:[%s10861_s2 + $0x38] sm:$0xff] }
0x1320   :  { %v2749_v14 = vpop.f32.mrf.mxu0 }
0x1321   :  { %v2750_v16 = vadd.f32 %v6596_v11, %v2749_v14 }
0x1322   :  { %v7611_v18 = vpop.f32.mrf.mxu0 }
0x1323   :  { %v2931_v22 = vpack.c.bf16 %v2750_v16, %v2747_v15 }
0x1324   :  { %v2901_v23 = vpop.f32.mrf.mxu0 }
0x1325   :  { %7647 = vmatpush3.bf16.xpose.msra.mxu1 %v2931_v22  ;;  %v2923_v26 = vmul.f32 %v8937_v33, %v2901_v23  ;;  %v365_v23 = vld [vmem:[%s10861_s2 + $0x40] sm:$0xff] }
0x1326   :  { %v7636_v24 = vpop.f32.mrf.mxu0  ;;  %7674 = vmatprep.subr.bf16.mxu1 %v8665_v1 }
0x1328   :  { %v2904_v25 = vpop.f32.mrf.mxu0 }
0x1329   :  { %v2924_v41 = vmul.f32 %v2904_v25, %v8839_v34 }
0x132a   :  { %v7637_v27 = vpop.f32.mrf.mxu0 }
0x132b   :  { %v2928_v28 = vpack.c.bf16 %v2924_v41, %v2923_v26 }
0x132c   :  { %v2909_v32 = vpop.f32.mrf.mxu0 }
0x132d   :  { %7649 = vmatmul.mubr.bf16.vlgmr.msra.gmra.mxu1 %v2928_v28  ;;  %v2925_v62 = vmul.f32 %v2909_v32, %v8853_v40  ;;  %v366_v28 = vld [vmem:[%s10861_s2 + $0x48] sm:$0xff] }
0x132e   :  { %v7640_v57 = vpop.f32.mrf.mxu0  ;;  %7652 = vmatprep.mubr.msk.bf16.mxu1 %vm10876_vm13, %v8665_v1 }
0x1330   :  { %v2912_v35 = vpop.f32.mrf.mxu0 }
0x1331   :  { %v2926_v58 = vmul.f32 %v2912_v35, %v8865_v43 }
0x1332   :  { %v7641_v36 = vpop.f32.mrf.mxu0 }
0x1333   :  { %v2929_v37 = vpack.c.bf16 %v2926_v58, %v2925_v62 }
0x1334   :  { %v2917_v38 = vpop.f32.mrf.mxu0 }
0x1335   :  { %7653 = vmatmul.mubr.bf16.gmra.mxu1 %v2929_v37  ;;  %v2927_v39 = vmul.f32 %v8948_v52, %v2917_v38 }
0x1336   :  { %v7644_v5 = vpop.f32.mrf.mxu0  ;;  %7656 = vmatprep.mubr.msk.bf16.mxu1 %vm10876_vm13, %v8665_v1 }
0x1337   :  { %v2930_v44 = vpack.c.bf16 %v2927_v39, %v2927_v39 }
0x1338   :  { %v2920_v42 = vpop.f32.mrf.mxu0 }
0x133a   :  { %v7645_v45 = vpop.f32.mrf.mxu0 }
0x133d   :  { %7657 = vmatmul.mubr.bf16.gmra.mxu1 %v2930_v44 }
0x133e   :  { %7680 = vmatprep.mubr.msk.bf16.mxu1 %vm10876_vm13, %v8665_v1 }
0x13ed   :  { %v2966_v54 = vpop.f32.mrf.mxu1 }
0x13ee   :  { %v2988_v56 = vmul.f32 0.35355338, %v2966_v54 }
0x13ef   :  { %v7650_v31 = vpop.f32.mrf.mxu1 }
0x13f0   :  { %v2993_v59 = vadd.f32 %v2988_v56, %v362_v55 }
0x13f1   :  { %v2969_v60 = vpop.f32.mrf.mxu1 }
0x13f2   :  { %v2989_v63 = vmul.f32 0.35355338, %v2969_v60  ;;  %v2998_v2 = vsel %vm706_vm2, %v2993_v59, -inf }
0x13f3   :  { %2999 = vmax.xlane.f32.xlu0 %v2998_v2  ;;  %v7651_v9 = vpop.f32.mrf.mxu1 }
0x13f4   :  { %v2994_v10 = vadd.f32 %v2989_v63, %v363_v61 }
0x13f5   :  { %v2974_v11 = vpop.f32.mrf.mxu1 }
0x13f6   :  { %v2990_v14 = vmul.f32 0.35355338, %v2974_v11  ;;  %v3001_v15 = vsel %vm706_vm2, %v2994_v10, -inf }
0x13f7   :  { %3002 = vmax.xlane.f32.xlu1 %v3001_v15  ;;  %v7654_v16 = vpop.f32.mrf.mxu1 }
0x13f8   :  { %v2995_v18 = vadd.f32 %v2990_v14, %v364_v12 }
0x13f9   :  { %v2977_v22 = vpop.f32.mrf.mxu1 }
0x13fa   :  { %v2991_v24 = vmul.f32 0.35355338, %v2977_v22  ;;  %v3004_v25 = vsel %vm706_vm2, %v2995_v18, -inf }
0x13fb   :  { %3005 = vmax.xlane.f32.xlu0 %v3004_v25  ;;  %v7655_v26 = vpop.f32.mrf.mxu1 }
0x13fc   :  { %v2996_v41 = vadd.f32 %v2991_v24, %v365_v23 }
0x13fd   :  { %v2982_v27 = vpop.f32.mrf.mxu1 }
0x13fe   :  { %v2992_v32 = vmul.f32 0.35355338, %v2982_v27  ;;  %v3007_v57 = vsel %vm706_vm2, %v2996_v41, -inf }
0x13ff   :  { %3008 = vmax.xlane.f32.xlu1 %v3007_v57  ;;  %v7658_v35 = vpop.f32.mrf.mxu1 }
0x1400   :  { %v2997_v62 = vadd.f32 %v2992_v32, %v366_v28 }
0x1401   :  { %v2985_v58 = vpop.f32.mrf.mxu1 }
0x1402   :  { %v3010_v36 = vsel %vm706_vm2, %v2997_v62, -inf  ;;  %v8328_v58 = vld [vmem:[%s10862_s3 + $0x3f0] sm:$0xff]  }
0x1403   :  { %3011 = vmax.xlane.f32.xlu0 %v3010_v36  ;;  %v7659_v37 = vpop.f32.mrf.mxu1  ;;  %v8329_v36 = vld [vmem:[%s10862_s3 + $0x3e8] sm:$0xff]  }
0x1404   :  { %v8330_v37 = vld [vmem:[%s10862_s3 + $0x3e0] sm:$0xff]  }
0x147c   :  { %v3000_v38 = vpop.xlane.xlu0 %2999 }
0x147d   :  { %v3013_v39 = vsub.f32 %v2993_v59, %v3000_v38  ;;  %v8331_v38 = vld [vmem:[%s10862_s3 + $0x3d8] sm:$0xff]  }
0x147f   :  { %v3018_v5 = vmul.f32 1.442695, %v3013_v39  ;;  %v8332_v39 = vld [vmem:[%s10862_s3 + $0x3d0] sm:$0xff]  }
0x1480   :  { %v3003_v42 = vpop.xlane.xlu1 %3002 }
0x1481   :  { %8523 = vpow2.f32 %v3018_v5  ;;  %v3014_v44 = vsub.f32 %v2994_v10, %v3003_v42 }
0x1483   :  { %v3020_v45 = vmul.f32 1.442695, %v3014_v44 }
0x1484   :  { %v3006_v46 = vpop.xlane.xlu0 %3005 }
0x1485   :  { %8525 = vpow2.f32 %v3020_v45  ;;  %v3015_v47 = vsub.f32 %v2995_v18, %v3006_v46 }
0x1487   :  { %v3022_v13 = vmul.f32 1.442695, %v3015_v47 }
0x1488   :  { %v3009_v48 = vpop.xlane.xlu1 %3008 }
0x1489   :  { %8527 = vpow2.f32 %v3022_v13  ;;  %v3016_v30 = vsub.f32 %v2996_v41, %v3009_v48 }
0x148b   :  { %v3024_v50 = vmul.f32 1.442695, %v3016_v30 }
0x148c   :  { %v3012_v51 = vpop.xlane.xlu0 %3011 }
0x148d   :  { %8529 = vpow2.f32 %v3024_v50  ;;  %v3017_v53 = vsub.f32 %v2997_v62, %v3012_v51  ;;  %v8327_v62 = vld [vmem:[%s10862_s3 + $0x3f8] sm:$0xff]  }
0x148e   :  { %v8524_v20 = vpop.eup %8523 }
0x148f   :  { %v3026_v54 = vmul.f32 1.442695, %v3017_v53  ;;  %v3028_v55 = vsel %vm706_vm2, %v8524_v20, 0.0 }
0x1490   :  { %3029 = vadd.xlane.f32.xlu1 %v3028_v55 }
0x1491   :  { %8531 = vpow2.f32 %v3026_v54 }
0x1492   :  { %v8526_v56 = vpop.eup %8525 }
0x1493   :  { %v3031_v31 = vsel %vm706_vm2, %v8526_v56, 0.0 }
0x1494   :  { %3032 = vadd.xlane.f32.xlu0 %v3031_v31 }
0x1496   :  { %v8528_v59 = vpop.eup %8527 }
0x1497   :  { %v3034_v60 = vsel %vm706_vm2, %v8528_v59, 0.0 }
0x1498   :  { %3035 = vadd.xlane.f32.xlu1 %v3034_v60 }
0x149a   :  { %v8530_v61 = vpop.eup %8529 }
0x149b   :  { %v3037_v63 = vsel %vm706_vm2, %v8530_v61, 0.0 }
0x149c   :  { %3038 = vadd.xlane.f32.xlu0 %v3037_v63 }
0x149e   :  { %v8532_v2 = vpop.eup %8531 }
0x149f   :  { %v3040_v9 = vsel %vm706_vm2, %v8532_v2, 0.0 }
0x14a0   :  { %3041 = vadd.xlane.f32.xlu1 %v3040_v9  ;;  %v8334_v9 = vld [vmem:[%s10862_s3 + $0x3c0] sm:$0xff]  }
0x1519   :  { %v3030_v10 = vpop.xlane.xlu1 %3029 }
0x151a   :  { %8533 = vrcp.f32 %v3030_v10 }
0x151d   :  { %v3033_v11 = vpop.xlane.xlu0 %3032 }
0x151e   :  { %8535 = vrcp.f32 %v3033_v11 }
0x1521   :  { %v3036_v12 = vpop.xlane.xlu1 %3035 }
0x1522   :  { %8537 = vrcp.f32 %v3036_v12 }
0x1525   :  { %v3039_v14 = vpop.xlane.xlu0 %3038 }
0x1526   :  { %8539 = vrcp.f32 %v3039_v14 }
0x1527   :  { %v8534_v15 = vpop.eup %8533 }
0x1528   :  { %v3048_v16 = vmul.f32 %v8534_v15, %v8524_v20 }
0x1529   :  { %v3042_v18 = vpop.xlane.xlu1 %3041 }
0x152a   :  { %6617 = vst.msk [vmem:[%s10865_s6 + $0x50] sm:$0xff] %vm706_vm2, %v3048_v16  ;;  %8541 = vrcp.f32 %v3042_v18 }
0x152b   :  { %v8536_v22 = vpop.eup %8535 }
0x152c   :  { %v3049_v23 = vmul.f32 %v8536_v22, %v8526_v56 }
0x152e   :  { %6618 = vst.msk [vmem:[%s10865_s6 + $0x58] sm:$0xff] %vm706_vm2, %v3049_v23  ;;  %v3059_v24 = vpack.c.bf16 %v3049_v23, %v3048_v16  ;;  %v6626_v16 = vld [vmem:[%s10863_s4 + $0xb8] ss:$0 sm:$0xff] }
0x152f   :  { %v8538_v25 = vpop.eup %8537 }
0x1530   :  { %7663 = vmatmul.mubr.msk.bf16.vlgmr.msra.gmra.mxu0 %vm706_vm2, %v3059_v24  ;;  %v3050_v26 = vmul.f32 %v8538_v25, %v8528_v59 }
0x1531   :  { %7666 = vmatprep.mubr.msk.bf16.mxu0 %vm10876_vm13, %v8665_v1  ;;  %7685 = vmatpush3.bf16.msra.mxu0 %v8327_v62 }
0x1532   :  { %6619 = vst.msk [vmem:[%s10865_s6 + $0x60] sm:$0xff] %vm706_vm2, %v3050_v26  ;;  %7686 = vmatprep.subr.bf16.mxu0 %v8665_v1 }
0x1533   :  { %v8540_v41 = vpop.eup %8539 }
0x1534   :  { %v3051_v27 = vmul.f32 %v8540_v41, %v8530_v61 }
0x1535   :  { %7687 = vmatpush3.bf16.msra.mxu0 %v8328_v58 }
0x1536   :  { %6620 = vst.msk [vmem:[%s10865_s6 + $0x68] sm:$0xff] %vm706_vm2, %v3051_v27  ;;  %v3060_v28 = vpack.c.bf16 %v3051_v27, %v3050_v26  ;;  %7688 = vmatprep.subr.bf16.mxu0 %v8665_v1 }
0x1537   :  { %v8542_v32 = vpop.eup %8541 }
0x1538   :  { %7667 = vmatmul.mubr.msk.bf16.gmra.mxu0 %vm706_vm2, %v3060_v28  ;;  %v3052_v57 = vmul.f32 %v8542_v32, %v8532_v2  ;;  %v8333_v2 = vld [vmem:[%s10862_s3 + $0x3c8] sm:$0xff]  }
0x1539   :  { %7670 = vmatprep.mubr.msk.bf16.mxu0 %vm10876_vm13, %v8665_v1  ;;  %7689 = vmatpush3.bf16.msra.mxu0 %v8329_v36 }
0x153a   :  { %6621 = vst.msk [vmem:[%s10865_s6 + $0x70] sm:$0xff] %vm706_vm2, %v3052_v57  ;;  %v3061_v35 = vpack.c.bf16 %v3052_v57, %v3052_v57  ;;  %7690 = vmatprep.subr.bf16.mxu0 %v8665_v1 }
0x153d   :  { %7691 = vmatpush3.bf16.msra.mxu0 %v8330_v37 }
0x153e   :  { %7692 = vmatprep.subr.bf16.mxu0 %v8665_v1 }
0x1540   :  { %7671 = vmatmul.mubr.msk.bf16.gmra.mxu0 %vm706_vm2, %v3061_v35  ;;  %v6576_v35 = vld [vmem:[%s10863_s4 + $0x88] ss:$0 sm:$0xff] }
0x1541   :  { %7700 = vmatprep.mubr.msk.bf16.mxu0 %vm10876_vm13, %v8665_v1  ;;  %7693 = vmatpush3.bf16.msra.mxu0 %v8331_v38  ;;  %v2485_v58 = vadd.f32 %v6576_v35, %v9687_v6 }
0x1542   :  { %7694 = vmatprep.subr.bf16.mxu0 %v8665_v1 }
0x1545   :  { %7695 = vmatpush3.bf16.msra.mxu0 %v8332_v39 }
0x1546   :  { %7696 = vmatprep.subr.bf16.mxu0 %v8665_v1 }
0x1549   :  { %7697 = vmatpush3.bf16.msra.mxu0 %v8333_v2 }
0x154a   :  { %7698 = vmatprep.subr.bf16.mxu0 %v8665_v1 }
0x154d   :  { %7699 = vmatpush3.bf16.msra.mxu0 %v8334_v9 }
0x154e   :  { %7724 = vmatprep.subr.bf16.mxu0 %v8665_v1 }
0x15f0   :  { %v3109_v5 = vpop.f32.mrf.mxu0 }
0x15f1   :  { %v3131_v61 = vmul.f32 %v8937_v33, %v3109_v5 }
0x15f2   :  { %v7664_v42 = vpop.f32.mrf.mxu0 }
0x15f4   :  { %v3112_v44 = vpop.f32.mrf.mxu0 }
0x15f5   :  { %v3132_v59 = vmul.f32 %v3112_v44, %v8839_v34 }
0x15f6   :  { %v7665_v45 = vpop.f32.mrf.mxu0 }
0x15f7   :  { %v3136_v63 = vpack.c.bf16 %v3132_v59, %v3131_v61  ;;  %v2482_v45 = vadd.f32 %v6576_v35, %v9685_v0  ;;  %v8337_v0 = vld [vmem:[%s10862_s3 + $0x428] sm:$0xff]  }
0x15f8   :  { %v3117_v46 = vpop.f32.mrf.mxu0  ;;  %v8347_v35 = vld [vmem:[%s10862_s3 + $0x468] sm:$0xff]  }
0x15f9   :  { %v3133_v56 = vmul.f32 %v3117_v46, %v8853_v40  ;;  %v2488_v6 = vadd.f32 %v2482_v45, %v9528_v3  ;;  %v8338_v3 = vld [vmem:[%s10862_s3 + $0x420] sm:$0xff]   ;;  %v8356_v45 = vld [vmem:[%s10862_s3 + $0x488] sm:$0xff]  }
0x15fa   :  { %v7668_v47 = vpop.f32.mrf.mxu0 }
0x15fb   :  { %v8335_v47 = vld [vmem:[%s10862_s3 + $0x438] sm:$0xff]  }
0x15fc   :  { %v3120_v13 = vpop.f32.mrf.mxu0 }
0x15fd   :  { %v3134_v20 = vmul.f32 %v3120_v13, %v8865_v43  ;;  %v8339_v13 = vld [vmem:[%s10862_s3 + $0x418] sm:$0xff]  }
0x15fe   :  { %v7669_v48 = vpop.f32.mrf.mxu0 }
0x15ff   :  { %v3137_v60 = vpack.c.bf16 %v3134_v20, %v3133_v56  ;;  %v8340_v48 = vld [vmem:[%s10862_s3 + $0x410] sm:$0xff]  }
0x1600   :  { %v3125_v30 = vpop.f32.mrf.mxu0 }
0x1601   :  { %v3135_v50 = vmul.f32 %v8948_v52, %v3125_v30  ;;  %v8341_v30 = vld [vmem:[%s10862_s3 + $0x408] sm:$0xff]  }
0x1602   :  { %v7672_v51 = vpop.f32.mrf.mxu0 }
0x1603   :  { %v3138_v53 = vpack.c.bf16 %v3135_v50, %v3135_v50  ;;  %v8342_v50 = vld [vmem:[%s10862_s3 + $0x400] sm:$0xff]  }
0x1604   :  { %v3128_v54 = vpop.f32.mrf.mxu0 }
0x1605   :  { %v3140_v55 = vsel %vm995_vm0, %v3138_v53, 0 }
0x1606   :  { %v7673_v31 = vpop.f32.mrf.mxu0  ;;  %7675 = vmatpush3.bf16.msra.mxu1 %v3140_v55 }
0x1607   :  { %7676 = vmatprep.subr.bf16.mxu1 %v8665_v1 }
0x160a   :  { %7677 = vmatpush3.bf16.msra.mxu1 %v3137_v60 }
0x160b   :  { %7678 = vmatprep.subr.bf16.mxu1 %v8665_v1 }
0x160e   :  { %7679 = vmatpush3.bf16.msra.mxu1 %v3136_v63 }
0x160f   :  { %7704 = vmatprep.subr.bf16.mxu1 %v8665_v1 }
0x1611   :  { %7681 = vmatmul.mubr.msk.bf16.vlgmr.msra.gmra.mxu1 %vm991_vm7, %v9054_v49 }
0x1612   :  { %7720 = vmatprep.mubr.msk.bf16.mxu1 %vm10876_vm13, %v8665_v1  ;;  %7705 = vmatpush3.bf16.msra.mxu1 %v8335_v47 }
0x1613   :  { %7706 = vmatprep.subr.bf16.mxu1 %v8665_v1 }
0x16d1   :  { %v3176_v10 = vpop.f32.mrf.mxu1 }
0x16d3   :  { %v7682_v11 = vpop.f32.mrf.mxu1 }
0x16d5   :  { %v3179_v12 = vpop.f32.mrf.mxu1 }
0x16d6   :  { %v3199_v14 = vpack.c.bf16 %v3179_v12, %v3176_v10 }
0x16d7   :  { %v7683_v15 = vpop.f32.mrf.mxu1 }
0x16d8   :  { %7701 = vmatmul.mubr.bf16.vlgmr.msra.gmra.mxu0 %v3199_v14 }
0x16d9   :  { %7740 = vmatprep.mubr.msk.bf16.mxu0 %vm10876_vm13, %v8665_v1 }
0x1798   :  { %v3287_v18 = vpop.f32.mrf.mxu0 }
0x1799   :  { %v3288_v22 = vadd.f32 %v6626_v16, %v3287_v18  ;;  %v6635_v18 = vld [vmem:[%s10863_s4 + $0xc0] ss:$0 sm:$0xff] }
0x179a   :  { %v7702_v23 = vpop.f32.mrf.mxu0 }
0x179b   :  { %v3294_v24 = vadd.f32 %v3288_v22, %v9569_v19  ;;  %v8343_v22 = vld [vmem:[%s10862_s3 + $0x478] sm:$0xff]  }
0x179c   :  { %v3290_v25 = vpop.f32.mrf.mxu0  ;;  %7725 = vmatpush3.bf16.msra.mxu0 %v8343_v22  ;;  %v6655_v22 = vld [vmem:[%s10863_s4 + $0xe0] ss:$0 sm:$0xff] }
0x179d   :  { %v3291_v26 = vadd.f32 %v6626_v16, %v3290_v25  ;;  %3298 = vadd.xlane.f32.xlu1 %v3294_v24  ;;  %7726 = vmatprep.subr.bf16.mxu0 %v8665_v1 }
0x179e   :  { %v7703_v41 = vpop.f32.mrf.mxu0 }
0x179f   :  { %v3295_v27 = vadd.f32 %v3291_v26, %v9574_v21  ;;  %v2489_v21 = vadd.f32 %v2485_v58, %v9530_v4  ;;  %v8336_v4 = vld [vmem:[%s10862_s3 + $0x430] sm:$0xff]   ;;  %v6636_v26 = vld [vmem:[%s10863_s4 + $0xc8] ss:$0 sm:$0xff]  ;;  %v8349_v58 = vld [vmem:[%s10862_s3 + $0x460] sm:$0xff]  }
0x17a0   :  { %7707 = vmatpush3.bf16.msra.mxu1 %v8336_v4  ;;  %v8345_v41 = vld [vmem:[%s10862_s3 + $0x470] sm:$0xff]  }
0x17a1   :  { %v3300_v28 = vsel %vm1157_vm10, %v3295_v27, 0.0  ;;  %v2494_v42 = vsel %vm1157_vm10, %v2489_v21, 0.0  ;;  %7708 = vmatprep.subr.bf16.mxu1 %v8665_v1  ;;  %7727 = vmatpush3.bf16.msra.mxu0 %v8345_v41 }
0x17a2   :  { %3301 = vadd.xlane.f32.xlu0 %v3300_v28  ;;  %7728 = vmatprep.subr.bf16.mxu0 %v8665_v1 }
0x17a4   :  { %7709 = vmatpush3.bf16.msra.mxu1 %v8337_v0 }
0x17a5   :  { %7710 = vmatprep.subr.bf16.mxu1 %v8665_v1  ;;  %7729 = vmatpush3.bf16.msra.mxu0 %v8347_v35 }
0x17a6   :  { %7730 = vmatprep.subr.bf16.mxu0 %v8665_v1 }
0x17a8   :  { %7711 = vmatpush3.bf16.msra.mxu1 %v8338_v3 }
0x17a9   :  { %7712 = vmatprep.subr.bf16.mxu1 %v8665_v1  ;;  %7731 = vmatpush3.bf16.msra.mxu0 %v8349_v58 }
0x17aa   :  { %7732 = vmatprep.subr.bf16.mxu0 %v8665_v1 }
0x17ac   :  { %7713 = vmatpush3.bf16.msra.mxu1 %v8339_v13 }
0x17ad   :  { %7714 = vmatprep.subr.bf16.mxu1 %v8665_v1 }
0x17b0   :  { %7715 = vmatpush3.bf16.msra.mxu1 %v8340_v48 }
0x17b1   :  { %7716 = vmatprep.subr.bf16.mxu1 %v8665_v1 }
0x17b4   :  { %7717 = vmatpush3.bf16.msra.mxu1 %v8341_v30 }
0x17b5   :  { %7718 = vmatprep.subr.bf16.mxu1 %v8665_v1 }
0x17b8   :  { %7719 = vmatpush3.bf16.msra.mxu1 %v8342_v50  ;;  %v6585_v50 = vld [vmem:[%s10863_s4 + $0x90] ss:$0 sm:$0xff] }
0x17b9   :  { %7744 = vmatprep.subr.bf16.mxu1 %v8665_v1 }
0x1826   :  { %v3299_v32 = vpop.xlane.xlu1 %3298 }
0x1827   :  { %v3303_v57 = vmul.f32 0.03125, %v3299_v32 }
0x1829   :  { %v3305_v62 = vsub.f32 %v3294_v24, %v3303_v57  ;;  %v8344_v57 = vld [vmem:[%s10862_s3 + $0x4b8] sm:$0xff]  }
0x182b   :  { %v3302_v36 = vpop.xlane.xlu0 %3301  ;;  %v3307_v19 = vmul.f32 %v9116_v29, %v3305_v62 }
0x182c   :  { %v3304_v37 = vmul.f32 0.03125, %v3302_v36  ;;  %v8346_v36 = vld [vmem:[%s10862_s3 + $0x4b0] sm:$0xff]  }
0x182d   :  { %v3309_v38 = vmul.f32 %v3307_v19, %v3307_v19 }
0x182e   :  { %v3306_v39 = vsub.f32 %v3295_v27, %v3304_v37  ;;  %v8348_v37 = vld [vmem:[%s10862_s3 + $0x4a8] sm:$0xff]  }
0x182f   :  { %3311 = vadd.xlane.f32.xlu0 %v3309_v38  ;;  %v8353_v38 = vld [vmem:[%s10862_s3 + $0x450] sm:$0xff]  }
0x1830   :  { %v3308_v5 = vmul.f32 %v9116_v29, %v3306_v39  ;;  %v8350_v39 = vld [vmem:[%s10862_s3 + $0x4a0] sm:$0xff]  }
0x1832   :  { %v3310_v44 = vmul.f32 %v3308_v5, %v3308_v5 }
0x1833   :  { %2495 = vadd.xlane.f32.xlu0 %v2494_v42  ;;  %v8357_v42 = vld [vmem:[%s10862_s3 + $0x440] sm:$0xff]  }
0x1834   :  { %v3313_v46 = vsel %vm1157_vm10, %v3310_v44, 0.0  ;;  %v8354_v44 = vld [vmem:[%s10862_s3 + $0x490] sm:$0xff]  }
0x1835   :  { %3314 = vadd.xlane.f32.xlu1 %v3313_v46  ;;  %v8358_v46 = vld [vmem:[%s10862_s3 + $0x480] sm:$0xff]  }
0x1839   :  { %2492 = vadd.xlane.f32.xlu1 %v2488_v6 }
0x18b8   :  { %v3312_v51 = vpop.xlane.xlu0 %3311 }
0x18b9   :  { %v3316_v53 = vmul.f32 0.03125, %v3312_v51 }
0x18bb   :  { %v3318_v20 = vadd.f32 1e-05, %v3316_v53 }
0x18bc   :  { %v2496_v54 = vpop.xlane.xlu0 %2495 }
0x18bd   :  { %8543 = vrsqrt.f32 %v3318_v20  ;;  %v2498_v55 = vmul.f32 0.03125, %v2496_v54  ;;  %v6586_v54 = vld [vmem:[%s10863_s4 + $0x98] ss:$0 sm:$0xff] }
0x18be   :  { %v3315_v56 = vpop.xlane.xlu1 %3314 }
0x18bf   :  { %v2500_v31 = vsub.f32 %v2489_v21, %v2498_v55  ;;  %v3317_v59 = vmul.f32 0.03125, %v3315_v56  ;;  %v8355_v21 = vld [vmem:[%s10862_s3 + $0x448] sm:$0xff]  }
0x18c1   :  { %v3319_v60 = vadd.f32 1e-05, %v3317_v59  ;;  %v9860_v61 = vmul.f32 %v9116_v29, %v2500_v31 }
0x18c2   :  { %v2493_v63 = vpop.xlane.xlu1 %2492 }
0x18c3   :  { %8545 = vrsqrt.f32 %v3319_v60  ;;  %v2497_v2 = vmul.f32 0.03125, %v2493_v63  ;;  %v2504_v9 = vmul.f32 %v9860_v61, %v9860_v61 }
0x18c5   :  { %v2499_v10 = vsub.f32 %v2488_v6, %v2497_v2  ;;  %v2507_v11 = vsel %vm1157_vm10, %v2504_v9, 0.0 }
0x18c6   :  { %2508 = vadd.xlane.f32.xlu1 %v2507_v11 }
0x18c7   :  { %v9866_v12 = vmul.f32 %v9116_v29, %v2499_v10 }
0x18c9   :  { %v2503_v14 = vmul.f32 %v9866_v12, %v9866_v12 }
0x18ca   :  { %v8544_v15 = vpop.eup %8543 }
0x18cb   :  { %2505 = vadd.xlane.f32.xlu0 %v2503_v14  ;;  %v3322_v16 = vmul.f32 %v8544_v15, %v3307_v19  ;;  %v8351_v19 = vld [vmem:[%s10862_s3 + $0x458] sm:$0xff]  }
0x18cc   :  { %7733 = vmatpush3.bf16.msra.mxu0 %v8351_v19 }
0x18cd   :  { %v3328_v25 = vmul.f32 %v6635_v18, %v3322_v16  ;;  %7734 = vmatprep.subr.bf16.mxu0 %v8665_v1 }
0x18cf   :  { %v9883_v28 = vadd.f32 %v6636_v26, %v3328_v25 }
0x18d0   :  { %v8546_v23 = vpop.eup %8545  ;;  %7735 = vmatpush3.bf16.msra.mxu0 %v8353_v38 }
0x18d1   :  { %v3323_v24 = vmul.f32 %v8546_v23, %v3308_v5  ;;  %7736 = vmatprep.subr.bf16.mxu0 %v8665_v1  ;;  %v8352_v5 = vld [vmem:[%s10862_s3 + $0x498] sm:$0xff]  }
0x18d3   :  { %v3329_v27 = vmul.f32 %v6635_v18, %v3323_v24  ;;  %v6646_v18 = vld [vmem:[%s10863_s4 + $0xd8] ss:$0 sm:$0xff] }
0x18d4   :  { %7737 = vmatpush3.bf16.msra.mxu0 %v8355_v21 }
0x18d5   :  { %v9885_v32 = vadd.f32 %v6636_v26, %v3329_v27  ;;  %7738 = vmatprep.subr.bf16.mxu0 %v8665_v1 }
0x18d7   :  { %v3352_v62 = vpack.c.bf16 %v9885_v32, %v9883_v28 }
0x18d8   :  { %7739 = vmatpush3.bf16.msra.mxu0 %v8357_v42 }
0x18d9   :  { %7721 = vmatmul.mubr.bf16.vlgmr.msra.gmra.mxu1 %v3352_v62  ;;  %7764 = vmatprep.subr.bf16.mxu0 %v8665_v1 }
0x18da   :  { %7745 = vmatpush3.bf16.msra.mxu1 %v8344_v57  ;;  %7760 = vmatprep.mubr.msk.bf16.mxu1 %vm10876_vm13, %v8665_v1 }
0x18db   :  { %7746 = vmatprep.subr.bf16.mxu1 %v8665_v1 }
0x18de   :  { %7747 = vmatpush3.bf16.msra.mxu1 %v8346_v36 }
0x18df   :  { %7748 = vmatprep.subr.bf16.mxu1 %v8665_v1 }
0x18e2   :  { %7749 = vmatpush3.bf16.msra.mxu1 %v8348_v37 }
0x18e3   :  { %7750 = vmatprep.subr.bf16.mxu1 %v8665_v1 }
0x18e6   :  { %7751 = vmatpush3.bf16.msra.mxu1 %v8350_v39 }
0x18e7   :  { %7752 = vmatprep.subr.bf16.mxu1 %v8665_v1 }
0x18ea   :  { %7753 = vmatpush3.bf16.msra.mxu1 %v8352_v5 }
0x18eb   :  { %7754 = vmatprep.subr.bf16.mxu1 %v8665_v1 }
0x18ee   :  { %7755 = vmatpush3.bf16.msra.mxu1 %v8354_v44 }
0x18ef   :  { %7756 = vmatprep.subr.bf16.mxu1 %v8665_v1 }
0x18f2   :  { %7757 = vmatpush3.bf16.msra.mxu1 %v8356_v45 }
0x18f3   :  { %7758 = vmatprep.subr.bf16.mxu1 %v8665_v1 }
0x18f6   :  { %7759 = vmatpush3.bf16.msra.mxu1 %v8358_v46 }
0x18f7   :  { %7778 = vmatprep.subr.bf16.mxu1 %v8665_v1 }
0x194f   :  { %v2509_v6 = vpop.xlane.xlu1 %2508 }
0x1950   :  { %v2511_v47 = vmul.f32 0.03125, %v2509_v6 }
0x1952   :  { %v2513_v4 = vadd.f32 1e-05, %v2511_v47 }
0x1954   :  { %8547 = vrsqrt.f32 %v2513_v4  ;;  %v2506_v0 = vpop.xlane.xlu0 %2505 }
0x1955   :  { %v2510_v3 = vmul.f32 0.03125, %v2506_v0 }
0x1957   :  { %v2512_v13 = vadd.f32 1e-05, %v2510_v3 }
0x1959   :  { %8549 = vrsqrt.f32 %v2512_v13 }
0x1961   :  { %v8548_v48 = vpop.eup %8547 }
0x1962   :  { %v2517_v30 = vmul.f32 %v8548_v48, %v9860_v61  ;;  %v6637_v61 = vld [vmem:[%s10863_s4 + $0xd0] ss:$0 sm:$0xff] }
0x1964   :  { %v2523_v20 = vmul.f32 %v6585_v50, %v2517_v30 }
0x1966   :  { %v8550_v51 = vpop.eup %8549  ;;  %v2529_v31 = vadd.f32 %v6586_v54, %v2523_v20 }
0x1967   :  { %v2516_v53 = vmul.f32 %v8550_v51, %v9866_v12 }
0x1969   :  { %v2522_v55 = vmul.f32 %v6585_v50, %v2516_v53 }
0x196b   :  { %v2528_v56 = vadd.f32 %v6586_v54, %v2522_v55  ;;  %v367_v55 = vld [vmem:[%s10861_s2 + $0x50] sm:$0xff] }
0x196d   :  { %v9956_v59 = vpack.c.bf16 %v2529_v31, %v2528_v56 }
0x196f   :  { %7741 = vmatmul.mubr.bf16.vlgmr.msra.gmra.mxu0 %v9956_v59  ;;  %7761 = vmatmul.mubr.bf16.vlgmr.msra.gmra.mxu1 %v9956_v59 }
0x1970   :  { %7766 = vmatprep.mubr.msk.bf16.mxu0 %vm10876_vm13, %v8665_v1  ;;  %7780 = vmatprep.mubr.msk.bf16.mxu1 %vm10876_vm13, %v8665_v1 }
0x1999   :  { %v3440_v60 = vpop.f32.mrf.mxu1 }
0x199a   :  { %v3441_v9 = vadd.f32 %v6637_v61, %v3440_v60 }
0x199b   :  { %v7722_v63 = vpop.f32.mrf.mxu1 }
0x199c   :  { %v368_v63 = vld [vmem:[%s10861_s2 + $0x58] sm:$0xff] }
0x199d   :  { %v3443_v2 = vpop.f32.mrf.mxu1 }
0x199e   :  { %v3444_v10 = vadd.f32 %v6637_v61, %v3443_v2 }
0x199f   :  { %v7723_v11 = vpop.f32.mrf.mxu1 }
0x19a0   :  { %v3668_v12 = vpack.c.bf16 %v3444_v10, %v3441_v9 }
0x19a2   :  { %v3670_v14 = vsel %vm716_vm6, %v3668_v12, 0 }
0x19a3   :  { %7765 = vmatpush3.bf16.msra.mxu0 %v3670_v14  ;;  %v369_v14 = vld [vmem:[%s10861_s2 + $0x60] sm:$0xff] }
0x19a4   :  { %7792 = vmatprep.subr.bf16.mxu0 %v8665_v1 }
0x19a6   :  { %7767 = vmatmul.mubr.msk.bf16.vlgmr.msra.gmra.mxu0 %vm706_vm2, %v8903_v7 }
0x19a7   :  { %7770 = vmatprep.mubr.msk.bf16.mxu0 %vm10876_vm13, %v8665_v1 }
0x19ae   :  { %7771 = vmatmul.mubr.msk.bf16.gmra.mxu0 %vm706_vm2, %v8905_v8 }
0x19af   :  { %7774 = vmatprep.mubr.msk.bf16.mxu0 %vm10876_vm13, %v8665_v1 }
0x19b6   :  { %7775 = vmatmul.mubr.msk.bf16.gmra.mxu0 %vm706_vm2, %v8922_v17 }
0x19b7   :  { %7794 = vmatprep.mubr.msk.bf16.mxu0 %vm10876_vm13, %v8665_v1 }
0x1a2f   :  { %v3551_v15 = vpop.f32.mrf.mxu0  ;;  %v3661_v16 = vpop.f32.mrf.mxu1 }
0x1a30   :  { %v3552_v41 = vadd.f32 %v6646_v18, %v3551_v15  ;;  %v3662_v27 = vadd.f32 %v6655_v22, %v3661_v16 }
0x1a31   :  { %v7742_v23 = vpop.f32.mrf.mxu0  ;;  %v7762_v24 = vpop.f32.mrf.mxu1 }
0x1a32   :  { %v370_v24 = vld [vmem:[%s10861_s2 + $0x68] sm:$0xff] }
0x1a33   :  { %v3554_v25 = vpop.f32.mrf.mxu0  ;;  %v3664_v26 = vpop.f32.mrf.mxu1 }
0x1a34   :  { %v3555_v57 = vadd.f32 %v6646_v18, %v3554_v25  ;;  %v3665_v35 = vadd.f32 %v6655_v22, %v3664_v26 }
0x1a35   :  { %v7743_v62 = vpop.f32.mrf.mxu0  ;;  %v7763_v58 = vpop.f32.mrf.mxu1 }
0x1a36   :  { %v3736_v36 = vpack.c.bf16 %v3555_v57, %v3552_v41  ;;  %v3867_v19 = vpack.c.bf16 %v3665_v35, %v3662_v27  ;;  %v371_v35 = vld [vmem:[%s10861_s2 + $0x70] sm:$0xff] }
0x1a38   :  { %7779 = vmatpush3.bf16.xpose.msra.mxu1 %v3736_v36  ;;  %v3878_v37 = vsel %vm716_vm6, %v3867_v19, 0 }
0x1a39   :  { %7793 = vmatpush3.bf16.msra.mxu0 %v3878_v37  ;;  %7806 = vmatprep.subr.bf16.mxu1 %v8665_v1 }
0x1a3a   :  { %7816 = vmatprep.subr.bf16.mxu0 %v8665_v1 }
0x1a66   :  { %v3706_v38 = vpop.f32.mrf.mxu0 }
0x1a67   :  { %v3728_v5 = vmul.f32 %v8937_v33, %v3706_v38 }
0x1a68   :  { %v7768_v39 = vpop.f32.mrf.mxu0 }
0x1a6a   :  { %v3709_v21 = vpop.f32.mrf.mxu0 }
0x1a6b   :  { %v3729_v42 = vmul.f32 %v3709_v21, %v8839_v34 }
0x1a6c   :  { %v7769_v44 = vpop.f32.mrf.mxu0 }
0x1a6d   :  { %v3733_v45 = vpack.c.bf16 %v3729_v42, %v3728_v5 }
0x1a6e   :  { %v3714_v46 = vpop.f32.mrf.mxu0 }
0x1a6f   :  { %7781 = vmatmul.mubr.bf16.vlgmr.msra.gmra.mxu1 %v3733_v45  ;;  %v3730_v4 = vmul.f32 %v3714_v46, %v8853_v40 }
0x1a70   :  { %v7772_v6 = vpop.f32.mrf.mxu0  ;;  %7784 = vmatprep.mubr.msk.bf16.mxu1 %vm10876_vm13, %v8665_v1 }
0x1a72   :  { %v3717_v47 = vpop.f32.mrf.mxu0 }
0x1a73   :  { %v3731_v0 = vmul.f32 %v3717_v47, %v8865_v43 }
0x1a74   :  { %v7773_v3 = vpop.f32.mrf.mxu0 }
0x1a75   :  { %v3734_v13 = vpack.c.bf16 %v3731_v0, %v3730_v4 }
0x1a76   :  { %v3722_v48 = vpop.f32.mrf.mxu0 }
0x1a77   :  { %7785 = vmatmul.mubr.bf16.gmra.mxu1 %v3734_v13  ;;  %v3732_v30 = vmul.f32 %v8948_v52, %v3722_v48 }
0x1a78   :  { %v7776_v50 = vpop.f32.mrf.mxu0  ;;  %7788 = vmatprep.mubr.msk.bf16.mxu1 %vm10876_vm13, %v8665_v1 }
0x1a79   :  { %v3735_v53 = vpack.c.bf16 %v3732_v30, %v3732_v30 }
0x1a7a   :  { %v3725_v51 = vpop.f32.mrf.mxu0 }
0x1a7c   :  { %v7777_v20 = vpop.f32.mrf.mxu0 }
0x1a7f   :  { %7789 = vmatmul.mubr.bf16.gmra.mxu1 %v3735_v53 }
0x1a80   :  { %7812 = vmatprep.mubr.msk.bf16.mxu1 %vm10876_vm13, %v8665_v1 }
0x1b2f   :  { %v3771_v54 = vpop.f32.mrf.mxu1 }
0x1b30   :  { %v3793_v56 = vmul.f32 0.35355338, %v3771_v54 }
0x1b31   :  { %v7782_v31 = vpop.f32.mrf.mxu1 }
0x1b32   :  { %v3798_v60 = vadd.f32 %v3793_v56, %v367_v55 }
0x1b33   :  { %v3774_v61 = vpop.f32.mrf.mxu1 }
0x1b34   :  { %v3794_v2 = vmul.f32 0.35355338, %v3774_v61  ;;  %v3803_v9 = vsel %vm706_vm2, %v3798_v60, -inf }
0x1b35   :  { %3804 = vmax.xlane.f32.xlu0 %v3803_v9  ;;  %v7783_v10 = vpop.f32.mrf.mxu1 }
0x1b36   :  { %v3799_v11 = vadd.f32 %v3794_v2, %v368_v63 }
0x1b37   :  { %v3779_v12 = vpop.f32.mrf.mxu1 }
0x1b38   :  { %v3795_v15 = vmul.f32 0.35355338, %v3779_v12  ;;  %v3806_v16 = vsel %vm706_vm2, %v3799_v11, -inf }
0x1b39   :  { %3807 = vmax.xlane.f32.xlu1 %v3806_v16  ;;  %v7786_v18 = vpop.f32.mrf.mxu1 }
0x1b3a   :  { %v3800_v22 = vadd.f32 %v3795_v15, %v369_v14 }
0x1b3b   :  { %v3782_v23 = vpop.f32.mrf.mxu1 }
0x1b3c   :  { %v3796_v25 = vmul.f32 0.35355338, %v3782_v23  ;;  %v3809_v26 = vsel %vm706_vm2, %v3800_v22, -inf }
0x1b3d   :  { %3810 = vmax.xlane.f32.xlu0 %v3809_v26  ;;  %v7787_v41 = vpop.f32.mrf.mxu1 }
0x1b3e   :  { %v3801_v27 = vadd.f32 %v3796_v25, %v370_v24 }
0x1b3f   :  { %v3787_v57 = vpop.f32.mrf.mxu1 }
0x1b40   :  { %v3797_v62 = vmul.f32 0.35355338, %v3787_v57  ;;  %v3812_v58 = vsel %vm706_vm2, %v3801_v27, -inf }
0x1b41   :  { %3813 = vmax.xlane.f32.xlu1 %v3812_v58  ;;  %v7790_v36 = vpop.f32.mrf.mxu1  ;;  %v8360_v58 = vld [vmem:[%s10862_s3 + $0x4f0] sm:$0xff]  }
0x1b42   :  { %v3802_v19 = vadd.f32 %v3797_v62, %v371_v35  ;;  %v8359_v62 = vld [vmem:[%s10862_s3 + $0x4f8] sm:$0xff]   ;;  %v8361_v36 = vld [vmem:[%s10862_s3 + $0x4e8] sm:$0xff]  }
0x1b43   :  { %v3790_v37 = vpop.f32.mrf.mxu1 }
0x1b44   :  { %v3815_v38 = vsel %vm706_vm2, %v3802_v19, -inf  ;;  %v8363_v37 = vld [vmem:[%s10862_s3 + $0x4d8] sm:$0xff]  }
0x1b45   :  { %3816 = vmax.xlane.f32.xlu0 %v3815_v38  ;;  %v7791_v39 = vpop.f32.mrf.mxu1  ;;  %v8364_v38 = vld [vmem:[%s10862_s3 + $0x4d0] sm:$0xff]  }
0x1bbe   :  { %v3805_v21 = vpop.xlane.xlu0 %3804 }
0x1bbf   :  { %v3818_v5 = vsub.f32 %v3798_v60, %v3805_v21 }
0x1bc1   :  { %v3823_v42 = vmul.f32 1.442695, %v3818_v5 }
0x1bc2   :  { %v3808_v44 = vpop.xlane.xlu1 %3807 }
0x1bc3   :  { %8551 = vpow2.f32 %v3823_v42  ;;  %v3819_v45 = vsub.f32 %v3799_v11, %v3808_v44 }
0x1bc5   :  { %v3825_v46 = vmul.f32 1.442695, %v3819_v45 }
0x1bc6   :  { %v3811_v6 = vpop.xlane.xlu0 %3810 }
0x1bc7   :  { %8553 = vpow2.f32 %v3825_v46  ;;  %v3820_v47 = vsub.f32 %v3800_v22, %v3811_v6 }
0x1bc9   :  { %v3827_v4 = vmul.f32 1.442695, %v3820_v47 }
0x1bca   :  { %v3814_v0 = vpop.xlane.xlu1 %3813 }
0x1bcb   :  { %8555 = vpow2.f32 %v3827_v4  ;;  %v3821_v3 = vsub.f32 %v3801_v27, %v3814_v0 }
0x1bcd   :  { %v3829_v13 = vmul.f32 1.442695, %v3821_v3 }
0x1bce   :  { %v3817_v48 = vpop.xlane.xlu0 %3816 }
0x1bcf   :  { %8557 = vpow2.f32 %v3829_v13  ;;  %v3822_v30 = vsub.f32 %v3802_v19, %v3817_v48  ;;  %v8362_v19 = vld [vmem:[%s10862_s3 + $0x4e0] sm:$0xff]  }
0x1bd0   :  { %v8552_v50 = vpop.eup %8551 }
0x1bd1   :  { %v3831_v51 = vmul.f32 1.442695, %v3822_v30  ;;  %v3833_v53 = vsel %vm706_vm2, %v8552_v50, 0.0 }
0x1bd2   :  { %3834 = vadd.xlane.f32.xlu1 %v3833_v53 }
0x1bd3   :  { %8559 = vpow2.f32 %v3831_v51 }
0x1bd4   :  { %v8554_v20 = vpop.eup %8553 }
0x1bd5   :  { %v3836_v54 = vsel %vm706_vm2, %v8554_v20, 0.0 }
0x1bd6   :  { %3837 = vadd.xlane.f32.xlu0 %v3836_v54 }
0x1bd8   :  { %v8556_v55 = vpop.eup %8555 }
0x1bd9   :  { %v3839_v56 = vsel %vm706_vm2, %v8556_v55, 0.0 }
0x1bda   :  { %3840 = vadd.xlane.f32.xlu1 %v3839_v56  ;;  %v8365_v56 = vld [vmem:[%s10862_s3 + $0x4c8] sm:$0xff]  }
0x1bdc   :  { %v8558_v31 = vpop.eup %8557 }
0x1bdd   :  { %v3842_v60 = vsel %vm706_vm2, %v8558_v31, 0.0 }
0x1bde   :  { %3843 = vadd.xlane.f32.xlu0 %v3842_v60 }
0x1be0   :  { %v8560_v61 = vpop.eup %8559 }
0x1be1   :  { %v3845_v63 = vsel %vm706_vm2, %v8560_v61, 0.0 }
0x1be2   :  { %3846 = vadd.xlane.f32.xlu1 %v3845_v63 }
0x1c5b   :  { %v3835_v2 = vpop.xlane.xlu1 %3834 }
0x1c5c   :  { %8561 = vrcp.f32 %v3835_v2 }
0x1c5f   :  { %v3838_v9 = vpop.xlane.xlu0 %3837 }
0x1c60   :  { %8563 = vrcp.f32 %v3838_v9 }
0x1c63   :  { %v3841_v10 = vpop.xlane.xlu1 %3840 }
0x1c64   :  { %8565 = vrcp.f32 %v3841_v10  ;;  %v6676_v10 = vld [vmem:[%s10863_s4 + $0xe8] ss:$0 sm:$0xff] }
0x1c67   :  { %v3844_v11 = vpop.xlane.xlu0 %3843 }
0x1c68   :  { %8567 = vrcp.f32 %v3844_v11 }
0x1c69   :  { %v8562_v12 = vpop.eup %8561 }
0x1c6a   :  { %v3853_v14 = vmul.f32 %v8562_v12, %v8552_v50 }
0x1c6b   :  { %v3847_v15 = vpop.xlane.xlu1 %3846 }
0x1c6c   :  { %6667 = vst.msk [vmem:[%s10865_s6 + $0xa0] sm:$0xff] %vm706_vm2, %v3853_v14  ;;  %8569 = vrcp.f32 %v3847_v15 }
0x1c6d   :  { %v8564_v16 = vpop.eup %8563 }
0x1c6e   :  { %v3854_v18 = vmul.f32 %v8564_v16, %v8554_v20 }
0x1c70   :  { %6668 = vst.msk [vmem:[%s10865_s6 + $0xa8] sm:$0xff] %vm706_vm2, %v3854_v18  ;;  %v3864_v22 = vpack.c.bf16 %v3854_v18, %v3853_v14 }
0x1c71   :  { %v8566_v23 = vpop.eup %8565 }
0x1c72   :  { %7795 = vmatmul.mubr.msk.bf16.vlgmr.msra.gmra.mxu0 %vm706_vm2, %v3864_v22  ;;  %v3855_v24 = vmul.f32 %v8566_v23, %v8556_v55 }
0x1c73   :  { %7798 = vmatprep.mubr.msk.bf16.mxu0 %vm10876_vm13, %v8665_v1  ;;  %7817 = vmatpush3.bf16.msra.mxu0 %v8359_v62 }
0x1c74   :  { %6669 = vst.msk [vmem:[%s10865_s6 + $0xb0] sm:$0xff] %vm706_vm2, %v3855_v24  ;;  %7818 = vmatprep.subr.bf16.mxu0 %v8665_v1 }
0x1c75   :  { %v8568_v25 = vpop.eup %8567 }
0x1c76   :  { %v3856_v26 = vmul.f32 %v8568_v25, %v8558_v31  ;;  %v8366_v31 = vld [vmem:[%s10862_s3 + $0x4c0] sm:$0xff]  }
0x1c77   :  { %7819 = vmatpush3.bf16.msra.mxu0 %v8360_v58 }
0x1c78   :  { %6670 = vst.msk [vmem:[%s10865_s6 + $0xb8] sm:$0xff] %vm706_vm2, %v3856_v26  ;;  %v3865_v41 = vpack.c.bf16 %v3856_v26, %v3855_v24  ;;  %7820 = vmatprep.subr.bf16.mxu0 %v8665_v1 }
0x1c79   :  { %v8570_v27 = vpop.eup %8569 }
0x1c7a   :  { %7799 = vmatmul.mubr.msk.bf16.gmra.mxu0 %vm706_vm2, %v3865_v41  ;;  %v3857_v57 = vmul.f32 %v8570_v27, %v8560_v61 }
0x1c7b   :  { %7802 = vmatprep.mubr.msk.bf16.mxu0 %vm10876_vm13, %v8665_v1  ;;  %7821 = vmatpush3.bf16.msra.mxu0 %v8361_v36 }
0x1c7c   :  { %6671 = vst.msk [vmem:[%s10865_s6 + $0xc0] sm:$0xff] %vm706_vm2, %v3857_v57  ;;  %v3866_v35 = vpack.c.bf16 %v3857_v57, %v3857_v57  ;;  %7822 = vmatprep.subr.bf16.mxu0 %v8665_v1 }
0x1c7f   :  { %7823 = vmatpush3.bf16.msra.mxu0 %v8362_v19 }
0x1c80   :  { %7824 = vmatprep.subr.bf16.mxu0 %v8665_v1 }
0x1c82   :  { %7803 = vmatmul.mubr.msk.bf16.gmra.mxu0 %vm706_vm2, %v3866_v35 }
0x1c83   :  { %7832 = vmatprep.mubr.msk.bf16.mxu0 %vm10876_vm13, %v8665_v1  ;;  %7825 = vmatpush3.bf16.msra.mxu0 %v8363_v37  ;;  %v8368_v37 = vld [vmem:[%s10862_s3 + $0x530] sm:$0xff]  }
0x1c84   :  { %7826 = vmatprep.subr.bf16.mxu0 %v8665_v1 }
0x1c87   :  { %7827 = vmatpush3.bf16.msra.mxu0 %v8364_v38  ;;  %v8369_v38 = vld [vmem:[%s10862_s3 + $0x528] sm:$0xff]  }
0x1c88   :  { %7828 = vmatprep.subr.bf16.mxu0 %v8665_v1 }
0x1c8b   :  { %7829 = vmatpush3.bf16.msra.mxu0 %v8365_v56 }
0x1c8c   :  { %7830 = vmatprep.subr.bf16.mxu0 %v8665_v1 }
0x1c8f   :  { %7831 = vmatpush3.bf16.msra.mxu0 %v8366_v31  ;;  %v6686_v31 = vld [vmem:[%s10863_s4 + $0xf8] ss:$0 sm:$0xff] }
0x1c90   :  { %7856 = vmatprep.subr.bf16.mxu0 %v8665_v1 }
0x1d32   :  { %v3914_v39 = vpop.f32.mrf.mxu0 }
0x1d33   :  { %v3936_v54 = vmul.f32 %v8937_v33, %v3914_v39  ;;  %v8370_v39 = vld [vmem:[%s10862_s3 + $0x520] sm:$0xff]  }
0x1d34   :  { %v7796_v21 = vpop.f32.mrf.mxu0 }
0x1d35   :  { %v8371_v21 = vld [vmem:[%s10862_s3 + $0x518] sm:$0xff]  }
0x1d36   :  { %v3917_v5 = vpop.f32.mrf.mxu0 }
0x1d37   :  { %v3937_v53 = vmul.f32 %v3917_v5, %v8839_v34  ;;  %v8372_v5 = vld [vmem:[%s10862_s3 + $0x510] sm:$0xff]  }
0x1d38   :  { %v7797_v42 = vpop.f32.mrf.mxu0 }
0x1d39   :  { %v3941_v55 = vpack.c.bf16 %v3937_v53, %v3936_v54  ;;  %v8373_v42 = vld [vmem:[%s10862_s3 + $0x508] sm:$0xff]  }
0x1d3a   :  { %v3922_v44 = vpop.f32.mrf.mxu0 }
0x1d3b   :  { %v3938_v50 = vmul.f32 %v3922_v44, %v8853_v40  ;;  %v8374_v44 = vld [vmem:[%s10862_s3 + $0x500] sm:$0xff]  }
0x1d3c   :  { %v7800_v45 = vpop.f32.mrf.mxu0 }
0x1d3d   :  { %v8375_v45 = vld [vmem:[%s10862_s3 + $0x578] sm:$0xff]  }
0x1d3e   :  { %v3925_v46 = vpop.f32.mrf.mxu0 }
0x1d3f   :  { %v3939_v13 = vmul.f32 %v3925_v46, %v8865_v43  ;;  %v8376_v46 = vld [vmem:[%s10862_s3 + $0x570] sm:$0xff]  }
0x1d40   :  { %v7801_v6 = vpop.f32.mrf.mxu0 }
0x1d41   :  { %v3942_v20 = vpack.c.bf16 %v3939_v13, %v3938_v50  ;;  %v8377_v6 = vld [vmem:[%s10862_s3 + $0x568] sm:$0xff]  }
0x1d42   :  { %v3930_v47 = vpop.f32.mrf.mxu0 }
0x1d43   :  { %v3940_v4 = vmul.f32 %v8948_v52, %v3930_v47  ;;  %v8378_v47 = vld [vmem:[%s10862_s3 + $0x560] sm:$0xff]  }
0x1d44   :  { %v7804_v0 = vpop.f32.mrf.mxu0 }
0x1d45   :  { %v3943_v3 = vpack.c.bf16 %v3940_v4, %v3940_v4  ;;  %v8379_v4 = vld [vmem:[%s10862_s3 + $0x558] sm:$0xff]  }
0x1d46   :  { %v3933_v48 = vpop.f32.mrf.mxu0 }
0x1d47   :  { %v3945_v30 = vsel %vm995_vm0, %v3943_v3, 0 }
0x1d48   :  { %v7805_v51 = vpop.f32.mrf.mxu0  ;;  %7807 = vmatpush3.bf16.msra.mxu1 %v3945_v30 }
0x1d49   :  { %7808 = vmatprep.subr.bf16.mxu1 %v8665_v1 }
0x1d4c   :  { %7809 = vmatpush3.bf16.msra.mxu1 %v3942_v20  ;;  %v6685_v20 = vld [vmem:[%s10863_s4 + $0xf0] ss:$0 sm:$0xff] }
0x1d4d   :  { %7810 = vmatprep.subr.bf16.mxu1 %v8665_v1 }
0x1d50   :  { %7811 = vmatpush3.bf16.msra.mxu1 %v3941_v55 }
0x1d51   :  { %7836 = vmatprep.subr.bf16.mxu1 %v8665_v1 }
0x1d53   :  { %7813 = vmatmul.mubr.msk.bf16.vlgmr.msra.gmra.mxu1 %vm991_vm7, %v9054_v49 }
0x1d54   :  { %7852 = vmatprep.mubr.msk.bf16.mxu1 %vm10876_vm13, %v8665_v1 }
0x1e13   :  { %v3981_v60 = vpop.f32.mrf.mxu1 }
0x1e15   :  { %v7814_v61 = vpop.f32.mrf.mxu1 }
0x1e17   :  { %v3984_v63 = vpop.f32.mrf.mxu1 }
0x1e18   :  { %v4004_v2 = vpack.c.bf16 %v3984_v63, %v3981_v60 }
0x1e19   :  { %v7815_v9 = vpop.f32.mrf.mxu1 }
0x1e1a   :  { %7833 = vmatmul.mubr.bf16.vlgmr.msra.gmra.mxu0 %v4004_v2  ;;  %v8380_v9 = vld [vmem:[%s10862_s3 + $0x550] sm:$0xff]  }
0x1e1b   :  { %7872 = vmatprep.mubr.msk.bf16.mxu0 %vm10876_vm13, %v8665_v1  ;;  %7857 = vmatpush3.bf16.msra.mxu0 %v8375_v45 }
0x1e1c   :  { %7858 = vmatprep.subr.bf16.mxu0 %v8665_v1 }
0x1e1f   :  { %7859 = vmatpush3.bf16.msra.mxu0 %v8376_v46 }
0x1e20   :  { %7860 = vmatprep.subr.bf16.mxu0 %v8665_v1 }
0x1e23   :  { %7861 = vmatpush3.bf16.msra.mxu0 %v8377_v6 }
0x1e24   :  { %7862 = vmatprep.subr.bf16.mxu0 %v8665_v1 }
0x1e27   :  { %7863 = vmatpush3.bf16.msra.mxu0 %v8378_v47 }
0x1e28   :  { %7864 = vmatprep.subr.bf16.mxu0 %v8665_v1 }
0x1e2b   :  { %7865 = vmatpush3.bf16.msra.mxu0 %v8379_v4  ;;  %v8383_v4 = vld [vmem:[%s10862_s3 + $0x5b8] sm:$0xff]  }
0x1e2c   :  { %7866 = vmatprep.subr.bf16.mxu0 %v8665_v1 }
0x1e2f   :  { %7867 = vmatpush3.bf16.msra.mxu0 %v8380_v9 }
0x1e30   :  { %7868 = vmatprep.subr.bf16.mxu0 %v8665_v1 }
0x1eda   :  { %v4092_v11 = vpop.f32.mrf.mxu0 }
0x1edb   :  { %v4093_v12 = vadd.f32 %v6676_v10, %v4092_v11  ;;  %v8382_v11 = vld [vmem:[%s10862_s3 + $0x540] sm:$0xff]  }
0x1edc   :  { %v7834_v14 = vpop.f32.mrf.mxu0 }
0x1edd   :  { %v4099_v15 = vadd.f32 %v4093_v12, %v9883_v28  ;;  %v6687_v12 = vld [vmem:[%s10863_s4 + $0x100] ss:$0 sm:$0xff] }
0x1ede   :  { %v4095_v16 = vpop.f32.mrf.mxu0 }
0x1edf   :  { %v4096_v18 = vadd.f32 %v6676_v10, %v4095_v16  ;;  %4103 = vadd.xlane.f32.xlu1 %v4099_v15  ;;  %v8381_v10 = vld [vmem:[%s10862_s3 + $0x548] sm:$0xff]  }
0x1ee0   :  { %v7835_v22 = vpop.f32.mrf.mxu0  ;;  %7869 = vmatpush3.bf16.msra.mxu0 %v8381_v10 }
0x1ee1   :  { %v4100_v23 = vadd.f32 %v4096_v18, %v9885_v32  ;;  %v8367_v32 = vld [vmem:[%s10862_s3 + $0x538] sm:$0xff]   ;;  %7870 = vmatprep.subr.bf16.mxu0 %v8665_v1 }
0x1ee2   :  { %7837 = vmatpush3.bf16.msra.mxu1 %v8367_v32 }
0x1ee3   :  { %v4105_v24 = vsel %vm1157_vm10, %v4100_v23, 0.0  ;;  %7838 = vmatprep.subr.bf16.mxu1 %v8665_v1 }
0x1ee4   :  { %4106 = vadd.xlane.f32.xlu0 %v4105_v24  ;;  %7871 = vmatpush3.bf16.msra.mxu0 %v8382_v11 }
0x1ee5   :  { %7896 = vmatprep.subr.bf16.mxu0 %v8665_v1 }
0x1ee6   :  { %7839 = vmatpush3.bf16.msra.mxu1 %v8368_v37 }
0x1ee7   :  { %7840 = vmatprep.subr.bf16.mxu1 %v8665_v1 }
0x1eea   :  { %7841 = vmatpush3.bf16.msra.mxu1 %v8369_v38 }
0x1eeb   :  { %7842 = vmatprep.subr.bf16.mxu1 %v8665_v1 }
0x1eee   :  { %7843 = vmatpush3.bf16.msra.mxu1 %v8370_v39 }
0x1eef   :  { %7844 = vmatprep.subr.bf16.mxu1 %v8665_v1 }
0x1ef2   :  { %7845 = vmatpush3.bf16.msra.mxu1 %v8371_v21 }
0x1ef3   :  { %7846 = vmatprep.subr.bf16.mxu1 %v8665_v1 }
0x1ef6   :  { %7847 = vmatpush3.bf16.msra.mxu1 %v8372_v5 }
0x1ef7   :  { %7848 = vmatprep.subr.bf16.mxu1 %v8665_v1 }
0x1efa   :  { %7849 = vmatpush3.bf16.msra.mxu1 %v8373_v42 }
0x1efb   :  { %7850 = vmatprep.subr.bf16.mxu1 %v8665_v1 }
0x1efe   :  { %7851 = vmatpush3.bf16.msra.mxu1 %v8374_v44 }
0x1eff   :  { %7876 = vmatprep.subr.bf16.mxu1 %v8665_v1 }
0x1f68   :  { %v4104_v25 = vpop.xlane.xlu1 %4103 }
0x1f69   :  { %v4108_v26 = vmul.f32 0.03125, %v4104_v25 }
0x1f6b   :  { %v4110_v41 = vsub.f32 %v4099_v15, %v4108_v26 }
0x1f6d   :  { %v4107_v27 = vpop.xlane.xlu0 %4106  ;;  %v4112_v57 = vmul.f32 %v9116_v29, %v4110_v41  ;;  %v6696_v41 = vld [vmem:[%s10863_s4 + $0x108] ss:$0 sm:$0xff] }
0x1f6e   :  { %v4109_v35 = vmul.f32 0.03125, %v4107_v27 }
0x1f6f   :  { %v4114_v62 = vmul.f32 %v4112_v57, %v4112_v57 }
0x1f70   :  { %v4111_v58 = vsub.f32 %v4100_v23, %v4109_v35 }
0x1f71   :  { %4116 = vadd.xlane.f32.xlu0 %v4114_v62 }
0x1f72   :  { %v4113_v28 = vmul.f32 %v9116_v29, %v4111_v58 }
0x1f74   :  { %v4115_v36 = vmul.f32 %v4113_v28, %v4113_v28 }
0x1f76   :  { %v4118_v19 = vsel %vm1157_vm10, %v4115_v36, 0.0 }
0x1f77   :  { %4119 = vadd.xlane.f32.xlu1 %v4118_v19 }
0x1ffa   :  { %v4117_v0 = vpop.xlane.xlu0 %4116 }
0x1ffb   :  { %v4121_v3 = vmul.f32 0.03125, %v4117_v0  ;;  %v8384_v0 = vld [vmem:[%s10862_s3 + $0x5f8] sm:$0xff]  }
0x1ffd   :  { %v4123_v13 = vadd.f32 1e-05, %v4121_v3  ;;  %v8385_v3 = vld [vmem:[%s10862_s3 + $0x5b0] sm:$0xff]  }
0x1fff   :  { %8571 = vrsqrt.f32 %v4123_v13  ;;  %v8386_v13 = vld [vmem:[%s10862_s3 + $0x5f0] sm:$0xff]  }
0x2000   :  { %v4120_v48 = vpop.xlane.xlu1 %4119 }
0x2001   :  { %v4122_v30 = vmul.f32 0.03125, %v4120_v48  ;;  %v8387_v48 = vld [vmem:[%s10862_s3 + $0x5a8] sm:$0xff]  }
0x2003   :  { %v4124_v50 = vadd.f32 1e-05, %v4122_v30  ;;  %v8388_v30 = vld [vmem:[%s10862_s3 + $0x5e8] sm:$0xff]  }
0x2005   :  { %8573 = vrsqrt.f32 %v4124_v50  ;;  %v8389_v50 = vld [vmem:[%s10862_s3 + $0x5a0] sm:$0xff]  }
0x200c   :  { %v8572_v51 = vpop.eup %8571 }
0x200d   :  { %v4127_v53 = vmul.f32 %v8572_v51, %v4112_v57  ;;  %v8390_v51 = vld [vmem:[%s10862_s3 + $0x5e0] sm:$0xff]  }
0x200f   :  { %v4133_v56 = vmul.f32 %v6685_v20, %v4127_v53  ;;  %v8391_v53 = vld [vmem:[%s10862_s3 + $0x598] sm:$0xff]  }
0x2011   :  { %v4139_v61 = vadd.f32 %v6686_v31, %v4133_v56  ;;  %v8395_v56 = vld [vmem:[%s10862_s3 + $0x588] sm:$0xff]  }
0x2012   :  { %v8574_v54 = vpop.eup %8573 }
0x2013   :  { %v4128_v55 = vmul.f32 %v8574_v54, %v4113_v28  ;;  %v8393_v54 = vld [vmem:[%s10862_s3 + $0x590] sm:$0xff]  }
0x2015   :  { %v4134_v60 = vmul.f32 %v6685_v20, %v4128_v55  ;;  %v8392_v20 = vld [vmem:[%s10862_s3 + $0x5d8] sm:$0xff]   ;;  %v8394_v55 = vld [vmem:[%s10862_s3 + $0x5d0] sm:$0xff]  }
0x2017   :  { %v4140_v63 = vadd.f32 %v6686_v31, %v4134_v60  ;;  %v8396_v31 = vld [vmem:[%s10862_s3 + $0x5c8] sm:$0xff]   ;;  %v8397_v60 = vld [vmem:[%s10862_s3 + $0x580] sm:$0xff]  }
0x2019   :  { %v4157_v2 = vpack.c.bf16 %v4140_v63, %v4139_v61 }
0x201b   :  { %7853 = vmatmul.mubr.bf16.vlgmr.msra.gmra.mxu1 %v4157_v2 }
0x201c   :  { %7892 = vmatprep.mubr.msk.bf16.mxu1 %vm10876_vm13, %v8665_v1  ;;  %7877 = vmatpush3.bf16.msra.mxu1 %v8383_v4 }
0x201d   :  { %7878 = vmatprep.subr.bf16.mxu1 %v8665_v1 }
0x2020   :  { %7879 = vmatpush3.bf16.msra.mxu1 %v8385_v3 }
0x2021   :  { %7880 = vmatprep.subr.bf16.mxu1 %v8665_v1 }
0x2024   :  { %7881 = vmatpush3.bf16.msra.mxu1 %v8387_v48 }
0x2025   :  { %7882 = vmatprep.subr.bf16.mxu1 %v8665_v1 }
0x2028   :  { %7883 = vmatpush3.bf16.msra.mxu1 %v8389_v50 }
0x2029   :  { %7884 = vmatprep.subr.bf16.mxu1 %v8665_v1 }
0x202c   :  { %7885 = vmatpush3.bf16.msra.mxu1 %v8391_v53 }
0x202d   :  { %7886 = vmatprep.subr.bf16.mxu1 %v8665_v1 }
0x2030   :  { %7887 = vmatpush3.bf16.msra.mxu1 %v8393_v54 }
0x2031   :  { %7888 = vmatprep.subr.bf16.mxu1 %v8665_v1 }
0x2034   :  { %7889 = vmatpush3.bf16.msra.mxu1 %v8395_v56 }
0x2035   :  { %7890 = vmatprep.subr.bf16.mxu1 %v8665_v1 }
0x2038   :  { %7891 = vmatpush3.bf16.msra.mxu1 %v8397_v60 }
0x2039   :  { %7916 = vmatprep.subr.bf16.mxu1 %v8665_v1 }
0x20db   :  { %v4245_v14 = vpop.f32.mrf.mxu1 }
0x20dc   :  { %v4246_v16 = vadd.f32 %v6687_v12, %v4245_v14 }
0x20dd   :  { %v7854_v15 = vpop.f32.mrf.mxu1 }
0x20de   :  { %v4252_v24 = vmax.f32 %v4246_v16, 0.0  ;;  %v6705_v16 = vld [vmem:[%s10863_s4 + $0x110] ss:$0 sm:$0xff] }
0x20df   :  { %v4248_v18 = vpop.f32.mrf.mxu1 }
0x20e0   :  { %v4249_v22 = vadd.f32 %v6687_v12, %v4248_v18 }
0x20e1   :  { %v7855_v23 = vpop.f32.mrf.mxu1 }
0x20e2   :  { %v4253_v25 = vmax.f32 %v4249_v22, 0.0 }
0x20e4   :  { %v4270_v26 = vpack.c.bf16 %v4253_v25, %v4252_v24  ;;  %v6706_v24 = vld [vmem:[%s10863_s4 + $0x118] ss:$0 sm:$0xff] }
0x20e6   :  { %7873 = vmatmul.mubr.bf16.vlgmr.msra.gmra.mxu0 %v4270_v26 }
0x20e7   :  { %7912 = vmatprep.mubr.msk.bf16.mxu0 %vm10876_vm13, %v8665_v1  ;;  %7897 = vmatpush3.bf16.msra.mxu0 %v8384_v0 }
0x20e8   :  { %7898 = vmatprep.subr.bf16.mxu0 %v8665_v1 }
0x20eb   :  { %7899 = vmatpush3.bf16.msra.mxu0 %v8386_v13 }
0x20ec   :  { %7900 = vmatprep.subr.bf16.mxu0 %v8665_v1 }
0x20ef   :  { %7901 = vmatpush3.bf16.msra.mxu0 %v8388_v30 }
0x20f0   :  { %7902 = vmatprep.subr.bf16.mxu0 %v8665_v1 }
0x20f3   :  { %7903 = vmatpush3.bf16.msra.mxu0 %v8390_v51  ;;  %v6725_v51 = vld [vmem:[%s10863_s4 + $0x130] ss:$0 sm:$0xff] }
0x20f4   :  { %7904 = vmatprep.subr.bf16.mxu0 %v8665_v1 }
0x20f7   :  { %7905 = vmatpush3.bf16.msra.mxu0 %v8392_v20 }
0x20f8   :  { %7906 = vmatprep.subr.bf16.mxu0 %v8665_v1 }
0x20fb   :  { %7907 = vmatpush3.bf16.msra.mxu0 %v8394_v55 }
0x20fc   :  { %7908 = vmatprep.subr.bf16.mxu0 %v8665_v1 }
0x20ff   :  { %7909 = vmatpush3.bf16.msra.mxu0 %v8396_v31 }
0x2100   :  { %7910 = vmatprep.subr.bf16.mxu0 %v8665_v1 }
0x21a6   :  { %v4358_v27 = vpop.f32.mrf.mxu0 }
0x21a7   :  { %v4359_v57 = vadd.f32 %v6696_v41, %v4358_v27  ;;  %v8399_v27 = vld [vmem:[%s10862_s3 + $0x638] sm:$0xff]  }
0x21a8   :  { %v7874_v35 = vpop.f32.mrf.mxu0 }
0x21a9   :  { %v4365_v62 = vadd.f32 %v4359_v57, %v4139_v61  ;;  %v8398_v61 = vld [vmem:[%s10862_s3 + $0x5c0] sm:$0xff]   ;;  %v8400_v35 = vld [vmem:[%s10862_s3 + $0x630] sm:$0xff]  }
0x21aa   :  { %v4361_v58 = vpop.f32.mrf.mxu0  ;;  %7911 = vmatpush3.bf16.msra.mxu0 %v8398_v61 }
0x21ab   :  { %v4362_v28 = vadd.f32 %v6696_v41, %v4361_v58  ;;  %4369 = vadd.xlane.f32.xlu1 %v4365_v62  ;;  %7936 = vmatprep.subr.bf16.mxu0 %v8665_v1  ;;  %v8402_v58 = vld [vmem:[%s10862_s3 + $0x620] sm:$0xff]  }
0x21ac   :  { %v7875_v36 = vpop.f32.mrf.mxu0 }
0x21ad   :  { %v4366_v19 = vadd.f32 %v4362_v28, %v4140_v63  ;;  %v8403_v28 = vld [vmem:[%s10862_s3 + $0x618] sm:$0xff]   ;;  %v8404_v36 = vld [vmem:[%s10862_s3 + $0x610] sm:$0xff]  }
0x21af   :  { %v4371_v32 = vsel %vm1157_vm10, %v4366_v19, 0.0 }
0x21b0   :  { %4372 = vadd.xlane.f32.xlu0 %v4371_v32  ;;  %v8406_v32 = vld [vmem:[%s10862_s3 + $0x600] sm:$0xff]  }
0x2234   :  { %v4370_v37 = vpop.xlane.xlu1 %4369 }
0x2235   :  { %v4374_v38 = vmul.f32 0.03125, %v4370_v37 }
0x2237   :  { %v4376_v39 = vsub.f32 %v4365_v62, %v4374_v38  ;;  %v8401_v62 = vld [vmem:[%s10862_s3 + $0x628] sm:$0xff]  }
0x2239   :  { %v4373_v21 = vpop.xlane.xlu0 %4372  ;;  %v10193_v5 = vmul.f32 %v9116_v29, %v4376_v39  ;;  %v6707_v39 = vld [vmem:[%s10863_s4 + $0x120] ss:$0 sm:$0xff] }
0x223a   :  { %v4375_v42 = vmul.f32 0.03125, %v4373_v21  ;;  %v6716_v21 = vld [vmem:[%s10863_s4 + $0x128] ss:$0 sm:$0xff] }
0x223b   :  { %v4380_v44 = vmul.f32 %v10193_v5, %v10193_v5 }
0x223c   :  { %v4377_v45 = vsub.f32 %v4366_v19, %v4375_v42  ;;  %v8405_v19 = vld [vmem:[%s10862_s3 + $0x608] sm:$0xff]  }
0x223d   :  { %4382 = vadd.xlane.f32.xlu0 %v4380_v44 }
0x223e   :  { %v10198_v46 = vmul.f32 %v9116_v29, %v4377_v45 }
0x2240   :  { %v4381_v6 = vmul.f32 %v10198_v46, %v10198_v46 }
0x2242   :  { %v4384_v47 = vsel %vm1157_vm10, %v4381_v6, 0.0 }
0x2243   :  { %4385 = vadd.xlane.f32.xlu1 %v4384_v47 }
0x22c6   :  { %v4383_v63 = vpop.xlane.xlu0 %4382 }
0x22c7   :  { %v4387_v2 = vmul.f32 0.03125, %v4383_v63 }
0x22c9   :  { %v4389_v9 = vadd.f32 1e-05, %v4387_v2 }
0x22cb   :  { %8575 = vrsqrt.f32 %v4389_v9 }
0x22cc   :  { %v4386_v10 = vpop.xlane.xlu1 %4385 }
0x22cd   :  { %v4388_v11 = vmul.f32 0.03125, %v4386_v10 }
0x22cf   :  { %v4390_v12 = vadd.f32 1e-05, %v4388_v11 }
0x22d1   :  { %8577 = vrsqrt.f32 %v4390_v12 }
0x22d8   :  { %v8576_v14 = vpop.eup %8575 }
0x22d9   :  { %v4393_v15 = vmul.f32 %v8576_v14, %v10193_v5 }
0x22db   :  { %v4399_v23 = vmul.f32 %v6705_v16, %v4393_v15 }
0x22dd   :  { %v10275_v26 = vadd.f32 %v6706_v24, %v4399_v23 }
0x22de   :  { %v8578_v18 = vpop.eup %8577 }
0x22df   :  { %v4394_v22 = vmul.f32 %v8578_v18, %v10198_v46 }
0x22e1   :  { %v4400_v25 = vmul.f32 %v6705_v16, %v4394_v22 }
0x22e3   :  { %v10277_v41 = vadd.f32 %v6706_v24, %v4400_v25 }
0x22e5   :  { %v4423_v57 = vpack.c.bf16 %v10277_v41, %v10275_v26 }
0x22e7   :  { %7893 = vmatmul.mubr.bf16.vlgmr.msra.gmra.mxu1 %v4423_v57  ;;  %7913 = vmatmul.mubr.bf16.vlgmr.msra.gmra.mxu0 %v4423_v57 }
0x22e8   :  { %7917 = vmatpush3.bf16.msra.mxu1 %v8399_v27  ;;  %7932 = vmatprep.mubr.msk.bf16.mxu1 %vm10876_vm13, %v8665_v1 }
0x22e9   :  { %7918 = vmatprep.subr.bf16.mxu1 %v8665_v1  ;;  %7938 = vmatprep.mubr.msk.bf16.mxu0 %vm10876_vm13, %v8665_v1 }
0x22ec   :  { %7919 = vmatpush3.bf16.msra.mxu1 %v8400_v35 }
0x22ed   :  { %7920 = vmatprep.subr.bf16.mxu1 %v8665_v1 }
0x22f0   :  { %7921 = vmatpush3.bf16.msra.mxu1 %v8401_v62 }
0x22f1   :  { %7922 = vmatprep.subr.bf16.mxu1 %v8665_v1 }
0x22f4   :  { %7923 = vmatpush3.bf16.msra.mxu1 %v8402_v58 }
0x22f5   :  { %7924 = vmatprep.subr.bf16.mxu1 %v8665_v1 }
0x22f8   :  { %7925 = vmatpush3.bf16.msra.mxu1 %v8403_v28 }
0x22f9   :  { %7926 = vmatprep.subr.bf16.mxu1 %v8665_v1 }
0x22fc   :  { %7927 = vmatpush3.bf16.msra.mxu1 %v8404_v36 }
0x22fd   :  { %7928 = vmatprep.subr.bf16.mxu1 %v8665_v1 }
0x2300   :  { %7929 = vmatpush3.bf16.msra.mxu1 %v8405_v19 }
0x2301   :  { %7930 = vmatprep.subr.bf16.mxu1 %v8665_v1 }
0x2304   :  { %7931 = vmatpush3.bf16.msra.mxu1 %v8406_v32  ;;  %v8633_v32 = vld [vmem:[%s10861_s2 + $0x28] sm:$0xff] }
0x2305   :  { %7950 = vmatprep.subr.bf16.mxu1 %v8665_v1 }
0x2307   :  { %7933 = vmatmul.mubr.bf16.vlgmr.msra.gmra.mxu1 %v4423_v57 }
0x2308   :  { %7952 = vmatprep.mubr.msk.bf16.mxu1 %vm10876_vm13, %v8665_v1 }
0x23a7   :  { %v4511_v37 = vpop.f32.mrf.mxu1  ;;  %v4621_v38 = vpop.f32.mrf.mxu0 }
0x23a8   :  { %v4512_v46 = vadd.f32 %v6707_v39, %v4511_v37  ;;  %v4622_v6 = vadd.f32 %v6716_v21, %v4621_v38 }
0x23a9   :  { %v7894_v5 = vpop.f32.mrf.mxu1  ;;  %v7914_v42 = vpop.f32.mrf.mxu0 }
0x23aa   :  { %v8634_v42 = vld [vmem:[%s10861_s2 + $0x30] sm:$0xff] }
0x23ab   :  { %v4514_v44 = vpop.f32.mrf.mxu1  ;;  %v4624_v45 = vpop.f32.mrf.mxu0 }
0x23ac   :  { %v4515_v47 = vadd.f32 %v6707_v39, %v4514_v44  ;;  %v4625_v4 = vadd.f32 %v6716_v21, %v4624_v45 }
0x23ad   :  { %v7895_v0 = vpop.f32.mrf.mxu1  ;;  %v7915_v3 = vpop.f32.mrf.mxu0 }
0x23ae   :  { %v4738_v13 = vpack.c.bf16 %v4515_v47, %v4512_v46  ;;  %v4806_v48 = vpack.c.bf16 %v4625_v4, %v4622_v6  ;;  %v8635_v4 = vld [vmem:[%s10861_s2 + $0x38] sm:$0xff] }
0x23b0   :  { %7951 = vmatpush3.bf16.xpose.msra.mxu1 %v4806_v48  ;;  %v4740_v30 = vsel %vm716_vm6, %v4738_v13, 0 }
0x23b1   :  { %7937 = vmatpush3.bf16.msra.mxu0 %v4740_v30  ;;  %7978 = vmatprep.subr.bf16.mxu1 %v8665_v1 }
0x23b2   :  { %7964 = vmatprep.subr.bf16.mxu0 %v8665_v1 }
0x23b4   :  { %7939 = vmatmul.mubr.msk.bf16.vlgmr.msra.gmra.mxu0 %vm706_vm2, %v8903_v7 }
0x23b5   :  { %7942 = vmatprep.mubr.msk.bf16.mxu0 %vm10876_vm13, %v8665_v1 }
0x23bc   :  { %7943 = vmatmul.mubr.msk.bf16.gmra.mxu0 %vm706_vm2, %v8905_v8 }
0x23bd   :  { %7946 = vmatprep.mubr.msk.bf16.mxu0 %vm10876_vm13, %v8665_v1 }
0x23c4   :  { %7947 = vmatmul.mubr.msk.bf16.gmra.mxu0 %vm706_vm2, %v8922_v17 }
0x23c5   :  { %7966 = vmatprep.mubr.msk.bf16.mxu0 %vm10876_vm13, %v8665_v1 }
0x23c7   :  { %v4731_v50 = vpop.f32.mrf.mxu1 }
0x23c8   :  { %v4732_v54 = vadd.f32 %v6725_v51, %v4731_v50  ;;  %v8636_v50 = vld [vmem:[%s10861_s2 + $0x40] sm:$0xff] }
0x23c9   :  { %v7934_v53 = vpop.f32.mrf.mxu1 }
0x23cb   :  { %v4734_v20 = vpop.f32.mrf.mxu1 }
0x23cc   :  { %v4735_v55 = vadd.f32 %v6725_v51, %v4734_v20 }
0x23cd   :  { %v7935_v56 = vpop.f32.mrf.mxu1 }
0x23ce   :  { %v4937_v31 = vpack.c.bf16 %v4735_v55, %v4732_v54  ;;  %v8637_v56 = vld [vmem:[%s10861_s2 + $0x48] sm:$0xff] }
0x23d0   :  { %v4948_v60 = vsel %vm716_vm6, %v4937_v31, 0 }
0x23d1   :  { %7965 = vmatpush3.bf16.msra.mxu0 %v4948_v60 }
0x23d2   :  { %7988 = vmatprep.subr.bf16.mxu0 %v8665_v1 }
0x2474   :  { %v4776_v61 = vpop.f32.mrf.mxu0 }
0x2475   :  { %v4798_v9 = vmul.f32 %v8937_v33, %v4776_v61 }
0x2476   :  { %v7940_v63 = vpop.f32.mrf.mxu0 }
0x2478   :  { %v4779_v2 = vpop.f32.mrf.mxu0 }
0x2479   :  { %v4799_v10 = vmul.f32 %v4779_v2, %v8839_v34 }
0x247a   :  { %v7941_v11 = vpop.f32.mrf.mxu0 }
0x247b   :  { %v4803_v12 = vpack.c.bf16 %v4799_v10, %v4798_v9 }
0x247c   :  { %v4784_v14 = vpop.f32.mrf.mxu0 }
0x247d   :  { %7953 = vmatmul.mubr.bf16.vlgmr.msra.gmra.mxu1 %v4803_v12  ;;  %v4800_v18 = vmul.f32 %v4784_v14, %v8853_v40 }
0x247e   :  { %v7944_v15 = vpop.f32.mrf.mxu0  ;;  %7956 = vmatprep.mubr.msk.bf16.mxu1 %vm10876_vm13, %v8665_v1 }
0x2480   :  { %v4787_v16 = vpop.f32.mrf.mxu0 }
0x2481   :  { %v4801_v22 = vmul.f32 %v4787_v16, %v8865_v43 }
0x2482   :  { %v7945_v23 = vpop.f32.mrf.mxu0 }
0x2483   :  { %v4804_v24 = vpack.c.bf16 %v4801_v22, %v4800_v18 }
0x2484   :  { %v4792_v25 = vpop.f32.mrf.mxu0 }
0x2485   :  { %7957 = vmatmul.mubr.bf16.gmra.mxu1 %v4804_v24  ;;  %v4802_v27 = vmul.f32 %v8948_v52, %v4792_v25 }
0x2486   :  { %v7948_v57 = vpop.f32.mrf.mxu0  ;;  %7960 = vmatprep.mubr.msk.bf16.mxu1 %vm10876_vm13, %v8665_v1 }
0x2487   :  { %v4805_v62 = vpack.c.bf16 %v4802_v27, %v4802_v27 }
0x2488   :  { %v4795_v35 = vpop.f32.mrf.mxu0 }
0x248a   :  { %v7949_v58 = vpop.f32.mrf.mxu0 }
0x248d   :  { %7961 = vmatmul.mubr.bf16.gmra.mxu1 %v4805_v62 }
0x248e   :  { %7984 = vmatprep.mubr.msk.bf16.mxu1 %vm10876_vm13, %v8665_v1 }
0x253d   :  { %v4841_v28 = vpop.f32.mrf.mxu1 }
0x253e   :  { %v4863_v36 = vmul.f32 0.35355338, %v4841_v28 }
0x253f   :  { %v7954_v19 = vpop.f32.mrf.mxu1 }
0x2540   :  { %v4868_v37 = vadd.f32 %v8633_v32, %v4863_v36 }
0x2541   :  { %v4844_v38 = vpop.f32.mrf.mxu1 }
0x2542   :  { %v4864_v39 = vmul.f32 0.35355338, %v4844_v38  ;;  %v4873_v21 = vsel %vm706_vm2, %v4868_v37, -inf }
0x2543   :  { %4874 = vmax.xlane.f32.xlu0 %v4873_v21  ;;  %v7955_v5 = vpop.f32.mrf.mxu1 }
0x2544   :  { %v4869_v44 = vadd.f32 %v8634_v42, %v4864_v39 }
0x2545   :  { %v4849_v45 = vpop.f32.mrf.mxu1 }
0x2546   :  { %v4865_v46 = vmul.f32 0.35355338, %v4849_v45  ;;  %v4876_v6 = vsel %vm706_vm2, %v4869_v44, -inf }
0x2547   :  { %4877 = vmax.xlane.f32.xlu1 %v4876_v6  ;;  %v7958_v47 = vpop.f32.mrf.mxu1 }
0x2548   :  { %v4870_v0 = vadd.f32 %v8635_v4, %v4865_v46 }
0x2549   :  { %v4852_v3 = vpop.f32.mrf.mxu1 }
0x254a   :  { %v4866_v13 = vmul.f32 0.35355338, %v4852_v3  ;;  %v4879_v48 = vsel %vm706_vm2, %v4870_v0, -inf }
0x254b   :  { %4880 = vmax.xlane.f32.xlu0 %v4879_v48  ;;  %v7959_v30 = vpop.f32.mrf.mxu1 }
0x254c   :  { %v4871_v51 = vadd.f32 %v8636_v50, %v4866_v13 }
0x254d   :  { %v4857_v53 = vpop.f32.mrf.mxu1 }
0x254e   :  { %v4867_v20 = vmul.f32 0.35355338, %v4857_v53  ;;  %v4882_v54 = vsel %vm706_vm2, %v4871_v51, -inf }
0x254f   :  { %4883 = vmax.xlane.f32.xlu1 %v4882_v54  ;;  %v7962_v55 = vpop.f32.mrf.mxu1  ;;  %v8407_v54 = vld [vmem:[%s10862_s3 + $0x678] sm:$0xff]  }
0x2550   :  { %v4872_v31 = vadd.f32 %v8637_v56, %v4867_v20  ;;  %v8408_v55 = vld [vmem:[%s10862_s3 + $0x670] sm:$0xff]   ;;  %v8409_v56 = vld [vmem:[%s10862_s3 + $0x668] sm:$0xff]  }
0x2551   :  { %v4860_v60 = vpop.f32.mrf.mxu1 }
0x2552   :  { %v4885_v61 = vsel %vm706_vm2, %v4872_v31, -inf  ;;  %v8411_v60 = vld [vmem:[%s10862_s3 + $0x658] sm:$0xff]  }
0x2553   :  { %4886 = vmax.xlane.f32.xlu0 %v4885_v61  ;;  %v7963_v63 = vpop.f32.mrf.mxu1  ;;  %v8412_v61 = vld [vmem:[%s10862_s3 + $0x650] sm:$0xff]  }
0x2554   :  { %v8413_v63 = vld [vmem:[%s10862_s3 + $0x648] sm:$0xff]  }
0x25cc   :  { %v4875_v2 = vpop.xlane.xlu0 %4874 }
0x25cd   :  { %v4888_v9 = vsub.f32 %v4868_v37, %v4875_v2 }
0x25cf   :  { %v4893_v10 = vmul.f32 1.442695, %v4888_v9 }
0x25d0   :  { %v4878_v11 = vpop.xlane.xlu1 %4877 }
0x25d1   :  { %8579 = vpow2.f32 %v4893_v10  ;;  %v4889_v12 = vsub.f32 %v4869_v44, %v4878_v11 }
0x25d3   :  { %v4895_v14 = vmul.f32 1.442695, %v4889_v12 }
0x25d4   :  { %v4881_v15 = vpop.xlane.xlu0 %4880 }
0x25d5   :  { %8581 = vpow2.f32 %v4895_v14  ;;  %v4890_v16 = vsub.f32 %v4870_v0, %v4881_v15 }
0x25d7   :  { %v4897_v18 = vmul.f32 1.442695, %v4890_v16 }
0x25d8   :  { %v4884_v22 = vpop.xlane.xlu1 %4883 }
0x25d9   :  { %8583 = vpow2.f32 %v4897_v18  ;;  %v4891_v23 = vsub.f32 %v4871_v51, %v4884_v22 }
0x25db   :  { %v4899_v24 = vmul.f32 1.442695, %v4891_v23 }
0x25dc   :  { %v4887_v25 = vpop.xlane.xlu0 %4886 }
0x25dd   :  { %8585 = vpow2.f32 %v4899_v24  ;;  %v4892_v27 = vsub.f32 %v4872_v31, %v4887_v25  ;;  %v8410_v31 = vld [vmem:[%s10862_s3 + $0x660] sm:$0xff]  }
0x25de   :  { %v8580_v57 = vpop.eup %8579 }
0x25df   :  { %v4901_v35 = vmul.f32 1.442695, %v4892_v27  ;;  %v4903_v62 = vsel %vm706_vm2, %v8580_v57, 0.0 }
0x25e0   :  { %4904 = vadd.xlane.f32.xlu1 %v4903_v62 }
0x25e1   :  { %8587 = vpow2.f32 %v4901_v35 }
0x25e2   :  { %v8582_v58 = vpop.eup %8581 }
0x25e3   :  { %v4906_v28 = vsel %vm706_vm2, %v8582_v58, 0.0 }
0x25e4   :  { %4907 = vadd.xlane.f32.xlu0 %v4906_v28 }
0x25e6   :  { %v8584_v36 = vpop.eup %8583 }
0x25e7   :  { %v4909_v19 = vsel %vm706_vm2, %v8584_v36, 0.0 }
0x25e8   :  { %4910 = vadd.xlane.f32.xlu1 %v4909_v19 }
0x25ea   :  { %v8586_v32 = vpop.eup %8585 }
0x25eb   :  { %v4912_v37 = vsel %vm706_vm2, %v8586_v32, 0.0 }
0x25ec   :  { %4913 = vadd.xlane.f32.xlu0 %v4912_v37 }
0x25ee   :  { %v8588_v38 = vpop.eup %8587 }
0x25ef   :  { %v4915_v39 = vsel %vm706_vm2, %v8588_v38, 0.0 }
0x25f0   :  { %4916 = vadd.xlane.f32.xlu1 %v4915_v39 }
0x2669   :  { %v4905_v21 = vpop.xlane.xlu1 %4904 }
0x266a   :  { %8589 = vrcp.f32 %v4905_v21  ;;  %v8415_v21 = vld [vmem:[%s10862_s3 + $0x6f8] sm:$0xff]  }
0x266d   :  { %v4908_v5 = vpop.xlane.xlu0 %4907 }
0x266e   :  { %8591 = vrcp.f32 %v4908_v5 }
0x2671   :  { %v4911_v42 = vpop.xlane.xlu1 %4910 }
0x2672   :  { %8593 = vrcp.f32 %v4911_v42 }
0x2675   :  { %v4914_v44 = vpop.xlane.xlu0 %4913 }
0x2676   :  { %8595 = vrcp.f32 %v4914_v44  ;;  %v8416_v44 = vld [vmem:[%s10862_s3 + $0x6f0] sm:$0xff]  }
0x2677   :  { %v8590_v45 = vpop.eup %8589 }
0x2678   :  { %v4923_v46 = vmul.f32 %v8590_v45, %v8580_v57  ;;  %v8417_v45 = vld [vmem:[%s10862_s3 + $0x6e8] sm:$0xff]  }
0x2679   :  { %v4917_v6 = vpop.xlane.xlu1 %4916 }
0x267a   :  { %6737 = vst.msk [vmem:[%s10865_s6 + $0x78] sm:$0xff] %vm706_vm2, %v4923_v46  ;;  %8597 = vrcp.f32 %v4917_v6  ;;  %v8419_v6 = vld [vmem:[%s10862_s3 + $0x6d8] sm:$0xff]  }
0x267b   :  { %v8592_v47 = vpop.eup %8591 }
0x267c   :  { %v4924_v4 = vmul.f32 %v8592_v47, %v8582_v58  ;;  %v8420_v47 = vld [vmem:[%s10862_s3 + $0x6d0] sm:$0xff]  }
0x267e   :  { %6738 = vst.msk [vmem:[%s10865_s6 + $0x80] sm:$0xff] %vm706_vm2, %v4924_v4  ;;  %v4934_v0 = vpack.c.bf16 %v4924_v4, %v4923_v46  ;;  %v8418_v46 = vld [vmem:[%s10862_s3 + $0x6e0] sm:$0xff]   ;;  %v8421_v4 = vld [vmem:[%s10862_s3 + $0x6c8] sm:$0xff]  }
0x267f   :  { %v8594_v3 = vpop.eup %8593 }
0x2680   :  { %7967 = vmatmul.mubr.msk.bf16.vlgmr.msra.gmra.mxu0 %vm706_vm2, %v4934_v0  ;;  %v4925_v13 = vmul.f32 %v8594_v3, %v8584_v36  ;;  %v8422_v0 = vld [vmem:[%s10862_s3 + $0x6c0] sm:$0xff]   ;;  %v6746_v3 = vld [vmem:[%s10863_s4 + $0x138] ss:$0 sm:$0xff] }
0x2681   :  { %7970 = vmatprep.mubr.msk.bf16.mxu0 %vm10876_vm13, %v8665_v1  ;;  %7989 = vmatpush3.bf16.msra.mxu0 %v8407_v54 }
0x2682   :  { %6739 = vst.msk [vmem:[%s10865_s6 + $0x88] sm:$0xff] %vm706_vm2, %v4925_v13  ;;  %7990 = vmatprep.subr.bf16.mxu0 %v8665_v1 }
0x2683   :  { %v8596_v48 = vpop.eup %8595 }
0x2684   :  { %v4926_v30 = vmul.f32 %v8596_v48, %v8586_v32  ;;  %v8414_v32 = vld [vmem:[%s10862_s3 + $0x640] sm:$0xff]  }
0x2685   :  { %7991 = vmatpush3.bf16.msra.mxu0 %v8408_v55 }
0x2686   :  { %6740 = vst.msk [vmem:[%s10865_s6 + $0x90] sm:$0xff] %vm706_vm2, %v4926_v30  ;;  %v4935_v50 = vpack.c.bf16 %v4926_v30, %v4925_v13  ;;  %7992 = vmatprep.subr.bf16.mxu0 %v8665_v1 }
0x2687   :  { %v8598_v51 = vpop.eup %8597 }
0x2688   :  { %7971 = vmatmul.mubr.msk.bf16.gmra.mxu0 %vm706_vm2, %v4935_v50  ;;  %v4927_v53 = vmul.f32 %v8598_v51, %v8588_v38 }
0x2689   :  { %7974 = vmatprep.mubr.msk.bf16.mxu0 %vm10876_vm13, %v8665_v1  ;;  %7993 = vmatpush3.bf16.msra.mxu0 %v8409_v56 }
0x268a   :  { %6741 = vst.msk [vmem:[%s10865_s6 + $0x98] sm:$0xff] %vm706_vm2, %v4927_v53  ;;  %v4936_v20 = vpack.c.bf16 %v4927_v53, %v4927_v53  ;;  %7994 = vmatprep.subr.bf16.mxu0 %v8665_v1 }
0x268d   :  { %7995 = vmatpush3.bf16.msra.mxu0 %v8410_v31  ;;  %v6766_v31 = vld [vmem:[%s10863_s4 + $0x158] ss:$0 sm:$0xff] }
0x268e   :  { %7996 = vmatprep.subr.bf16.mxu0 %v8665_v1 }
0x2690   :  { %7975 = vmatmul.mubr.msk.bf16.gmra.mxu0 %vm706_vm2, %v4936_v20 }
0x2691   :  { %8004 = vmatprep.mubr.msk.bf16.mxu0 %vm10876_vm13, %v8665_v1  ;;  %7997 = vmatpush3.bf16.msra.mxu0 %v8411_v60 }
0x2692   :  { %7998 = vmatprep.subr.bf16.mxu0 %v8665_v1 }
0x2695   :  { %7999 = vmatpush3.bf16.msra.mxu0 %v8412_v61 }
0x2696   :  { %8000 = vmatprep.subr.bf16.mxu0 %v8665_v1 }
0x2699   :  { %8001 = vmatpush3.bf16.msra.mxu0 %v8413_v63 }
0x269a   :  { %8002 = vmatprep.subr.bf16.mxu0 %v8665_v1 }
0x269d   :  { %8003 = vmatpush3.bf16.msra.mxu0 %v8414_v32 }
0x269e   :  { %8028 = vmatprep.subr.bf16.mxu0 %v8665_v1 }
0x2740   :  { %v4984_v2 = vpop.f32.mrf.mxu0 }
0x2741   :  { %v5006_v36 = vmul.f32 %v8937_v33, %v4984_v2 }
0x2742   :  { %v7968_v9 = vpop.f32.mrf.mxu0 }
0x2744   :  { %v4987_v10 = vpop.f32.mrf.mxu0 }
0x2745   :  { %v5007_v58 = vmul.f32 %v4987_v10, %v8839_v34 }
0x2746   :  { %v7969_v11 = vpop.f32.mrf.mxu0 }
0x2747   :  { %v5011_v19 = vpack.c.bf16 %v5007_v58, %v5006_v36  ;;  %v8428_v58 = vld [vmem:[%s10862_s3 + $0x690] sm:$0xff]   ;;  %v8430_v36 = vld [vmem:[%s10862_s3 + $0x680] sm:$0xff]  }
0x2748   :  { %v4992_v12 = vpop.f32.mrf.mxu0 }
0x2749   :  { %v5008_v35 = vmul.f32 %v4992_v12, %v8853_v40 }
0x274a   :  { %v7972_v14 = vpop.f32.mrf.mxu0 }
0x274c   :  { %v4995_v15 = vpop.f32.mrf.mxu0 }
0x274d   :  { %v5009_v25 = vmul.f32 %v4995_v15, %v8865_v43 }
0x274e   :  { %v7973_v16 = vpop.f32.mrf.mxu0 }
0x274f   :  { %v5012_v28 = vpack.c.bf16 %v5009_v25, %v5008_v35  ;;  %v8423_v25 = vld [vmem:[%s10862_s3 + $0x6b8] sm:$0xff]   ;;  %v8426_v35 = vld [vmem:[%s10862_s3 + $0x6a0] sm:$0xff]  }
0x2750   :  { %v5000_v18 = vpop.f32.mrf.mxu0 }
0x2751   :  { %v5010_v22 = vmul.f32 %v8948_v52, %v5000_v18 }
0x2752   :  { %v7976_v23 = vpop.f32.mrf.mxu0 }
0x2753   :  { %v5013_v24 = vpack.c.bf16 %v5010_v22, %v5010_v22 }
0x2754   :  { %v5003_v27 = vpop.f32.mrf.mxu0 }
0x2755   :  { %v5015_v57 = vsel %vm995_vm0, %v5013_v24, 0  ;;  %v8424_v27 = vld [vmem:[%s10862_s3 + $0x6b0] sm:$0xff]  }
0x2756   :  { %v7977_v62 = vpop.f32.mrf.mxu0  ;;  %7979 = vmatpush3.bf16.msra.mxu1 %v5015_v57  ;;  %v8425_v57 = vld [vmem:[%s10862_s3 + $0x6a8] sm:$0xff]  }
0x2757   :  { %7980 = vmatprep.subr.bf16.mxu1 %v8665_v1  ;;  %v8427_v62 = vld [vmem:[%s10862_s3 + $0x698] sm:$0xff]  }
0x275a   :  { %7981 = vmatpush3.bf16.msra.mxu1 %v5012_v28  ;;  %v8429_v28 = vld [vmem:[%s10862_s3 + $0x688] sm:$0xff]  }
0x275b   :  { %7982 = vmatprep.subr.bf16.mxu1 %v8665_v1 }
0x275e   :  { %7983 = vmatpush3.bf16.msra.mxu1 %v5011_v19 }
0x275f   :  { %8008 = vmatprep.subr.bf16.mxu1 %v8665_v1 }
0x2761   :  { %7985 = vmatmul.mubr.msk.bf16.vlgmr.msra.gmra.mxu1 %vm991_vm7, %v9054_v49 }
0x2762   :  { %8024 = vmatprep.mubr.msk.bf16.mxu1 %vm10876_vm13, %v8665_v1  ;;  %8009 = vmatpush3.bf16.msra.mxu1 %v8423_v25 }
0x2763   :  { %8010 = vmatprep.subr.bf16.mxu1 %v8665_v1 }
0x2766   :  { %8011 = vmatpush3.bf16.msra.mxu1 %v8424_v27 }
0x2767   :  { %8012 = vmatprep.subr.bf16.mxu1 %v8665_v1 }
0x276a   :  { %8013 = vmatpush3.bf16.msra.mxu1 %v8425_v57 }
0x276b   :  { %8014 = vmatprep.subr.bf16.mxu1 %v8665_v1 }
0x276e   :  { %8015 = vmatpush3.bf16.msra.mxu1 %v8426_v35 }
0x276f   :  { %8016 = vmatprep.subr.bf16.mxu1 %v8665_v1 }
0x2772   :  { %8017 = vmatpush3.bf16.msra.mxu1 %v8427_v62 }
0x2773   :  { %8018 = vmatprep.subr.bf16.mxu1 %v8665_v1 }
0x2776   :  { %8019 = vmatpush3.bf16.msra.mxu1 %v8428_v58 }
0x2777   :  { %8020 = vmatprep.subr.bf16.mxu1 %v8665_v1 }
0x277a   :  { %8021 = vmatpush3.bf16.msra.mxu1 %v8429_v28 }
0x277b   :  { %8022 = vmatprep.subr.bf16.mxu1 %v8665_v1 }
0x277e   :  { %8023 = vmatpush3.bf16.msra.mxu1 %v8430_v36 }
0x277f   :  { %8048 = vmatprep.subr.bf16.mxu1 %v8665_v1 }
0x2821   :  { %v5051_v37 = vpop.f32.mrf.mxu1 }
0x2823   :  { %v7986_v38 = vpop.f32.mrf.mxu1 }
0x2825   :  { %v5054_v39 = vpop.f32.mrf.mxu1 }
0x2826   :  { %v5074_v5 = vpack.c.bf16 %v5054_v39, %v5051_v37 }
0x2827   :  { %v7987_v42 = vpop.f32.mrf.mxu1 }
0x2828   :  { %8005 = vmatmul.mubr.bf16.vlgmr.msra.gmra.mxu0 %v5074_v5 }
0x2829   :  { %8029 = vmatpush3.bf16.msra.mxu0 %v8415_v21  ;;  %8044 = vmatprep.mubr.msk.bf16.mxu0 %vm10876_vm13, %v8665_v1 }
0x282a   :  { %8030 = vmatprep.subr.bf16.mxu0 %v8665_v1 }
0x282d   :  { %8031 = vmatpush3.bf16.msra.mxu0 %v8416_v44  ;;  %v6755_v44 = vld [vmem:[%s10863_s4 + $0x140] ss:$0 sm:$0xff] }
0x282e   :  { %8032 = vmatprep.subr.bf16.mxu0 %v8665_v1 }
0x2831   :  { %8033 = vmatpush3.bf16.msra.mxu0 %v8417_v45 }
0x2832   :  { %8034 = vmatprep.subr.bf16.mxu0 %v8665_v1 }
0x2835   :  { %8035 = vmatpush3.bf16.msra.mxu0 %v8418_v46 }
0x2836   :  { %8036 = vmatprep.subr.bf16.mxu0 %v8665_v1 }
0x2839   :  { %8037 = vmatpush3.bf16.msra.mxu0 %v8419_v6 }
0x283a   :  { %8038 = vmatprep.subr.bf16.mxu0 %v8665_v1 }
0x283d   :  { %8039 = vmatpush3.bf16.msra.mxu0 %v8420_v47  ;;  %v6756_v47 = vld [vmem:[%s10863_s4 + $0x148] ss:$0 sm:$0xff] }
0x283e   :  { %8040 = vmatprep.subr.bf16.mxu0 %v8665_v1 }
0x2841   :  { %8041 = vmatpush3.bf16.msra.mxu0 %v8421_v4 }
0x2842   :  { %8042 = vmatprep.subr.bf16.mxu0 %v8665_v1 }
0x2845   :  { %8043 = vmatpush3.bf16.msra.mxu0 %v8422_v0 }
0x2846   :  { %8068 = vmatprep.subr.bf16.mxu0 %v8665_v1 }
0x2848   :  { %8045 = vmatmul.mubr.bf16.vlgmr.msra.gmra.mxu0 %v9956_v59 }
0x2849   :  { %8070 = vmatprep.mubr.msk.bf16.mxu0 %vm10876_vm13, %v8665_v1 }
0x28e8   :  { %v5162_v13 = vpop.f32.mrf.mxu0 }
0x28e9   :  { %v5163_v48 = vadd.f32 %v6746_v3, %v5162_v13  ;;  %v8431_v13 = vld [vmem:[%s10862_s3 + $0x738] sm:$0xff]  }
0x28ea   :  { %v8006_v30 = vpop.f32.mrf.mxu0 }
0x28eb   :  { %v5169_v50 = vadd.f32 %v5163_v48, %v10275_v26  ;;  %v8432_v30 = vld [vmem:[%s10862_s3 + $0x730] sm:$0xff]  }
0x28ec   :  { %v5165_v51 = vpop.f32.mrf.mxu0 }
0x28ed   :  { %v5166_v53 = vadd.f32 %v6746_v3, %v5165_v51  ;;  %5173 = vadd.xlane.f32.xlu1 %v5169_v50  ;;  %v8434_v51 = vld [vmem:[%s10862_s3 + $0x720] sm:$0xff]  }
0x28ee   :  { %v8007_v20 = vpop.f32.mrf.mxu0 }
0x28ef   :  { %v5170_v54 = vadd.f32 %v5166_v53, %v10277_v41  ;;  %v8435_v53 = vld [vmem:[%s10862_s3 + $0x718] sm:$0xff]   ;;  %v8436_v20 = vld [vmem:[%s10862_s3 + $0x710] sm:$0xff]  }
0x28f1   :  { %v5175_v55 = vsel %vm1157_vm10, %v5170_v54, 0.0 }
0x28f2   :  { %5176 = vadd.xlane.f32.xlu0 %v5175_v55  ;;  %v8438_v55 = vld [vmem:[%s10862_s3 + $0x700] sm:$0xff]  }
0x2908   :  { %v5425_v56 = vpop.f32.mrf.mxu0 }
0x2909   :  { %v10501_v63 = vadd.f32 %v6766_v31, %v5425_v56 }
0x290a   :  { %v8046_v60 = vpop.f32.mrf.mxu0 }
0x290c   :  { %v5428_v61 = vpop.f32.mrf.mxu0 }
0x290d   :  { %v10503_v2 = vadd.f32 %v6766_v31, %v5428_v61  ;;  %v6757_v31 = vld [vmem:[%s10863_s4 + $0x150] ss:$0 sm:$0xff] }
0x290e   :  { %v8047_v26 = vpop.f32.mrf.mxu0 }
0x290f   :  { %v5610_v9 = vpack.c.bf16 %v10503_v2, %v10501_v63 }
0x2976   :  { %v5174_v10 = vpop.xlane.xlu1 %5173 }
0x2977   :  { %v5178_v41 = vmul.f32 0.03125, %v5174_v10 }
0x2979   :  { %v5180_v11 = vsub.f32 %v5169_v50, %v5178_v41  ;;  %v8433_v50 = vld [vmem:[%s10862_s3 + $0x728] sm:$0xff]  }
0x297b   :  { %v5177_v12 = vpop.xlane.xlu0 %5176  ;;  %v5182_v14 = vmul.f32 %v9116_v29, %v5180_v11 }
0x297c   :  { %v5179_v15 = vmul.f32 0.03125, %v5177_v12 }
0x297d   :  { %v5184_v16 = vmul.f32 %v5182_v14, %v5182_v14 }
0x297e   :  { %v5181_v18 = vsub.f32 %v5170_v54, %v5179_v15  ;;  %v8437_v54 = vld [vmem:[%s10862_s3 + $0x708] sm:$0xff]  }
0x297f   :  { %5186 = vadd.xlane.f32.xlu0 %v5184_v16 }
0x2980   :  { %v5183_v22 = vmul.f32 %v9116_v29, %v5181_v18 }
0x2982   :  { %v5185_v23 = vmul.f32 %v5183_v22, %v5183_v22 }
0x2984   :  { %v5188_v24 = vsel %vm1157_vm10, %v5185_v23, 0.0 }
0x2985   :  { %5189 = vadd.xlane.f32.xlu1 %v5188_v24 }
0x2a08   :  { %v5187_v19 = vpop.xlane.xlu0 %5186 }
0x2a09   :  { %v5191_v32 = vmul.f32 0.03125, %v5187_v19 }
0x2a0b   :  { %v5193_v37 = vadd.f32 1e-05, %v5191_v32 }
0x2a0d   :  { %8599 = vrsqrt.f32 %v5193_v37 }
0x2a0e   :  { %v5190_v38 = vpop.xlane.xlu1 %5189 }
0x2a0f   :  { %v5192_v39 = vmul.f32 0.03125, %v5190_v38 }
0x2a11   :  { %v5194_v21 = vadd.f32 1e-05, %v5192_v39 }
0x2a13   :  { %8601 = vrsqrt.f32 %v5194_v21 }
0x2a1a   :  { %v8600_v5 = vpop.eup %8599 }
0x2a1b   :  { %v5197_v42 = vmul.f32 %v8600_v5, %v5182_v14 }
0x2a1d   :  { %v5203_v6 = vmul.f32 %v6755_v44, %v5197_v42 }
0x2a1f   :  { %v10548_v0 = vadd.f32 %v6756_v47, %v5203_v6 }
0x2a20   :  { %v8602_v45 = vpop.eup %8601 }
0x2a21   :  { %v5198_v46 = vmul.f32 %v8602_v45, %v5183_v22 }
0x2a23   :  { %v5204_v4 = vmul.f32 %v6755_v44, %v5198_v46  ;;  %v8638_v46 = vld [vmem:[%s10861_s2 + $0x50] sm:$0xff] }
0x2a25   :  { %v10550_v3 = vadd.f32 %v6756_v47, %v5204_v4 }
0x2a27   :  { %v5227_v48 = vpack.c.bf16 %v10550_v3, %v10548_v0 }
0x2a29   :  { %8025 = vmatmul.mubr.bf16.vlgmr.msra.gmra.mxu1 %v5227_v48 }
0x2a2a   :  { %8049 = vmatpush3.bf16.msra.mxu1 %v8431_v13  ;;  %8064 = vmatprep.mubr.msk.bf16.mxu1 %vm10876_vm13, %v8665_v1 }
0x2a2b   :  { %8050 = vmatprep.subr.bf16.mxu1 %v8665_v1 }
0x2a2e   :  { %8051 = vmatpush3.bf16.msra.mxu1 %v8432_v30  ;;  %v8639_v30 = vld [vmem:[%s10861_s2 + $0x58] sm:$0xff] }
0x2a2f   :  { %8052 = vmatprep.subr.bf16.mxu1 %v8665_v1 }
0x2a32   :  { %8053 = vmatpush3.bf16.msra.mxu1 %v8433_v50 }
0x2a33   :  { %8054 = vmatprep.subr.bf16.mxu1 %v8665_v1 }
0x2a36   :  { %8055 = vmatpush3.bf16.msra.mxu1 %v8434_v51 }
0x2a37   :  { %8056 = vmatprep.subr.bf16.mxu1 %v8665_v1 }
0x2a3a   :  { %8057 = vmatpush3.bf16.msra.mxu1 %v8435_v53 }
0x2a3b   :  { %8058 = vmatprep.subr.bf16.mxu1 %v8665_v1 }
0x2a3e   :  { %8059 = vmatpush3.bf16.msra.mxu1 %v8436_v20 }
0x2a3f   :  { %8060 = vmatprep.subr.bf16.mxu1 %v8665_v1 }
0x2a42   :  { %8061 = vmatpush3.bf16.msra.mxu1 %v8437_v54 }
0x2a43   :  { %8062 = vmatprep.subr.bf16.mxu1 %v8665_v1 }
0x2a46   :  { %8063 = vmatpush3.bf16.msra.mxu1 %v8438_v55  ;;  %v8640_v55 = vld [vmem:[%s10861_s2 + $0x60] sm:$0xff] }
0x2a47   :  { %8082 = vmatprep.subr.bf16.mxu1 %v8665_v1 }
0x2a49   :  { %8065 = vmatmul.mubr.bf16.vlgmr.msra.gmra.mxu1 %v9956_v59 }
0x2a4a   :  { %8083 = vmatpush3.bf16.xpose.msra.mxu1 %v5610_v9  ;;  %8084 = vmatprep.mubr.msk.bf16.mxu1 %vm10876_vm13, %v8665_v1 }
0x2a4b   :  { %8110 = vmatprep.subr.bf16.mxu1 %v8665_v1 }
0x2ae9   :  { %v5315_v56 = vpop.f32.mrf.mxu1 }
0x2aea   :  { %v5316_v26 = vadd.f32 %v6757_v31, %v5315_v56 }
0x2aeb   :  { %v8026_v60 = vpop.f32.mrf.mxu1 }
0x2aed   :  { %v5318_v61 = vpop.f32.mrf.mxu1 }
0x2aee   :  { %v5319_v10 = vadd.f32 %v6757_v31, %v5318_v61 }
0x2aef   :  { %v8027_v41 = vpop.f32.mrf.mxu1 }
0x2af0   :  { %v5542_v59 = vpack.c.bf16 %v5319_v10, %v5316_v26  ;;  %v8641_v10 = vld [vmem:[%s10861_s2 + $0x68] sm:$0xff] }
0x2af2   :  { %v5544_v11 = vsel %vm716_vm6, %v5542_v59, 0 }
0x2af3   :  { %8069 = vmatpush3.bf16.msra.mxu0 %v5544_v11 }
0x2af4   :  { %8096 = vmatprep.subr.bf16.mxu0 %v8665_v1 }
0x2af6   :  { %8071 = vmatmul.mubr.msk.bf16.vlgmr.msra.gmra.mxu0 %vm706_vm2, %v8903_v7  ;;  %v6775_v7 = vld [vmem:[%s10863_s4 + $0x160] ss:$0 sm:$0xff] }
0x2af7   :  { %8074 = vmatprep.mubr.msk.bf16.mxu0 %vm10876_vm13, %v8665_v1 }
0x2afe   :  { %8075 = vmatmul.mubr.msk.bf16.gmra.mxu0 %vm706_vm2, %v8905_v8 }
0x2aff   :  { %8078 = vmatprep.mubr.msk.bf16.mxu0 %vm10876_vm13, %v8665_v1 }
0x2b06   :  { %8079 = vmatmul.mubr.msk.bf16.gmra.mxu0 %vm706_vm2, %v8922_v17 }
0x2b07   :  { %8098 = vmatprep.mubr.msk.bf16.mxu0 %vm10876_vm13, %v8665_v1 }
0x2b09   :  { %v5535_v63 = vpop.f32.mrf.mxu1 }
0x2b0a   :  { %v5536_v12 = vadd.f32 %v6775_v7, %v5535_v63 }
0x2b0b   :  { %v8066_v2 = vpop.f32.mrf.mxu1 }
0x2b0c   :  { %v8642_v2 = vld [vmem:[%s10861_s2 + $0x70] sm:$0xff] }
0x2b0d   :  { %v5538_v9 = vpop.f32.mrf.mxu1 }
0x2b0e   :  { %v5539_v14 = vadd.f32 %v6775_v7, %v5538_v9 }
0x2b0f   :  { %v8067_v15 = vpop.f32.mrf.mxu1 }
0x2b10   :  { %v5741_v8 = vpack.c.bf16 %v5539_v14, %v5536_v12 }
0x2b12   :  { %v5752_v16 = vsel %vm716_vm6, %v5741_v8, 0 }
0x2b13   :  { %8097 = vmatpush3.bf16.msra.mxu0 %v5752_v16 }
0x2b14   :  { %8120 = vmatprep.subr.bf16.mxu0 %v8665_v1 }
0x2bb6   :  { %v5580_v17 = vpop.f32.mrf.mxu0 }
0x2bb7   :  { %v5602_v23 = vmul.f32 %v8937_v33, %v5580_v17 }
0x2bb8   :  { %v8072_v18 = vpop.f32.mrf.mxu0 }
0x2bba   :  { %v5583_v22 = vpop.f32.mrf.mxu0 }
0x2bbb   :  { %v5603_v24 = vmul.f32 %v5583_v22, %v8839_v34 }
0x2bbc   :  { %v8073_v25 = vpop.f32.mrf.mxu0 }
0x2bbd   :  { %v5607_v27 = vpack.c.bf16 %v5603_v24, %v5602_v23 }
0x2bbe   :  { %v5588_v57 = vpop.f32.mrf.mxu0 }
0x2bbf   :  { %8085 = vmatmul.mubr.bf16.vlgmr.msra.gmra.mxu1 %v5607_v27  ;;  %v5604_v58 = vmul.f32 %v5588_v57, %v8853_v40 }
0x2bc0   :  { %v8076_v35 = vpop.f32.mrf.mxu0  ;;  %8088 = vmatprep.mubr.msk.bf16.mxu1 %vm10876_vm13, %v8665_v1 }
0x2bc2   :  { %v5591_v62 = vpop.f32.mrf.mxu0 }
0x2bc3   :  { %v5605_v28 = vmul.f32 %v5591_v62, %v8865_v43 }
0x2bc4   :  { %v8077_v36 = vpop.f32.mrf.mxu0 }
0x2bc5   :  { %v5608_v19 = vpack.c.bf16 %v5605_v28, %v5604_v58 }
0x2bc6   :  { %v5596_v32 = vpop.f32.mrf.mxu0 }
0x2bc7   :  { %8089 = vmatmul.mubr.bf16.gmra.mxu1 %v5608_v19  ;;  %v5606_v37 = vmul.f32 %v8948_v52, %v5596_v32 }
0x2bc8   :  { %v8080_v38 = vpop.f32.mrf.mxu0  ;;  %8092 = vmatprep.mubr.msk.bf16.mxu1 %vm10876_vm13, %v8665_v1 }
0x2bc9   :  { %v5609_v21 = vpack.c.bf16 %v5606_v37, %v5606_v37 }
0x2bca   :  { %v5599_v39 = vpop.f32.mrf.mxu0 }
0x2bcc   :  { %v8081_v5 = vpop.f32.mrf.mxu0 }
0x2bcf   :  { %8093 = vmatmul.mubr.bf16.gmra.mxu1 %v5609_v21 }
0x2bd0   :  { %8116 = vmatprep.mubr.msk.bf16.mxu1 %vm10876_vm13, %v8665_v1 }
0x2c7f   :  { %v5645_v42 = vpop.f32.mrf.mxu1 }
0x2c80   :  { %v5667_v44 = vmul.f32 0.35355338, %v5645_v42 }
0x2c81   :  { %v8086_v45 = vpop.f32.mrf.mxu1 }
0x2c82   :  { %v5672_v6 = vadd.f32 %v8638_v46, %v5667_v44 }
0x2c83   :  { %v5648_v47 = vpop.f32.mrf.mxu1 }
0x2c84   :  { %v5668_v4 = vmul.f32 0.35355338, %v5648_v47  ;;  %v5677_v13 = vsel %vm706_vm2, %v5672_v6, -inf }
0x2c85   :  { %5678 = vmax.xlane.f32.xlu0 %v5677_v13  ;;  %v8087_v48 = vpop.f32.mrf.mxu1 }
0x2c86   :  { %v5673_v50 = vadd.f32 %v8639_v30, %v5668_v4 }
0x2c87   :  { %v5653_v51 = vpop.f32.mrf.mxu1 }
0x2c88   :  { %v5669_v53 = vmul.f32 0.35355338, %v5653_v51  ;;  %v5680_v20 = vsel %vm706_vm2, %v5673_v50, -inf }
0x2c89   :  { %5681 = vmax.xlane.f32.xlu1 %v5680_v20  ;;  %v8090_v54 = vpop.f32.mrf.mxu1 }
0x2c8a   :  { %v5674_v56 = vadd.f32 %v8640_v55, %v5669_v53 }
0x2c8b   :  { %v5656_v31 = vpop.f32.mrf.mxu1 }
0x2c8c   :  { %v5670_v60 = vmul.f32 0.35355338, %v5656_v31  ;;  %v5683_v61 = vsel %vm706_vm2, %v5674_v56, -inf }
0x2c8d   :  { %5684 = vmax.xlane.f32.xlu0 %v5683_v61  ;;  %v8091_v26 = vpop.f32.mrf.mxu1 }
0x2c8e   :  { %v5675_v41 = vadd.f32 %v8641_v10, %v5670_v60  ;;  %v8439_v10 = vld [vmem:[%s10862_s3 + $0x778] sm:$0xff]  }
0x2c8f   :  { %v5661_v59 = vpop.f32.mrf.mxu1 }
0x2c90   :  { %v5671_v11 = vmul.f32 0.35355338, %v5661_v59  ;;  %v5686_v63 = vsel %vm706_vm2, %v5675_v41, -inf  ;;  %v8441_v59 = vld [vmem:[%s10862_s3 + $0x768] sm:$0xff]  }
0x2c91   :  { %5687 = vmax.xlane.f32.xlu1 %v5686_v63  ;;  %v8094_v7 = vpop.f32.mrf.mxu1  ;;  %v8443_v63 = vld [vmem:[%s10862_s3 + $0x758] sm:$0xff]  }
0x2c92   :  { %v5676_v9 = vadd.f32 %v8642_v2, %v5671_v11  ;;  %v8442_v11 = vld [vmem:[%s10862_s3 + $0x760] sm:$0xff]   ;;  %v8444_v7 = vld [vmem:[%s10862_s3 + $0x750] sm:$0xff]  }
0x2c93   :  { %v5664_v12 = vpop.f32.mrf.mxu1 }
0x2c94   :  { %v5689_v14 = vsel %vm706_vm2, %v5676_v9, -inf }
0x2c95   :  { %5690 = vmax.xlane.f32.xlu0 %v5689_v14  ;;  %v8095_v15 = vpop.f32.mrf.mxu1 }
0x2d0e   :  { %v5679_v8 = vpop.xlane.xlu0 %5678 }
0x2d0f   :  { %v5692_v16 = vsub.f32 %v5672_v6, %v5679_v8 }
0x2d11   :  { %v5697_v17 = vmul.f32 1.442695, %v5692_v16 }
0x2d12   :  { %v5682_v18 = vpop.xlane.xlu1 %5681 }
0x2d13   :  { %8603 = vpow2.f32 %v5697_v17  ;;  %v5693_v22 = vsub.f32 %v5673_v50, %v5682_v18 }
0x2d15   :  { %v5699_v23 = vmul.f32 1.442695, %v5693_v22 }
0x2d16   :  { %v5685_v24 = vpop.xlane.xlu0 %5684 }
0x2d17   :  { %8605 = vpow2.f32 %v5699_v23  ;;  %v5694_v25 = vsub.f32 %v5674_v56, %v5685_v24 }
0x2d19   :  { %v5701_v27 = vmul.f32 1.442695, %v5694_v25 }
0x2d1a   :  { %v5688_v57 = vpop.xlane.xlu1 %5687 }
0x2d1b   :  { %8607 = vpow2.f32 %v5701_v27  ;;  %v5695_v35 = vsub.f32 %v5675_v41, %v5688_v57  ;;  %v8440_v41 = vld [vmem:[%s10862_s3 + $0x770] sm:$0xff]  }
0x2d1d   :  { %v5703_v62 = vmul.f32 1.442695, %v5695_v35 }
0x2d1e   :  { %v5691_v58 = vpop.xlane.xlu0 %5690 }
0x2d1f   :  { %8609 = vpow2.f32 %v5703_v62  ;;  %v5696_v28 = vsub.f32 %v5676_v9, %v5691_v58 }
0x2d20   :  { %v8604_v36 = vpop.eup %8603 }
0x2d21   :  { %v5705_v19 = vmul.f32 1.442695, %v5696_v28  ;;  %v5707_v32 = vsel %vm706_vm2, %v8604_v36, 0.0 }
0x2d22   :  { %5708 = vadd.xlane.f32.xlu1 %v5707_v32 }
0x2d23   :  { %8611 = vpow2.f32 %v5705_v19 }
0x2d24   :  { %v8606_v37 = vpop.eup %8605 }
0x2d25   :  { %v5710_v38 = vsel %vm706_vm2, %v8606_v37, 0.0 }
0x2d26   :  { %5711 = vadd.xlane.f32.xlu0 %v5710_v38 }
0x2d28   :  { %v8608_v39 = vpop.eup %8607 }
0x2d29   :  { %v5713_v21 = vsel %vm706_vm2, %v8608_v39, 0.0 }
0x2d2a   :  { %5714 = vadd.xlane.f32.xlu1 %v5713_v21 }
0x2d2c   :  { %v8610_v5 = vpop.eup %8609 }
0x2d2d   :  { %v5716_v42 = vsel %vm706_vm2, %v8610_v5, 0.0 }
0x2d2e   :  { %5717 = vadd.xlane.f32.xlu0 %v5716_v42 }
0x2d30   :  { %v8612_v44 = vpop.eup %8611 }
0x2d31   :  { %v5719_v45 = vsel %vm706_vm2, %v8612_v44, 0.0 }
0x2d32   :  { %5720 = vadd.xlane.f32.xlu1 %v5719_v45 }
0x2dab   :  { %v5709_v46 = vpop.xlane.xlu1 %5708 }
0x2dac   :  { %8613 = vrcp.f32 %v5709_v46 }
0x2daf   :  { %v5712_v6 = vpop.xlane.xlu0 %5711 }
0x2db0   :  { %8615 = vrcp.f32 %v5712_v6 }
0x2db3   :  { %v5715_v47 = vpop.xlane.xlu1 %5714 }
0x2db4   :  { %8617 = vrcp.f32 %v5715_v47 }
0x2db7   :  { %v5718_v4 = vpop.xlane.xlu0 %5717 }
0x2db8   :  { %8619 = vrcp.f32 %v5718_v4 }
0x2db9   :  { %v8614_v13 = vpop.eup %8613 }
0x2dba   :  { %v5727_v48 = vmul.f32 %v8614_v13, %v8604_v36 }
0x2dbb   :  { %v5721_v30 = vpop.xlane.xlu1 %5720 }
0x2dbc   :  { %6787 = vst.msk [vmem:[%s10865_s6 + $0xc8] sm:$0xff] %vm706_vm2, %v5727_v48  ;;  %8621 = vrcp.f32 %v5721_v30 }
0x2dbd   :  { %v8616_v50 = vpop.eup %8615 }
0x2dbe   :  { %v5728_v51 = vmul.f32 %v8616_v50, %v8606_v37  ;;  %v6796_v37 = vld [vmem:[%s10863_s4 + $0x168] ss:$0 sm:$0xff] }
0x2dc0   :  { %6788 = vst.msk [vmem:[%s10865_s6 + $0xd0] sm:$0xff] %vm706_vm2, %v5728_v51  ;;  %v5738_v53 = vpack.c.bf16 %v5728_v51, %v5727_v48 }
0x2dc1   :  { %v8618_v20 = vpop.eup %8617 }
0x2dc2   :  { %8099 = vmatmul.mubr.msk.bf16.vlgmr.msra.gmra.mxu0 %vm706_vm2, %v5738_v53  ;;  %v5729_v54 = vmul.f32 %v8618_v20, %v8608_v39 }
0x2dc3   :  { %8102 = vmatprep.mubr.msk.bf16.mxu0 %vm10876_vm13, %v8665_v1  ;;  %8121 = vmatpush3.bf16.msra.mxu0 %v8439_v10  ;;  %v8454_v10 = vld [vmem:[%s10862_s3 + $0x780] sm:$0xff]  }
0x2dc4   :  { %6789 = vst.msk [vmem:[%s10865_s6 + $0xd8] sm:$0xff] %vm706_vm2, %v5729_v54  ;;  %8122 = vmatprep.subr.bf16.mxu0 %v8665_v1 }
0x2dc5   :  { %v8620_v55 = vpop.eup %8619 }
0x2dc6   :  { %v5730_v56 = vmul.f32 %v8620_v55, %v8610_v5  ;;  %v8448_v55 = vld [vmem:[%s10862_s3 + $0x7b0] sm:$0xff]  }
0x2dc7   :  { %8123 = vmatpush3.bf16.msra.mxu0 %v8440_v41  ;;  %v8455_v41 = vld [vmem:[%s10862_s3 + $0x7f8] sm:$0xff]  }
0x2dc8   :  { %6790 = vst.msk [vmem:[%s10865_s6 + $0xe0] sm:$0xff] %vm706_vm2, %v5730_v56  ;;  %v5739_v31 = vpack.c.bf16 %v5730_v56, %v5729_v54  ;;  %8124 = vmatprep.subr.bf16.mxu0 %v8665_v1  ;;  %v8449_v56 = vld [vmem:[%s10862_s3 + $0x7a8] sm:$0xff]  }
0x2dc9   :  { %v8622_v60 = vpop.eup %8621 }
0x2dca   :  { %8103 = vmatmul.mubr.msk.bf16.gmra.mxu0 %vm706_vm2, %v5739_v31  ;;  %v5731_v61 = vmul.f32 %v8622_v60, %v8612_v44  ;;  %v8450_v31 = vld [vmem:[%s10862_s3 + $0x7a0] sm:$0xff]   ;;  %v8451_v60 = vld [vmem:[%s10862_s3 + $0x798] sm:$0xff]  }
0x2dcb   :  { %8106 = vmatprep.mubr.msk.bf16.mxu0 %vm10876_vm13, %v8665_v1  ;;  %8125 = vmatpush3.bf16.msra.mxu0 %v8441_v59  ;;  %v8456_v59 = vld [vmem:[%s10862_s3 + $0x7f0] sm:$0xff]  }
0x2dcc   :  { %6791 = vst.msk [vmem:[%s10865_s6 + $0xe8] sm:$0xff] %vm706_vm2, %v5731_v61  ;;  %v5740_v26 = vpack.c.bf16 %v5731_v61, %v5731_v61  ;;  %8126 = vmatprep.subr.bf16.mxu0 %v8665_v1  ;;  %v8452_v61 = vld [vmem:[%s10862_s3 + $0x790] sm:$0xff]  }
0x2dcf   :  { %8127 = vmatpush3.bf16.msra.mxu0 %v8442_v11  ;;  %v8457_v11 = vld [vmem:[%s10862_s3 + $0x7e8] sm:$0xff]  }
0x2dd0   :  { %8128 = vmatprep.subr.bf16.mxu0 %v8665_v1 }
0x2dd2   :  { %8107 = vmatmul.mubr.msk.bf16.gmra.mxu0 %vm706_vm2, %v5740_v26  ;;  %v8453_v26 = vld [vmem:[%s10862_s3 + $0x788] sm:$0xff]  }
0x2dd3   :  { %8136 = vmatprep.mubr.msk.bf16.mxu0 %vm10876_vm13, %v8665_v1  ;;  %8129 = vmatpush3.bf16.msra.mxu0 %v8443_v63  ;;  %v8458_v63 = vld [vmem:[%s10862_s3 + $0x7e0] sm:$0xff]  }
0x2dd4   :  { %8130 = vmatprep.subr.bf16.mxu0 %v8665_v1 }
0x2dd7   :  { %8131 = vmatpush3.bf16.msra.mxu0 %v8444_v7  ;;  %v8459_v7 = vld [vmem:[%s10862_s3 + $0x7d8] sm:$0xff]  }
0x2dd8   :  { %8132 = vmatprep.subr.bf16.mxu0 %v8665_v1 }
0x2e82   :  { %v5788_v2 = vpop.f32.mrf.mxu0 }
0x2e83   :  { %v5810_v36 = vmul.f32 %v8937_v33, %v5788_v2 }
0x2e84   :  { %v8100_v9 = vpop.f32.mrf.mxu0 }
0x2e86   :  { %v5791_v12 = vpop.f32.mrf.mxu0 }
0x2e87   :  { %v5811_v58 = vmul.f32 %v5791_v12, %v8839_v34  ;;  %v8445_v34 = vld [vmem:[%s10862_s3 + $0x748] sm:$0xff]  }
0x2e88   :  { %v8101_v14 = vpop.f32.mrf.mxu0  ;;  %8133 = vmatpush3.bf16.msra.mxu0 %v8445_v34 }
0x2e89   :  { %8134 = vmatprep.subr.bf16.mxu0 %v8665_v1 }
0x2e8a   :  { %v5796_v15 = vpop.f32.mrf.mxu0 }
0x2e8b   :  { %v5812_v35 = vmul.f32 %v5796_v15, %v8853_v40  ;;  %v8446_v40 = vld [vmem:[%s10862_s3 + $0x740] sm:$0xff]  }
0x2e8c   :  { %v8104_v8 = vpop.f32.mrf.mxu0  ;;  %8135 = vmatpush3.bf16.msra.mxu0 %v8446_v40 }
0x2e8d   :  { %8160 = vmatprep.subr.bf16.mxu0 %v8665_v1 }
0x2e8e   :  { %v5799_v16 = vpop.f32.mrf.mxu0 }
0x2e8f   :  { %v5813_v25 = vmul.f32 %v5799_v16, %v8865_v43 }
0x2e90   :  { %v8105_v17 = vpop.f32.mrf.mxu0 }
0x2e91   :  { %v5816_v28 = vpack.c.bf16 %v5813_v25, %v5812_v35  ;;  %v6806_v25 = vld [vmem:[%s10863_s4 + $0x178] ss:$0 sm:$0xff] }
0x2e92   :  { %v5804_v18 = vpop.f32.mrf.mxu0 }
0x2e93   :  { %v5814_v22 = vmul.f32 %v8948_v52, %v5804_v18  ;;  %v5815_v52 = vpack.c.bf16 %v5811_v58, %v5810_v36  ;;  %v6805_v18 = vld [vmem:[%s10863_s4 + $0x170] ss:$0 sm:$0xff]  ;;  %v8462_v36 = vld [vmem:[%s10862_s3 + $0x7c0] sm:$0xff]  }
0x2e94   :  { %v8108_v23 = vpop.f32.mrf.mxu0  ;;  %v8460_v58 = vld [vmem:[%s10862_s3 + $0x7d0] sm:$0xff]  }
0x2e95   :  { %v5817_v24 = vpack.c.bf16 %v5814_v22, %v5814_v22 }
0x2e96   :  { %v5807_v27 = vpop.f32.mrf.mxu0 }
0x2e97   :  { %v5819_v57 = vsel %vm995_vm0, %v5817_v24, 0 }
0x2e98   :  { %v8109_v62 = vpop.f32.mrf.mxu0  ;;  %8111 = vmatpush3.bf16.msra.mxu1 %v5819_v57 }
0x2e99   :  { %8112 = vmatprep.subr.bf16.mxu1 %v8665_v1 }
0x2e9c   :  { %8113 = vmatpush3.bf16.msra.mxu1 %v5816_v28  ;;  %v8461_v28 = vld [vmem:[%s10862_s3 + $0x7c8] sm:$0xff]  }
0x2e9d   :  { %8114 = vmatprep.subr.bf16.mxu1 %v8665_v1 }
0x2ea0   :  { %8115 = vmatpush3.bf16.msra.mxu1 %v5815_v52  ;;  %v6807_v52 = vld [vmem:[%s10863_s4 + $0x180] ss:$0 sm:$0xff] }
0x2ea1   :  { %8140 = vmatprep.subr.bf16.mxu1 %v8665_v1 }
0x2ea3   :  { %8117 = vmatmul.mubr.msk.bf16.vlgmr.msra.gmra.mxu1 %vm991_vm7, %v9054_v49 }
0x2ea4   :  { %8156 = vmatprep.mubr.msk.bf16.mxu1 %vm10876_vm13, %v8665_v1 }
0x2f63   :  { %v5855_v43 = vpop.f32.mrf.mxu1 }
0x2f65   :  { %v8118_v33 = vpop.f32.mrf.mxu1 }
0x2f67   :  { %v5858_v49 = vpop.f32.mrf.mxu1 }
0x2f68   :  { %v5878_v19 = vpack.c.bf16 %v5858_v49, %v5855_v43 }
0x2f69   :  { %v8119_v32 = vpop.f32.mrf.mxu1 }
0x2f6a   :  { %8137 = vmatmul.mubr.bf16.vlgmr.msra.gmra.mxu0 %v5878_v19 }
0x2f6b   :  { %8176 = vmatprep.mubr.msk.bf16.mxu0 %vm10876_vm13, %v8665_v1  ;;  %8161 = vmatpush3.bf16.msra.mxu0 %v8455_v41  ;;  %v8470_v41 = vld [vmem:[%s10862_s3 + $0x800] sm:$0xff]  }
0x2f6c   :  { %8162 = vmatprep.subr.bf16.mxu0 %v8665_v1 }
0x2f6f   :  { %8163 = vmatpush3.bf16.msra.mxu0 %v8456_v59 }
0x2f70   :  { %8164 = vmatprep.subr.bf16.mxu0 %v8665_v1 }
0x2f73   :  { %8165 = vmatpush3.bf16.msra.mxu0 %v8457_v11 }
0x2f74   :  { %8166 = vmatprep.subr.bf16.mxu0 %v8665_v1 }
0x2f77   :  { %8167 = vmatpush3.bf16.msra.mxu0 %v8458_v63 }
0x2f78   :  { %8168 = vmatprep.subr.bf16.mxu0 %v8665_v1 }
0x2f7b   :  { %8169 = vmatpush3.bf16.msra.mxu0 %v8459_v7 }
0x2f7c   :  { %8170 = vmatprep.subr.bf16.mxu0 %v8665_v1 }
0x2f7f   :  { %8171 = vmatpush3.bf16.msra.mxu0 %v8460_v58 }
0x2f80   :  { %8172 = vmatprep.subr.bf16.mxu0 %v8665_v1 }
0x2f83   :  { %8173 = vmatpush3.bf16.msra.mxu0 %v8461_v28 }
0x2f84   :  { %8174 = vmatprep.subr.bf16.mxu0 %v8665_v1 }
0x2f87   :  { %8175 = vmatpush3.bf16.msra.mxu0 %v8462_v36 }
0x302a   :  { %v5966_v38 = vpop.f32.mrf.mxu0 }
0x302b   :  { %v5967_v39 = vadd.f32 %v6796_v37, %v5966_v38 }
0x302c   :  { %v8138_v21 = vpop.f32.mrf.mxu0 }
0x302d   :  { %v5973_v5 = vadd.f32 %v5967_v39, %v10548_v0  ;;  %v6816_v39 = vld [vmem:[%s10863_s4 + $0x188] ss:$0 sm:$0xff] }
0x302e   :  { %v5969_v42 = vpop.f32.mrf.mxu0 }
0x302f   :  { %v5970_v44 = vadd.f32 %v6796_v37, %v5969_v42  ;;  %5977 = vadd.xlane.f32.xlu1 %v5973_v5 }
0x3030   :  { %v8139_v45 = vpop.f32.mrf.mxu0 }
0x3031   :  { %v5974_v46 = vadd.f32 %v5970_v44, %v10550_v3  ;;  %v8447_v3 = vld [vmem:[%s10862_s3 + $0x7b8] sm:$0xff]  }
0x3032   :  { %8141 = vmatpush3.bf16.msra.mxu1 %v8447_v3 }
0x3033   :  { %v5979_v6 = vsel %vm1157_vm10, %v5974_v46, 0.0  ;;  %8142 = vmatprep.subr.bf16.mxu1 %v8665_v1 }
0x3034   :  { %5980 = vadd.xlane.f32.xlu0 %v5979_v6 }
0x3036   :  { %8143 = vmatpush3.bf16.msra.mxu1 %v8448_v55 }
0x3037   :  { %8144 = vmatprep.subr.bf16.mxu1 %v8665_v1 }
0x303a   :  { %8145 = vmatpush3.bf16.msra.mxu1 %v8449_v56  ;;  %v8463_v56 = vld [vmem:[%s10862_s3 + $0x838] sm:$0xff]  }
0x303b   :  { %8146 = vmatprep.subr.bf16.mxu1 %v8665_v1 }
0x303e   :  { %8147 = vmatpush3.bf16.msra.mxu1 %v8450_v31  ;;  %v8464_v31 = vld [vmem:[%s10862_s3 + $0x830] sm:$0xff]  }
0x303f   :  { %8148 = vmatprep.subr.bf16.mxu1 %v8665_v1 }
0x3042   :  { %8149 = vmatpush3.bf16.msra.mxu1 %v8451_v60  ;;  %v8466_v60 = vld [vmem:[%s10862_s3 + $0x820] sm:$0xff]  }
0x3043   :  { %8150 = vmatprep.subr.bf16.mxu1 %v8665_v1 }
0x3046   :  { %8151 = vmatpush3.bf16.msra.mxu1 %v8452_v61  ;;  %v8467_v61 = vld [vmem:[%s10862_s3 + $0x818] sm:$0xff]  }
0x3047   :  { %8152 = vmatprep.subr.bf16.mxu1 %v8665_v1 }
0x304a   :  { %8153 = vmatpush3.bf16.msra.mxu1 %v8453_v26  ;;  %v8468_v26 = vld [vmem:[%s10862_s3 + $0x810] sm:$0xff]  }
0x304b   :  { %8154 = vmatprep.subr.bf16.mxu1 %v8665_v1 }
0x304e   :  { %8155 = vmatpush3.bf16.msra.mxu1 %v8454_v10  ;;  %v8469_v10 = vld [vmem:[%s10862_s3 + $0x808] sm:$0xff]  }
0x304f   :  { %8180 = vmatprep.subr.bf16.mxu1 %v8665_v1 }
0x30b8   :  { %v5978_v47 = vpop.xlane.xlu1 %5977 }
0x30b9   :  { %v5982_v4 = vmul.f32 0.03125, %v5978_v47 }
0x30bb   :  { %v5984_v13 = vsub.f32 %v5973_v5, %v5982_v4 }
0x30bd   :  { %v5981_v48 = vpop.xlane.xlu0 %5980  ;;  %v5986_v30 = vmul.f32 %v9116_v29, %v5984_v13 }
0x30be   :  { %v5983_v50 = vmul.f32 0.03125, %v5981_v48 }
0x30bf   :  { %v5988_v51 = vmul.f32 %v5986_v30, %v5986_v30 }
0x30c0   :  { %v5985_v53 = vsub.f32 %v5974_v46, %v5983_v50 }
0x30c1   :  { %5990 = vadd.xlane.f32.xlu0 %v5988_v51 }
0x30c2   :  { %v5987_v0 = vmul.f32 %v9116_v29, %v5985_v53 }
0x30c4   :  { %v5989_v20 = vmul.f32 %v5987_v0, %v5987_v0 }
0x30c6   :  { %v5992_v54 = vsel %vm1157_vm10, %v5989_v20, 0.0 }
0x30c7   :  { %5993 = vadd.xlane.f32.xlu1 %v5992_v54 }
0x314a   :  { %v5991_v2 = vpop.xlane.xlu0 %5990 }
0x314b   :  { %v5995_v9 = vmul.f32 0.03125, %v5991_v2 }
0x314d   :  { %v5997_v12 = vadd.f32 1e-05, %v5995_v9 }
0x314f   :  { %8623 = vrsqrt.f32 %v5997_v12 }
0x3150   :  { %v5994_v14 = vpop.xlane.xlu1 %5993 }
0x3151   :  { %v5996_v15 = vmul.f32 0.03125, %v5994_v14 }
0x3153   :  { %v5998_v8 = vadd.f32 1e-05, %v5996_v15  ;;  %v6825_v15 = vld [vmem:[%s10863_s4 + $0x190] ss:$0 sm:$0xff] }
0x3155   :  { %8625 = vrsqrt.f32 %v5998_v8 }
0x315c   :  { %v8624_v16 = vpop.eup %8623 }
0x315d   :  { %v6001_v17 = vmul.f32 %v8624_v16, %v5986_v30 }
0x315f   :  { %v6007_v24 = vmul.f32 %v6805_v18, %v6001_v17 }
0x3161   :  { %v6013_v57 = vadd.f32 %v6806_v25, %v6007_v24 }
0x3162   :  { %v8626_v22 = vpop.eup %8625 }
0x3163   :  { %v6002_v23 = vmul.f32 %v8626_v22, %v5987_v0 }
0x3165   :  { %v6008_v27 = vmul.f32 %v6805_v18, %v6002_v23 }
0x3167   :  { %v6014_v35 = vadd.f32 %v6806_v25, %v6008_v27 }
0x3169   :  { %v6031_v62 = vpack.c.bf16 %v6014_v35, %v6013_v57 }
0x316b   :  { %8157 = vmatmul.mubr.bf16.vlgmr.msra.gmra.mxu1 %v6031_v62 }
0x316c   :  { %8196 = vmatprep.mubr.msk.bf16.mxu1 %vm10876_vm13, %v8665_v1  ;;  %8181 = vmatpush3.bf16.msra.mxu1 %v8463_v56 }
0x316d   :  { %8182 = vmatprep.subr.bf16.mxu1 %v8665_v1 }
0x3170   :  { %8183 = vmatpush3.bf16.msra.mxu1 %v8464_v31 }
0x3171   :  { %8184 = vmatprep.subr.bf16.mxu1 %v8665_v1 }
0x322b   :  { %v6119_v34 = vpop.f32.mrf.mxu1 }
0x322c   :  { %v6120_v43 = vadd.f32 %v6807_v52, %v6119_v34 }
0x322d   :  { %v8158_v40 = vpop.f32.mrf.mxu1 }
0x322e   :  { %v6126_v32 = vmax.f32 %v6120_v43, 0.0 }
0x322f   :  { %v6122_v33 = vpop.f32.mrf.mxu1 }
0x3230   :  { %v6123_v49 = vadd.f32 %v6807_v52, %v6122_v33 }
0x3231   :  { %v8159_v19 = vpop.f32.mrf.mxu1 }
0x3232   :  { %v6127_v37 = vmax.f32 %v6123_v49, 0.0 }
0x3234   :  { %v6144_v38 = vpack.c.bf16 %v6127_v37, %v6126_v32 }
0x3236   :  { %8177 = vmatmul.mubr.bf16.vlgmr.msra.gmra.mxu0 %v6144_v38 }
0x32f6   :  { %v6232_v21 = vpop.f32.mrf.mxu0 }
0x32f7   :  { %v6233_v5 = vadd.f32 %v6816_v39, %v6232_v21 }
0x32f8   :  { %v8178_v42 = vpop.f32.mrf.mxu0 }
0x32f9   :  { %v6239_v44 = vadd.f32 %v6233_v5, %v6013_v57 }
0x32fa   :  { %v6235_v45 = vpop.f32.mrf.mxu0 }
0x32fb   :  { %v6236_v46 = vadd.f32 %v6816_v39, %v6235_v45  ;;  %6243 = vadd.xlane.f32.xlu1 %v6239_v44 }
0x32fc   :  { %v8179_v6 = vpop.f32.mrf.mxu0 }
0x32fd   :  { %v6240_v47 = vadd.f32 %v6236_v46, %v6014_v35 }
0x32ff   :  { %v6245_v4 = vsel %vm1157_vm10, %v6240_v47, 0.0 }
0x3300   :  { %6246 = vadd.xlane.f32.xlu0 %v6245_v4 }
0x3384   :  { %v6244_v13 = vpop.xlane.xlu1 %6243 }
0x3385   :  { %v6248_v48 = vmul.f32 0.03125, %v6244_v13 }
0x3387   :  { %v6250_v30 = vsub.f32 %v6239_v44, %v6248_v48 }
0x3389   :  { %v6252_v50 = vmul.f32 %v9116_v29, %v6250_v30  ;;  %v6247_v51 = vpop.xlane.xlu0 %6246 }
0x338a   :  { %v6249_v53 = vmul.f32 0.03125, %v6247_v51 }
0x338b   :  { %v6254_v0 = vmul.f32 %v6252_v50, %v6252_v50 }
0x338c   :  { %v6251_v20 = vsub.f32 %v6240_v47, %v6249_v53 }
0x338d   :  { %6256 = vadd.xlane.f32.xlu0 %v6254_v0 }
0x338e   :  { %v6253_v54 = vmul.f32 %v9116_v29, %v6251_v20  ;;  %v8465_v29 = vld [vmem:[%s10862_s3 + $0x828] sm:$0xff]  }
0x338f   :  { %8185 = vmatpush3.bf16.msra.mxu1 %v8465_v29 }
0x3390   :  { %v6255_v3 = vmul.f32 %v6253_v54, %v6253_v54  ;;  %8186 = vmatprep.subr.bf16.mxu1 %v8665_v1 }
0x3392   :  { %v6258_v55 = vsel %vm1157_vm10, %v6255_v3, 0.0 }
0x3393   :  { %6259 = vadd.xlane.f32.xlu1 %v6258_v55  ;;  %8187 = vmatpush3.bf16.msra.mxu1 %v8466_v60 }
0x3394   :  { %8188 = vmatprep.subr.bf16.mxu1 %v8665_v1 }
0x3397   :  { %8189 = vmatpush3.bf16.msra.mxu1 %v8467_v61 }
0x3398   :  { %8190 = vmatprep.subr.bf16.mxu1 %v8665_v1 }
0x339b   :  { %8191 = vmatpush3.bf16.msra.mxu1 %v8468_v26 }
0x339c   :  { %8192 = vmatprep.subr.bf16.mxu1 %v8665_v1 }
0x339f   :  { %8193 = vmatpush3.bf16.msra.mxu1 %v8469_v10 }
0x33a0   :  { %8194 = vmatprep.subr.bf16.mxu1 %v8665_v1  ;;  %v6826_v1 = vld [vmem:[%s10863_s4 + $0x198] ss:$0 sm:$0xff] }
0x33a3   :  { %8195 = vmatpush3.bf16.msra.mxu1 %v8470_v41 }
0x3416   :  { %v6257_v59 = vpop.xlane.xlu0 %6256 }
0x3417   :  { %v6261_v11 = vmul.f32 0.03125, %v6257_v59 }
0x3419   :  { %v6263_v63 = vadd.f32 1e-05, %v6261_v11 }
0x341b   :  { %8627 = vrsqrt.f32 %v6263_v63 }
0x341c   :  { %v6260_v7 = vpop.xlane.xlu1 %6259 }
0x341d   :  { %v6262_v2 = vmul.f32 0.03125, %v6260_v7 }
0x341f   :  { %v6264_v9 = vadd.f32 1e-05, %v6262_v2 }
0x3421   :  { %8629 = vrsqrt.f32 %v6264_v9 }
0x3428   :  { %v8628_v12 = vpop.eup %8627 }
0x3429   :  { %v6267_v14 = vmul.f32 %v8628_v12, %v6252_v50 }
0x342b   :  { %v6273_v17 = vmul.f32 %v6825_v15, %v6267_v14 }
0x342d   :  { %v6279_v22 = vadd.f32 %v6826_v1, %v6273_v17 }
0x342e   :  { %v8630_v8 = vpop.eup %8629 }
0x342f   :  { %v6268_v16 = vmul.f32 %v8630_v8, %v6253_v54 }
0x3431   :  { %v6274_v18 = vmul.f32 %v6825_v15, %v6268_v16 }
0x3433   :  { %v6280_v23 = vadd.f32 %v6826_v1, %v6274_v18 }
0x3435   :  { %v6297_v24 = vpack.c.bf16 %v6280_v23, %v6279_v22 }
0x3437   :  { %8197 = vmatmul.mubr.bf16.vlgmr.msra.gmra.mxu1 %v6297_v24 }
0x34f7   :  { %v6380_v25 = vpop.f32.mrf.mxu1 }
0x34f8   :  { %6387 = vst [vmem:[#allocation2] sm:$0xff] %v6380_v25 }
0x34f9   :  { %v8198_v27 = vpop.f32.mrf.mxu1 }
0x34fb   :  { %v6383_v57 = vpop.f32.mrf.mxu1 }
0x34fc   :  { %6388 = vst [vmem:[#allocation2 + $0x8] sm:$0x3] %v6383_v57 }
0x34fd   :  { %v8199_v35 = vpop.f32.mrf.mxu1 }
0x34fe   :  { %8654 = shalt.err (!%p8651_p4)
}
0x34ff   :  { %s8668_s4 = smov 128   ;;  %s8669_s29 = smov 8  }
0x3500   :  { %6400 = dma.vmem_to_hbm [thread:$0]  %s6395_s28, 256, %s10864_s5, [#allocation3], %s8668_s4, %s8668_s4, %s8669_s29  }
0x3501   :  { %8663 = dma.done.wait [#allocation3], 256  }
0x3502   :  { %8664 = vsyncadd [#allocation3], 4294967040 }
0x3503   :  { %6408 = vsyncpa [#allocation3], 1 }

</bundles_post_ra>
